<compile_context>
chip_gen: v6e
topology: v6e:2x2x1
jax: 0.10.0
libtpu: 0.0.40
codegen_flags: <defaults>
</compile_context>

<pallas_src>
import functools

import numpy as np

import jax
import jax.numpy as jnp
from jax.experimental import pallas as pl
from jax.experimental.pallas import tpu as pltpu


# ------------------------------ fused Pallas kernel ------------------------------

def _policy_kernel(
    p1_ref, w1_ref, b1_ref,          # conv1 patches + matmul weight/bias
    s2_ref, w2_ref, b2_ref,          # conv2 selection matrices + per-tap weights + bias
    s3_ref, w3_ref, b3_ref,          # conv3 selection matrices + per-tap weights + bias
    wfc_ref, bfc_ref,                # NatureCnn fc -> 512
    wih_f_ref, wih_e_ref, bih_ref,   # GRU W_ih split (feature block / embed block) + b_ih
    whh_ref, bhh_ref,                # GRU W_hh + b_hh
    whd_ref, bhd_ref,                # fused pi|v head (zero-padded to 128 lanes)
    hx_ref, emb_ref,                 # recurrent state, embed
    h_out_ref, head_out_ref,         # outputs: new hidden state, padded head logits
):
    f32 = jnp.float32
    bf16 = jnp.bfloat16

    def dot(a, b):
        return jnp.dot(a, b, preferred_element_type=f32)

    # ---- conv1 (8x8, stride 4) as one matmul on pre-gathered patches, ReLU ----
    a1 = jnp.maximum(dot(p1_ref[...], w1_ref[...]) + b1_ref[...], 0.0)       # (B*64, 32) f32
    a1 = a1.astype(bf16)

    # ---- conv2 (4x4, stride 2): in-kernel im2col via static 0/1 selection matmuls ----
    acc2 = jnp.zeros((s2_ref.shape[1], w2_ref.shape[2]), f32)
    for t in range(s2_ref.shape[0]):                                         # 16 taps, static unroll
        rows = dot(s2_ref[t], a1).astype(bf16)                               # exact row gather (B*9, 32)
        acc2 = acc2 + dot(rows, w2_ref[t])
    a2 = jnp.maximum(acc2 + b2_ref[...], 0.0).astype(bf16)                   # (B*9, 64)

    # ---- conv3 (3x3, stride 1, 1x1 output spatial): same scheme, 9 taps ----
    acc3 = jnp.zeros((s3_ref.shape[1], w3_ref.shape[2]), f32)
    for t in range(s3_ref.shape[0]):
        rows = dot(s3_ref[t], a2).astype(bf16)                               # (B, 64)
        acc3 = acc3 + dot(rows, w3_ref[t])
    a3 = jnp.maximum(acc3 + b3_ref[...], 0.0).astype(bf16)                   # (B, 64) == torch NCHW flatten (1x1 spatial)

    # ---- fc -> 512, ReLU ----
    feat = jnp.maximum(dot(a3, wfc_ref[...]) + bfc_ref[...], 0.0).astype(bf16)  # (B, 512)

    # ---- GRUCell (gate order [r | z | n]); concat(feat, embed) folded into split W_ih ----
    hx = hx_ref[...]                                                         # (B, H) f32
    gi = (dot(feat, wih_f_ref[...])
          + dot(emb_ref[...].astype(bf16), wih_e_ref[...])
          + bih_ref[...])                                                    # (B, 3H) f32
    gh = dot(hx.astype(bf16), whh_ref[...]) + bhh_ref[...]                   # (B, 3H) f32
    H = hx_ref.shape[1]                                                      # 256 -> 128-lane aligned slices
    r = jax.nn.sigmoid(gi[:, :H] + gh[:, :H])
    z = jax.nn.sigmoid(gi[:, H:2 * H] + gh[:, H:2 * H])
    n = jnp.tanh(gi[:, 2 * H:] + r * gh[:, 2 * H:])
    h_new = n + z * (hx - n)                                                 # == (1 - z) * n + z * hx
    h_out_ref[...] = h_new.astype(h_out_ref.dtype)

    # ---- fused pi/v head, zero-padded to a lane-dense 128-wide output ----
    head = dot(h_new.astype(bf16), whd_ref[...]) + bhd_ref[...]              # (B, 128) f32
    head_out_ref[...] = head.astype(head_out_ref.dtype)


# --------------------------------- JAX-side glue ----------------------------------

def im2col(x, kh, kw, stride):
    """x: (B, C, H, W) NCHW -> (B*Ho*Wo, C*kh*kw), rows (b,ho,wo), cols (c,kh,kw)."""
    B, C, H, W = x.shape
    Ho = (H - kh) // stride + 1
    Wo = (W - kw) // stride + 1
    cols = []
    for i in range(kh):
        for j in range(kw):
            cols.append(x[:, :, i:i + stride * Ho:stride, j:j + stride * Wo:stride])
    p = jnp.stack(cols, axis=0).reshape(kh, kw, B, C, Ho, Wo)
    p = p.transpose(2, 4, 5, 3, 0, 1)                       # (B, Ho, Wo, C, kh, kw)
    return p.reshape(B * Ho * Wo, C * kh * kw), (B, Ho, Wo)


def _selection_mats(batch, s_in, s_out, k, stride):
    """(k*k, batch*s_out^2, batch*s_in^2) static 0/1 row-gather matrices, one per conv tap."""
    sel = np.zeros((k * k, batch * s_out * s_out, batch * s_in * s_in), np.float32)
    for i in range(k):
        for j in range(k):
            t = i * k + j
            for b in range(batch):
                for ho in range(s_out):
                    for wo in range(s_out):
                        ro = (b * s_out + ho) * s_out + wo
                        ri = (b * s_in + ho * stride + i) * s_in + (wo * stride + j)
                        sel[t, ro, ri] = 1.0
    return sel


# ----------------------------- parameter construction ------------------------------

def _init_linear(key, in_dim, out_dim):
    k1, k2 = jax.random.split(key)
    bound = 1.0 / float(in_dim) ** 0.5
    w = jax.random.uniform(k1, (in_dim, out_dim), jnp.float32, -bound, bound)
    b = jax.random.uniform(k2, (out_dim,), jnp.float32, -bound, bound)
    return w, b


def _init_conv(key, cout, cin, kh, kw):
    k1, k2 = jax.random.split(key)
    fan_in = cin * kh * kw
    bound = 1.0 / float(fan_in) ** 0.5
    w = jax.random.uniform(k1, (cout, cin, kh, kw), jnp.float32, -bound, bound)
    b = jax.random.uniform(k2, (cout,), jnp.float32, -bound, bound)
    return w, b


def init_params(key, input_channels, spatial, output_size, lstm_size=256):
    """PyTorch-layout parameters of ConvGRUPolicy (NatureCnn, use_bn=False)."""
    hidden_size = 512
    keys = jax.random.split(key, 8)
    p = {}
    p["conv1_w"], p["conv1_b"] = _init_conv(keys[0], 32, input_channels, 8, 8)
    p["conv2_w"], p["conv2_b"] = _init_conv(keys[1], 64, 32, 4, 4)
    p["conv3_w"], p["conv3_b"] = _init_conv(keys[2], 64, 64, 3, 3)
    s1 = (spatial - 8) // 4 + 1
    s2 = (s1 - 4) // 2 + 1
    s3 = s2 - 2
    p["fc_w"], p["fc_b"] = _init_linear(keys[3], 64 * s3 * s3, hidden_size)
    lstm_input_size = hidden_size + output_size + 2
    # GRUCell weights stored already transposed: (in, 3H) / (H, 3H), gate order [r|z|n]
    p["gru_wih"], p["gru_bih"] = _init_linear(keys[4], lstm_input_size, 3 * lstm_size)
    p["gru_whh"], p["gru_bhh"] = _init_linear(keys[5], lstm_size, 3 * lstm_size)
    p["pi_w"], p["pi_b"] = _init_linear(keys[6], lstm_size, output_size)
    p["v_w"], p["v_b"] = _init_linear(keys[7], lstm_size, 1)
    return p


def prepare_kernel_params(p, hidden_size=512):
    """Convert PyTorch-layout params into kernel-ready bf16 weights / f32 biases."""
    bf16, f32 = jnp.bfloat16, jnp.float32
    kp = {}
    # conv1: (Cout, Cin, kh, kw) -> (Cin*kh*kw, Cout), matching im2col column order (c, kh, kw)
    c1 = p["conv1_w"]
    kp["conv1_w"] = c1.reshape(c1.shape[0], -1).T.astype(bf16)
    kp["conv1_b"] = p["conv1_b"].reshape(1, -1).astype(f32)

    def per_tap(w):  # (Cout, Cin, kh, kw) -> (kh*kw, Cin, Cout)
        co, ci, kh, kw = w.shape
        return jnp.transpose(w, (2, 3, 1, 0)).reshape(kh * kw, ci, co).astype(bf16)

    kp["conv2_w"] = per_tap(p["conv2_w"])
    kp["conv2_b"] = p["conv2_b"].reshape(1, -1).astype(f32)
    kp["conv3_w"] = per_tap(p["conv3_w"])
    kp["conv3_b"] = p["conv3_b"].reshape(1, -1).astype(f32)

    kp["fc_w"] = p["fc_w"].astype(bf16)
    kp["fc_b"] = p["fc_b"].reshape(1, -1).astype(f32)

    # GRU: split W_ih into the encoder-feature block and the embed block (removes torch.cat)
    kp["gru_wih_feat"] = p["gru_wih"][:hidden_size].astype(bf16)
    kp["gru_wih_emb"] = p["gru_wih"][hidden_size:].astype(bf16)
    kp["gru_bih"] = p["gru_bih"].reshape(1, -1).astype(f32)
    kp["gru_whh"] = p["gru_whh"].astype(bf16)
    kp["gru_bhh"] = p["gru_bhh"].reshape(1, -1).astype(f32)

    # fused pi|v head, zero-padded to a lane-dense multiple of 128 columns
    lstm_size = p["gru_whh"].shape[0]
    out_sz = p["pi_w"].shape[1]
    n_small = out_sz + 1
    n_head = max(128, ((n_small + 127) // 128) * 128)
    head_w = jnp.zeros((lstm_size, n_head), f32)
    head_w = head_w.at[:, :out_sz].set(p["pi_w"])
    head_w = head_w.at[:, out_sz:n_small].set(p["v_w"])
    head_b = jnp.zeros((n_head,), f32)
    head_b = head_b.at[:out_sz].set(p["pi_b"])
    head_b = head_b.at[out_sz:n_small].set(p["v_b"])
    kp["head_w"] = head_w.astype(bf16)
    kp["head_b"] = head_b.reshape(1, -1).astype(f32)
    return kp


# ---------------------------------- forward pass -----------------------------------

def conv_gru_policy_forward(kp, x, hx, embed, output_size):
    """Mirrors ConvGRUPolicy.forward; returns (pi_logits, value, h)."""
    B, _, S, _ = x.shape
    sp1 = (S - 8) // 4 + 1
    sp2 = (sp1 - 4) // 2 + 1
    sp3 = sp2 - 2
    # With a 1x1 final spatial, torch's NCHW .view() flatten == channel order (exact match).
    assert sp3 == 1, "this script supports NatureCnn configs whose final conv spatial is 1x1"

    # conv1 im2col: one small JAX transform of the raw input; its output feeds the fused kernel.
    p1, _ = im2col(x, 8, 8, 4)
    p1 = p1.astype(jnp.bfloat16)                              # (B*sp1*sp1, C*64)

    # Static 0/1 tap-selection matrices (trace-time constants; live in VMEM inside the kernel).
    sel2 = jnp.asarray(_selection_mats(B, sp1, sp2, 4, 2), jnp.bfloat16)
    sel3 = jnp.asarray(_selection_mats(B, sp2, sp3, 3, 1), jnp.bfloat16)

    H = hx.shape[1]
    n_head = kp["head_w"].shape[1]
    vmem = pl.BlockSpec(memory_space=pltpu.MemorySpace.VMEM)

    h_new, head = pl.pallas_call(
        _policy_kernel,
        out_shape=(jax.ShapeDtypeStruct((B, H), jnp.float32),
                   jax.ShapeDtypeStruct((B, n_head), jnp.float32)),
        in_specs=[vmem] * 20,
        out_specs=(vmem, vmem),
    )(p1, kp["conv1_w"], kp["conv1_b"],
      sel2, kp["conv2_w"], kp["conv2_b"],
      sel3, kp["conv3_w"], kp["conv3_b"],
      kp["fc_w"], kp["fc_b"],
      kp["gru_wih_feat"], kp["gru_wih_emb"], kp["gru_bih"],
      kp["gru_whh"], kp["gru_bhh"],
      kp["head_w"], kp["head_b"],
      hx, embed)

    pi_logits = head[:, :output_size]                         # Categorical(logits=...)
    value = head[:, output_size:output_size + 1]              # self.v(h), shape (B, 1)
    return pi_logits, value, h_new


# -------------------------------------- main ----------------------------------------

if __name__ == "__main__":
    B, C, S = 2, 4, 36          # batch, input channels, spatial (36 -> 8 -> 3 -> 1)
    output_size = 6             # number of discrete actions
    lstm_size = 256

    key = jax.random.PRNGKey(0)
    kp_key, kx, khx, ke = jax.random.split(key, 4)

    torch_params = init_params(kp_key, C, S, output_size, lstm_size)
    kparams = prepare_kernel_params(torch_params)

    x = jax.random.uniform(kx, (B, C, S, S), jnp.float32)
    hx = jax.random.normal(khx, (B, lstm_size), jnp.float32) * 0.1
    embed = jax.random.uniform(ke, (B, output_size + 2), jnp.float32)

    fwd = jax.jit(functools.partial(conv_gru_policy_forward, output_size=output_size))
    pi_logits, value, h_new = fwd(kparams, x, hx, embed)
    jax.block_until_ready((pi_logits, value, h_new))

    assert pi_logits.shape == (B, output_size)
    assert value.shape == (B, 1)
    assert h_new.shape == (B, lstm_size)
    assert bool(jnp.all(jnp.isfinite(pi_logits))) and bool(jnp.all(jnp.isfinite(h_new)))
    print("KERNEL_OK")
</pallas_src>

<mosaic_0001>
module attributes {stable_mosaic.version = 11 : i64} {
  func.func @_policy_kernel(%arg0: memref<128x256xbf16, #tpu.memory_space<vmem>>, %arg1: memref<256x32xbf16, #tpu.memory_space<vmem>>, %arg2: memref<1x32xf32, #tpu.memory_space<vmem>>, %arg3: memref<16x18x128xbf16, #tpu.memory_space<vmem>>, %arg4: memref<16x32x64xbf16, #tpu.memory_space<vmem>>, %arg5: memref<1x64xf32, #tpu.memory_space<vmem>>, %arg6: memref<9x2x18xbf16, #tpu.memory_space<vmem>>, %arg7: memref<9x64x64xbf16, #tpu.memory_space<vmem>>, %arg8: memref<1x64xf32, #tpu.memory_space<vmem>>, %arg9: memref<64x512xbf16, #tpu.memory_space<vmem>>, %arg10: memref<1x512xf32, #tpu.memory_space<vmem>>, %arg11: memref<512x768xbf16, #tpu.memory_space<vmem>>, %arg12: memref<8x768xbf16, #tpu.memory_space<vmem>>, %arg13: memref<1x768xf32, #tpu.memory_space<vmem>>, %arg14: memref<256x768xbf16, #tpu.memory_space<vmem>>, %arg15: memref<1x768xf32, #tpu.memory_space<vmem>>, %arg16: memref<256x128xbf16, #tpu.memory_space<vmem>>, %arg17: memref<1x128xf32, #tpu.memory_space<vmem>>, %arg18: memref<2x256xf32, #tpu.memory_space<vmem>>, %arg19: memref<2x8xf32, #tpu.memory_space<vmem>>, %arg20: memref<2x256xf32, #tpu.memory_space<vmem>>, %arg21: memref<2x128xf32, #tpu.memory_space<vmem>>) attributes {dimension_semantics = [], scalar_prefetch = 0 : i64, scratch_operands = 0 : i64, tpu.core_type = #tpu.core_type<tc>} {
    %c0 = arith.constant 0 : index
    %c0_0 = arith.constant 0 : index
    %0 = vector.load %arg0[%c0, %c0_0] : memref<128x256xbf16, #tpu.memory_space<vmem>>, vector<128x256xbf16>
    %c0_1 = arith.constant 0 : index
    %c0_2 = arith.constant 0 : index
    %1 = vector.load %arg1[%c0_1, %c0_2] : memref<256x32xbf16, #tpu.memory_space<vmem>>, vector<256x32xbf16>
    %cst = arith.constant dense<0.000000e+00> : vector<128x32xf32>
    %2 = tpu.matmul %0, %1, %cst {dimension_numbers = #tpu.dot_dimension_numbers<[1], [0], [0], [1], [0, 0, 1, 1], [], []>} : vector<128x256xbf16>, vector<256x32xbf16>, vector<128x32xf32> -> vector<128x32xf32>
    %c0_3 = arith.constant 0 : index
    %c0_4 = arith.constant 0 : index
    %3 = vector.load %arg2[%c0_3, %c0_4] : memref<1x32xf32, #tpu.memory_space<vmem>>, vector<1x32xf32>
    %4 = vector.broadcast %3 : vector<1x32xf32> to vector<128x32xf32>
    %5 = arith.addf %2, %4 : vector<128x32xf32>
    %cst_5 = arith.constant 0.000000e+00 : f32
    %6 = vector.broadcast %cst_5 : f32 to vector<128x32xf32>
    %7 = arith.maximumf %5, %6 : vector<128x32xf32>
    %8 = arith.truncf %7 : vector<128x32xf32> to vector<128x32xbf16>
    %cst_6 = arith.constant 0.000000e+00 : f32
    %9 = vector.broadcast %cst_6 : f32 to vector<18x64xf32>
    %c0_7 = arith.constant 0 : index
    %c0_8 = arith.constant 0 : index
    %c0_9 = arith.constant 0 : index
    %10 = vector.load %arg3[%c0_7, %c0_8, %c0_9] : memref<16x18x128xbf16, #tpu.memory_space<vmem>>, vector<1x18x128xbf16>
    %11 = vector.shape_cast %10 : vector<1x18x128xbf16> to vector<18x128xbf16>
    %cst_10 = arith.constant dense<0.000000e+00> : vector<18x32xf32>
    %12 = tpu.matmul %11, %8, %cst_10 {dimension_numbers = #tpu.dot_dimension_numbers<[1], [0], [0], [1], [0, 0, 1, 1], [], []>} : vector<18x128xbf16>, vector<128x32xbf16>, vector<18x32xf32> -> vector<18x32xf32>
    %13 = arith.truncf %12 : vector<18x32xf32> to vector<18x32xbf16>
    %c0_11 = arith.constant 0 : index
    %c0_12 = arith.constant 0 : index
    %c0_13 = arith.constant 0 : index
    %14 = vector.load %arg4[%c0_11, %c0_12, %c0_13] : memref<16x32x64xbf16, #tpu.memory_space<vmem>>, vector<1x32x64xbf16>
    %15 = vector.shape_cast %14 : vector<1x32x64xbf16> to vector<32x64xbf16>
    %cst_14 = arith.constant dense<0.000000e+00> : vector<18x64xf32>
    %16 = tpu.matmul %13, %15, %cst_14 {dimension_numbers = #tpu.dot_dimension_numbers<[1], [0], [0], [1], [0, 0, 1, 1], [], []>} : vector<18x32xbf16>, vector<32x64xbf16>, vector<18x64xf32> -> vector<18x64xf32>
    %17 = arith.addf %9, %16 : vector<18x64xf32>
    %c1 = arith.constant 1 : index
    %c0_15 = arith.constant 0 : index
    %c0_16 = arith.constant 0 : index
    %18 = vector.load %arg3[%c1, %c0_15, %c0_16] : memref<16x18x128xbf16, #tpu.memory_space<vmem>>, vector<1x18x128xbf16>
    %19 = vector.shape_cast %18 : vector<1x18x128xbf16> to vector<18x128xbf16>
    %cst_17 = arith.constant dense<0.000000e+00> : vector<18x32xf32>
    %20 = tpu.matmul %19, %8, %cst_17 {dimension_numbers = #tpu.dot_dimension_numbers<[1], [0], [0], [1], [0, 0, 1, 1], [], []>} : vector<18x128xbf16>, vector<128x32xbf16>, vector<18x32xf32> -> vector<18x32xf32>
    %21 = arith.truncf %20 : vector<18x32xf32> to vector<18x32xbf16>
    %c1_18 = arith.constant 1 : index
    %c0_19 = arith.constant 0 : index
    %c0_20 = arith.constant 0 : index
    %22 = vector.load %arg4[%c1_18, %c0_19, %c0_20] : memref<16x32x64xbf16, #tpu.memory_space<vmem>>, vector<1x32x64xbf16>
    %23 = vector.shape_cast %22 : vector<1x32x64xbf16> to vector<32x64xbf16>
    %cst_21 = arith.constant dense<0.000000e+00> : vector<18x64xf32>
    %24 = tpu.matmul %21, %23, %cst_21 {dimension_numbers = #tpu.dot_dimension_numbers<[1], [0], [0], [1], [0, 0, 1, 1], [], []>} : vector<18x32xbf16>, vector<32x64xbf16>, vector<18x64xf32> -> vector<18x64xf32>
    %25 = arith.addf %17, %24 : vector<18x64xf32>
    %c2 = arith.constant 2 : index
    %c0_22 = arith.constant 0 : index
    %c0_23 = arith.constant 0 : index
    %26 = vector.load %arg3[%c2, %c0_22, %c0_23] : memref<16x18x128xbf16, #tpu.memory_space<vmem>>, vector<1x18x128xbf16>
    %27 = vector.shape_cast %26 : vector<1x18x128xbf16> to vector<18x128xbf16>
    %cst_24 = arith.constant dense<0.000000e+00> : vector<18x32xf32>
    %28 = tpu.matmul %27, %8, %cst_24 {dimension_numbers = #tpu.dot_dimension_numbers<[1], [0], [0], [1], [0, 0, 1, 1], [], []>} : vector<18x128xbf16>, vector<128x32xbf16>, vector<18x32xf32> -> vector<18x32xf32>
    %29 = arith.truncf %28 : vector<18x32xf32> to vector<18x32xbf16>
    %c2_25 = arith.constant 2 : index
    %c0_26 = arith.constant 0 : index
    %c0_27 = arith.constant 0 : index
    %30 = vector.load %arg4[%c2_25, %c0_26, %c0_27] : memref<16x32x64xbf16, #tpu.memory_space<vmem>>, vector<1x32x64xbf16>
    %31 = vector.shape_cast %30 : vector<1x32x64xbf16> to vector<32x64xbf16>
    %cst_28 = arith.constant dense<0.000000e+00> : vector<18x64xf32>
    %32 = tpu.matmul %29, %31, %cst_28 {dimension_numbers = #tpu.dot_dimension_numbers<[1], [0], [0], [1], [0, 0, 1, 1], [], []>} : vector<18x32xbf16>, vector<32x64xbf16>, vector<18x64xf32> -> vector<18x64xf32>
    %33 = arith.addf %25, %32 : vector<18x64xf32>
    %c3 = arith.constant 3 : index
    %c0_29 = arith.constant 0 : index
    %c0_30 = arith.constant 0 : index
    %34 = vector.load %arg3[%c3, %c0_29, %c0_30] : memref<16x18x128xbf16, #tpu.memory_space<vmem>>, vector<1x18x128xbf16>
    %35 = vector.shape_cast %34 : vector<1x18x128xbf16> to vector<18x128xbf16>
    %cst_31 = arith.constant dense<0.000000e+00> : vector<18x32xf32>
    %36 = tpu.matmul %35, %8, %cst_31 {dimension_numbers = #tpu.dot_dimension_numbers<[1], [0], [0], [1], [0, 0, 1, 1], [], []>} : vector<18x128xbf16>, vector<128x32xbf16>, vector<18x32xf32> -> vector<18x32xf32>
    %37 = arith.truncf %36 : vector<18x32xf32> to vector<18x32xbf16>
    %c3_32 = arith.constant 3 : index
    %c0_33 = arith.constant 0 : index
    %c0_34 = arith.constant 0 : index
    %38 = vector.load %arg4[%c3_32, %c0_33, %c0_34] : memref<16x32x64xbf16, #tpu.memory_space<vmem>>, vector<1x32x64xbf16>
    %39 = vector.shape_cast %38 : vector<1x32x64xbf16> to vector<32x64xbf16>
    %cst_35 = arith.constant dense<0.000000e+00> : vector<18x64xf32>
    %40 = tpu.matmul %37, %39, %cst_35 {dimension_numbers = #tpu.dot_dimension_numbers<[1], [0], [0], [1], [0, 0, 1, 1], [], []>} : vector<18x32xbf16>, vector<32x64xbf16>, vector<18x64xf32> -> vector<18x64xf32>
    %41 = arith.addf %33, %40 : vector<18x64xf32>
    %c4 = arith.constant 4 : index
    %c0_36 = arith.constant 0 : index
    %c0_37 = arith.constant 0 : index
    %42 = vector.load %arg3[%c4, %c0_36, %c0_37] : memref<16x18x128xbf16, #tpu.memory_space<vmem>>, vector<1x18x128xbf16>
    %43 = vector.shape_cast %42 : vector<1x18x128xbf16> to vector<18x128xbf16>
    %cst_38 = arith.constant dense<0.000000e+00> : vector<18x32xf32>
    %44 = tpu.matmul %43, %8, %cst_38 {dimension_numbers = #tpu.dot_dimension_numbers<[1], [0], [0], [1], [0, 0, 1, 1], [], []>} : vector<18x128xbf16>, vector<128x32xbf16>, vector<18x32xf32> -> vector<18x32xf32>
    %45 = arith.truncf %44 : vector<18x32xf32> to vector<18x32xbf16>
    %c4_39 = arith.constant 4 : index
    %c0_40 = arith.constant 0 : index
    %c0_41 = arith.constant 0 : index
    %46 = vector.load %arg4[%c4_39, %c0_40, %c0_41] : memref<16x32x64xbf16, #tpu.memory_space<vmem>>, vector<1x32x64xbf16>
    %47 = vector.shape_cast %46 : vector<1x32x64xbf16> to vector<32x64xbf16>
    %cst_42 = arith.constant dense<0.000000e+00> : vector<18x64xf32>
    %48 = tpu.matmul %45, %47, %cst_42 {dimension_numbers = #tpu.dot_dimension_numbers<[1], [0], [0], [1], [0, 0, 1, 1], [], []>} : vector<18x32xbf16>, vector<32x64xbf16>, vector<18x64xf32> -> vector<18x64xf32>
    %49 = arith.addf %41, %48 : vector<18x64xf32>
    %c5 = arith.constant 5 : index
    %c0_43 = arith.constant 0 : index
    %c0_44 = arith.constant 0 : index
    %50 = vector.load %arg3[%c5, %c0_43, %c0_44] : memref<16x18x128xbf16, #tpu.memory_space<vmem>>, vector<1x18x128xbf16>
    %51 = vector.shape_cast %50 : vector<1x18x128xbf16> to vector<18x128xbf16>
    %cst_45 = arith.constant dense<0.000000e+00> : vector<18x32xf32>
    %52 = tpu.matmul %51, %8, %cst_45 {dimension_numbers = #tpu.dot_dimension_numbers<[1], [0], [0], [1], [0, 0, 1, 1], [], []>} : vector<18x128xbf16>, vector<128x32xbf16>, vector<18x32xf32> -> vector<18x32xf32>
    %53 = arith.truncf %52 : vector<18x32xf32> to vector<18x32xbf16>
    %c5_46 = arith.constant 5 : index
    %c0_47 = arith.constant 0 : index
    %c0_48 = arith.constant 0 : index
    %54 = vector.load %arg4[%c5_46, %c0_47, %c0_48] : memref<16x32x64xbf16, #tpu.memory_space<vmem>>, vector<1x32x64xbf16>
    %55 = vector.shape_cast %54 : vector<1x32x64xbf16> to vector<32x64xbf16>
    %cst_49 = arith.constant dense<0.000000e+00> : vector<18x64xf32>
    %56 = tpu.matmul %53, %55, %cst_49 {dimension_numbers = #tpu.dot_dimension_numbers<[1], [0], [0], [1], [0, 0, 1, 1], [], []>} : vector<18x32xbf16>, vector<32x64xbf16>, vector<18x64xf32> -> vector<18x64xf32>
    %57 = arith.addf %49, %56 : vector<18x64xf32>
    %c6 = arith.constant 6 : index
    %c0_50 = arith.constant 0 : index
    %c0_51 = arith.constant 0 : index
    %58 = vector.load %arg3[%c6, %c0_50, %c0_51] : memref<16x18x128xbf16, #tpu.memory_space<vmem>>, vector<1x18x128xbf16>
    %59 = vector.shape_cast %58 : vector<1x18x128xbf16> to vector<18x128xbf16>
    %cst_52 = arith.constant dense<0.000000e+00> : vector<18x32xf32>
    %60 = tpu.matmul %59, %8, %cst_52 {dimension_numbers = #tpu.dot_dimension_numbers<[1], [0], [0], [1], [0, 0, 1, 1], [], []>} : vector<18x128xbf16>, vector<128x32xbf16>, vector<18x32xf32> -> vector<18x32xf32>
    %61 = arith.truncf %60 : vector<18x32xf32> to vector<18x32xbf16>
    %c6_53 = arith.constant 6 : index
    %c0_54 = arith.constant 0 : index
    %c0_55 = arith.constant 0 : index
    %62 = vector.load %arg4[%c6_53, %c0_54, %c0_55] : memref<16x32x64xbf16, #tpu.memory_space<vmem>>, vector<1x32x64xbf16>
    %63 = vector.shape_cast %62 : vector<1x32x64xbf16> to vector<32x64xbf16>
    %cst_56 = arith.constant dense<0.000000e+00> : vector<18x64xf32>
    %64 = tpu.matmul %61, %63, %cst_56 {dimension_numbers = #tpu.dot_dimension_numbers<[1], [0], [0], [1], [0, 0, 1, 1], [], []>} : vector<18x32xbf16>, vector<32x64xbf16>, vector<18x64xf32> -> vector<18x64xf32>
    %65 = arith.addf %57, %64 : vector<18x64xf32>
    %c7 = arith.constant 7 : index
    %c0_57 = arith.constant 0 : index
    %c0_58 = arith.constant 0 : index
    %66 = vector.load %arg3[%c7, %c0_57, %c0_58] : memref<16x18x128xbf16, #tpu.memory_space<vmem>>, vector<1x18x128xbf16>
    %67 = vector.shape_cast %66 : vector<1x18x128xbf16> to vector<18x128xbf16>
    %cst_59 = arith.constant dense<0.000000e+00> : vector<18x32xf32>
    %68 = tpu.matmul %67, %8, %cst_59 {dimension_numbers = #tpu.dot_dimension_numbers<[1], [0], [0], [1], [0, 0, 1, 1], [], []>} : vector<18x128xbf16>, vector<128x32xbf16>, vector<18x32xf32> -> vector<18x32xf32>
    %69 = arith.truncf %68 : vector<18x32xf32> to vector<18x32xbf16>
    %c7_60 = arith.constant 7 : index
    %c0_61 = arith.constant 0 : index
    %c0_62 = arith.constant 0 : index
    %70 = vector.load %arg4[%c7_60, %c0_61, %c0_62] : memref<16x32x64xbf16, #tpu.memory_space<vmem>>, vector<1x32x64xbf16>
    %71 = vector.shape_cast %70 : vector<1x32x64xbf16> to vector<32x64xbf16>
    %cst_63 = arith.constant dense<0.000000e+00> : vector<18x64xf32>
    %72 = tpu.matmul %69, %71, %cst_63 {dimension_numbers = #tpu.dot_dimension_numbers<[1], [0], [0], [1], [0, 0, 1, 1], [], []>} : vector<18x32xbf16>, vector<32x64xbf16>, vector<18x64xf32> -> vector<18x64xf32>
    %73 = arith.addf %65, %72 : vector<18x64xf32>
    %c8 = arith.constant 8 : index
    %c0_64 = arith.constant 0 : index
    %c0_65 = arith.constant 0 : index
    %74 = vector.load %arg3[%c8, %c0_64, %c0_65] : memref<16x18x128xbf16, #tpu.memory_space<vmem>>, vector<1x18x128xbf16>
    %75 = vector.shape_cast %74 : vector<1x18x128xbf16> to vector<18x128xbf16>
    %cst_66 = arith.constant dense<0.000000e+00> : vector<18x32xf32>
    %76 = tpu.matmul %75, %8, %cst_66 {dimension_numbers = #tpu.dot_dimension_numbers<[1], [0], [0], [1], [0, 0, 1, 1], [], []>} : vector<18x128xbf16>, vector<128x32xbf16>, vector<18x32xf32> -> vector<18x32xf32>
    %77 = arith.truncf %76 : vector<18x32xf32> to vector<18x32xbf16>
    %c8_67 = arith.constant 8 : index
    %c0_68 = arith.constant 0 : index
    %c0_69 = arith.constant 0 : index
    %78 = vector.load %arg4[%c8_67, %c0_68, %c0_69] : memref<16x32x64xbf16, #tpu.memory_space<vmem>>, vector<1x32x64xbf16>
    %79 = vector.shape_cast %78 : vector<1x32x64xbf16> to vector<32x64xbf16>
    %cst_70 = arith.constant dense<0.000000e+00> : vector<18x64xf32>
    %80 = tpu.matmul %77, %79, %cst_70 {dimension_numbers = #tpu.dot_dimension_numbers<[1], [0], [0], [1], [0, 0, 1, 1], [], []>} : vector<18x32xbf16>, vector<32x64xbf16>, vector<18x64xf32> -> vector<18x64xf32>
    %81 = arith.addf %73, %80 : vector<18x64xf32>
    %c9 = arith.constant 9 : index
    %c0_71 = arith.constant 0 : index
    %c0_72 = arith.constant 0 : index
    %82 = vector.load %arg3[%c9, %c0_71, %c0_72] : memref<16x18x128xbf16, #tpu.memory_space<vmem>>, vector<1x18x128xbf16>
    %83 = vector.shape_cast %82 : vector<1x18x128xbf16> to vector<18x128xbf16>
    %cst_73 = arith.constant dense<0.000000e+00> : vector<18x32xf32>
    %84 = tpu.matmul %83, %8, %cst_73 {dimension_numbers = #tpu.dot_dimension_numbers<[1], [0], [0], [1], [0, 0, 1, 1], [], []>} : vector<18x128xbf16>, vector<128x32xbf16>, vector<18x32xf32> -> vector<18x32xf32>
    %85 = arith.truncf %84 : vector<18x32xf32> to vector<18x32xbf16>
    %c9_74 = arith.constant 9 : index
    %c0_75 = arith.constant 0 : index
    %c0_76 = arith.constant 0 : index
    %86 = vector.load %arg4[%c9_74, %c0_75, %c0_76] : memref<16x32x64xbf16, #tpu.memory_space<vmem>>, vector<1x32x64xbf16>
    %87 = vector.shape_cast %86 : vector<1x32x64xbf16> to vector<32x64xbf16>
    %cst_77 = arith.constant dense<0.000000e+00> : vector<18x64xf32>
    %88 = tpu.matmul %85, %87, %cst_77 {dimension_numbers = #tpu.dot_dimension_numbers<[1], [0], [0], [1], [0, 0, 1, 1], [], []>} : vector<18x32xbf16>, vector<32x64xbf16>, vector<18x64xf32> -> vector<18x64xf32>
    %89 = arith.addf %81, %88 : vector<18x64xf32>
    %c10 = arith.constant 10 : index
    %c0_78 = arith.constant 0 : index
    %c0_79 = arith.constant 0 : index
    %90 = vector.load %arg3[%c10, %c0_78, %c0_79] : memref<16x18x128xbf16, #tpu.memory_space<vmem>>, vector<1x18x128xbf16>
    %91 = vector.shape_cast %90 : vector<1x18x128xbf16> to vector<18x128xbf16>
    %cst_80 = arith.constant dense<0.000000e+00> : vector<18x32xf32>
    %92 = tpu.matmul %91, %8, %cst_80 {dimension_numbers = #tpu.dot_dimension_numbers<[1], [0], [0], [1], [0, 0, 1, 1], [], []>} : vector<18x128xbf16>, vector<128x32xbf16>, vector<18x32xf32> -> vector<18x32xf32>
    %93 = arith.truncf %92 : vector<18x32xf32> to vector<18x32xbf16>
    %c10_81 = arith.constant 10 : index
    %c0_82 = arith.constant 0 : index
    %c0_83 = arith.constant 0 : index
    %94 = vector.load %arg4[%c10_81, %c0_82, %c0_83] : memref<16x32x64xbf16, #tpu.memory_space<vmem>>, vector<1x32x64xbf16>
    %95 = vector.shape_cast %94 : vector<1x32x64xbf16> to vector<32x64xbf16>
    %cst_84 = arith.constant dense<0.000000e+00> : vector<18x64xf32>
    %96 = tpu.matmul %93, %95, %cst_84 {dimension_numbers = #tpu.dot_dimension_numbers<[1], [0], [0], [1], [0, 0, 1, 1], [], []>} : vector<18x32xbf16>, vector<32x64xbf16>, vector<18x64xf32> -> vector<18x64xf32>
    %97 = arith.addf %89, %96 : vector<18x64xf32>
    %c11 = arith.constant 11 : index
    %c0_85 = arith.constant 0 : index
    %c0_86 = arith.constant 0 : index
    %98 = vector.load %arg3[%c11, %c0_85, %c0_86] : memref<16x18x128xbf16, #tpu.memory_space<vmem>>, vector<1x18x128xbf16>
    %99 = vector.shape_cast %98 : vector<1x18x128xbf16> to vector<18x128xbf16>
    %cst_87 = arith.constant dense<0.000000e+00> : vector<18x32xf32>
    %100 = tpu.matmul %99, %8, %cst_87 {dimension_numbers = #tpu.dot_dimension_numbers<[1], [0], [0], [1], [0, 0, 1, 1], [], []>} : vector<18x128xbf16>, vector<128x32xbf16>, vector<18x32xf32> -> vector<18x32xf32>
    %101 = arith.truncf %100 : vector<18x32xf32> to vector<18x32xbf16>
    %c11_88 = arith.constant 11 : index
    %c0_89 = arith.constant 0 : index
    %c0_90 = arith.constant 0 : index
    %102 = vector.load %arg4[%c11_88, %c0_89, %c0_90] : memref<16x32x64xbf16, #tpu.memory_space<vmem>>, vector<1x32x64xbf16>
    %103 = vector.shape_cast %102 : vector<1x32x64xbf16> to vector<32x64xbf16>
    %cst_91 = arith.constant dense<0.000000e+00> : vector<18x64xf32>
    %104 = tpu.matmul %101, %103, %cst_91 {dimension_numbers = #tpu.dot_dimension_numbers<[1], [0], [0], [1], [0, 0, 1, 1], [], []>} : vector<18x32xbf16>, vector<32x64xbf16>, vector<18x64xf32> -> vector<18x64xf32>
    %105 = arith.addf %97, %104 : vector<18x64xf32>
    %c12 = arith.constant 12 : index
    %c0_92 = arith.constant 0 : index
    %c0_93 = arith.constant 0 : index
    %106 = vector.load %arg3[%c12, %c0_92, %c0_93] : memref<16x18x128xbf16, #tpu.memory_space<vmem>>, vector<1x18x128xbf16>
    %107 = vector.shape_cast %106 : vector<1x18x128xbf16> to vector<18x128xbf16>
    %cst_94 = arith.constant dense<0.000000e+00> : vector<18x32xf32>
    %108 = tpu.matmul %107, %8, %cst_94 {dimension_numbers = #tpu.dot_dimension_numbers<[1], [0], [0], [1], [0, 0, 1, 1], [], []>} : vector<18x128xbf16>, vector<128x32xbf16>, vector<18x32xf32> -> vector<18x32xf32>
    %109 = arith.truncf %108 : vector<18x32xf32> to vector<18x32xbf16>
    %c12_95 = arith.constant 12 : index
    %c0_96 = arith.constant 0 : index
    %c0_97 = arith.constant 0 : index
    %110 = vector.load %arg4[%c12_95, %c0_96, %c0_97] : memref<16x32x64xbf16, #tpu.memory_space<vmem>>, vector<1x32x64xbf16>
    %111 = vector.shape_cast %110 : vector<1x32x64xbf16> to vector<32x64xbf16>
    %cst_98 = arith.constant dense<0.000000e+00> : vector<18x64xf32>
    %112 = tpu.matmul %109, %111, %cst_98 {dimension_numbers = #tpu.dot_dimension_numbers<[1], [0], [0], [1], [0, 0, 1, 1], [], []>} : vector<18x32xbf16>, vector<32x64xbf16>, vector<18x64xf32> -> vector<18x64xf32>
    %113 = arith.addf %105, %112 : vector<18x64xf32>
    %c13 = arith.constant 13 : index
    %c0_99 = arith.constant 0 : index
    %c0_100 = arith.constant 0 : index
    %114 = vector.load %arg3[%c13, %c0_99, %c0_100] : memref<16x18x128xbf16, #tpu.memory_space<vmem>>, vector<1x18x128xbf16>
    %115 = vector.shape_cast %114 : vector<1x18x128xbf16> to vector<18x128xbf16>
    %cst_101 = arith.constant dense<0.000000e+00> : vector<18x32xf32>
    %116 = tpu.matmul %115, %8, %cst_101 {dimension_numbers = #tpu.dot_dimension_numbers<[1], [0], [0], [1], [0, 0, 1, 1], [], []>} : vector<18x128xbf16>, vector<128x32xbf16>, vector<18x32xf32> -> vector<18x32xf32>
    %117 = arith.truncf %116 : vector<18x32xf32> to vector<18x32xbf16>
    %c13_102 = arith.constant 13 : index
    %c0_103 = arith.constant 0 : index
    %c0_104 = arith.constant 0 : index
    %118 = vector.load %arg4[%c13_102, %c0_103, %c0_104] : memref<16x32x64xbf16, #tpu.memory_space<vmem>>, vector<1x32x64xbf16>
    %119 = vector.shape_cast %118 : vector<1x32x64xbf16> to vector<32x64xbf16>
    %cst_105 = arith.constant dense<0.000000e+00> : vector<18x64xf32>
    %120 = tpu.matmul %117, %119, %cst_105 {dimension_numbers = #tpu.dot_dimension_numbers<[1], [0], [0], [1], [0, 0, 1, 1], [], []>} : vector<18x32xbf16>, vector<32x64xbf16>, vector<18x64xf32> -> vector<18x64xf32>
    %121 = arith.addf %113, %120 : vector<18x64xf32>
    %c14 = arith.constant 14 : index
    %c0_106 = arith.constant 0 : index
    %c0_107 = arith.constant 0 : index
    %122 = vector.load %arg3[%c14, %c0_106, %c0_107] : memref<16x18x128xbf16, #tpu.memory_space<vmem>>, vector<1x18x128xbf16>
    %123 = vector.shape_cast %122 : vector<1x18x128xbf16> to vector<18x128xbf16>
    %cst_108 = arith.constant dense<0.000000e+00> : vector<18x32xf32>
    %124 = tpu.matmul %123, %8, %cst_108 {dimension_numbers = #tpu.dot_dimension_numbers<[1], [0], [0], [1], [0, 0, 1, 1], [], []>} : vector<18x128xbf16>, vector<128x32xbf16>, vector<18x32xf32> -> vector<18x32xf32>
    %125 = arith.truncf %124 : vector<18x32xf32> to vector<18x32xbf16>
    %c14_109 = arith.constant 14 : index
    %c0_110 = arith.constant 0 : index
    %c0_111 = arith.constant 0 : index
    %126 = vector.load %arg4[%c14_109, %c0_110, %c0_111] : memref<16x32x64xbf16, #tpu.memory_space<vmem>>, vector<1x32x64xbf16>
    %127 = vector.shape_cast %126 : vector<1x32x64xbf16> to vector<32x64xbf16>
    %cst_112 = arith.constant dense<0.000000e+00> : vector<18x64xf32>
    %128 = tpu.matmul %125, %127, %cst_112 {dimension_numbers = #tpu.dot_dimension_numbers<[1], [0], [0], [1], [0, 0, 1, 1], [], []>} : vector<18x32xbf16>, vector<32x64xbf16>, vector<18x64xf32> -> vector<18x64xf32>
    %129 = arith.addf %121, %128 : vector<18x64xf32>
    %c15 = arith.constant 15 : index
    %c0_113 = arith.constant 0 : index
    %c0_114 = arith.constant 0 : index
    %130 = vector.load %arg3[%c15, %c0_113, %c0_114] : memref<16x18x128xbf16, #tpu.memory_space<vmem>>, vector<1x18x128xbf16>
    %131 = vector.shape_cast %130 : vector<1x18x128xbf16> to vector<18x128xbf16>
    %cst_115 = arith.constant dense<0.000000e+00> : vector<18x32xf32>
    %132 = tpu.matmul %131, %8, %cst_115 {dimension_numbers = #tpu.dot_dimension_numbers<[1], [0], [0], [1], [0, 0, 1, 1], [], []>} : vector<18x128xbf16>, vector<128x32xbf16>, vector<18x32xf32> -> vector<18x32xf32>
    %133 = arith.truncf %132 : vector<18x32xf32> to vector<18x32xbf16>
    %c15_116 = arith.constant 15 : index
    %c0_117 = arith.constant 0 : index
    %c0_118 = arith.constant 0 : index
    %134 = vector.load %arg4[%c15_116, %c0_117, %c0_118] : memref<16x32x64xbf16, #tpu.memory_space<vmem>>, vector<1x32x64xbf16>
    %135 = vector.shape_cast %134 : vector<1x32x64xbf16> to vector<32x64xbf16>
    %cst_119 = arith.constant dense<0.000000e+00> : vector<18x64xf32>
    %136 = tpu.matmul %133, %135, %cst_119 {dimension_numbers = #tpu.dot_dimension_numbers<[1], [0], [0], [1], [0, 0, 1, 1], [], []>} : vector<18x32xbf16>, vector<32x64xbf16>, vector<18x64xf32> -> vector<18x64xf32>
    %137 = arith.addf %129, %136 : vector<18x64xf32>
    %c0_120 = arith.constant 0 : index
    %c0_121 = arith.constant 0 : index
    %138 = vector.load %arg5[%c0_120, %c0_121] : memref<1x64xf32, #tpu.memory_space<vmem>>, vector<1x64xf32>
    %139 = vector.broadcast %138 : vector<1x64xf32> to vector<18x64xf32>
    %140 = arith.addf %137, %139 : vector<18x64xf32>
    %cst_122 = arith.constant 0.000000e+00 : f32
    %141 = vector.broadcast %cst_122 : f32 to vector<18x64xf32>
    %142 = arith.maximumf %140, %141 : vector<18x64xf32>
    %143 = arith.truncf %142 : vector<18x64xf32> to vector<18x64xbf16>
    %cst_123 = arith.constant 0.000000e+00 : f32
    %144 = vector.broadcast %cst_123 : f32 to vector<2x64xf32>
    %c0_124 = arith.constant 0 : index
    %c0_125 = arith.constant 0 : index
    %c0_126 = arith.constant 0 : index
    %145 = vector.load %arg6[%c0_124, %c0_125, %c0_126] : memref<9x2x18xbf16, #tpu.memory_space<vmem>>, vector<1x2x18xbf16>
    %146 = vector.shape_cast %145 : vector<1x2x18xbf16> to vector<2x18xbf16>
    %cst_127 = arith.constant dense<0.000000e+00> : vector<2x64xf32>
    %147 = tpu.matmul %146, %143, %cst_127 {dimension_numbers = #tpu.dot_dimension_numbers<[1], [0], [0], [1], [0, 0, 1, 1], [], []>} : vector<2x18xbf16>, vector<18x64xbf16>, vector<2x64xf32> -> vector<2x64xf32>
    %148 = arith.truncf %147 : vector<2x64xf32> to vector<2x64xbf16>
    %c0_128 = arith.constant 0 : index
    %c0_129 = arith.constant 0 : index
    %c0_130 = arith.constant 0 : index
    %149 = vector.load %arg7[%c0_128, %c0_129, %c0_130] : memref<9x64x64xbf16, #tpu.memory_space<vmem>>, vector<1x64x64xbf16>
    %150 = vector.shape_cast %149 : vector<1x64x64xbf16> to vector<64x64xbf16>
    %cst_131 = arith.constant dense<0.000000e+00> : vector<2x64xf32>
    %151 = tpu.matmul %148, %150, %cst_131 {dimension_numbers = #tpu.dot_dimension_numbers<[1], [0], [0], [1], [0, 0, 1, 1], [], []>} : vector<2x64xbf16>, vector<64x64xbf16>, vector<2x64xf32> -> vector<2x64xf32>
    %152 = arith.addf %144, %151 : vector<2x64xf32>
    %c1_132 = arith.constant 1 : index
    %c0_133 = arith.constant 0 : index
    %c0_134 = arith.constant 0 : index
    %153 = vector.load %arg6[%c1_132, %c0_133, %c0_134] : memref<9x2x18xbf16, #tpu.memory_space<vmem>>, vector<1x2x18xbf16>
    %154 = vector.shape_cast %153 : vector<1x2x18xbf16> to vector<2x18xbf16>
    %cst_135 = arith.constant dense<0.000000e+00> : vector<2x64xf32>
    %155 = tpu.matmul %154, %143, %cst_135 {dimension_numbers = #tpu.dot_dimension_numbers<[1], [0], [0], [1], [0, 0, 1, 1], [], []>} : vector<2x18xbf16>, vector<18x64xbf16>, vector<2x64xf32> -> vector<2x64xf32>
    %156 = arith.truncf %155 : vector<2x64xf32> to vector<2x64xbf16>
    %c1_136 = arith.constant 1 : index
    %c0_137 = arith.constant 0 : index
    %c0_138 = arith.constant 0 : index
    %157 = vector.load %arg7[%c1_136, %c0_137, %c0_138] : memref<9x64x64xbf16, #tpu.memory_space<vmem>>, vector<1x64x64xbf16>
    %158 = vector.shape_cast %157 : vector<1x64x64xbf16> to vector<64x64xbf16>
    %cst_139 = arith.constant dense<0.000000e+00> : vector<2x64xf32>
    %159 = tpu.matmul %156, %158, %cst_139 {dimension_numbers = #tpu.dot_dimension_numbers<[1], [0], [0], [1], [0, 0, 1, 1], [], []>} : vector<2x64xbf16>, vector<64x64xbf16>, vector<2x64xf32> -> vector<2x64xf32>
    %160 = arith.addf %152, %159 : vector<2x64xf32>
    %c2_140 = arith.constant 2 : index
    %c0_141 = arith.constant 0 : index
    %c0_142 = arith.constant 0 : index
    %161 = vector.load %arg6[%c2_140, %c0_141, %c0_142] : memref<9x2x18xbf16, #tpu.memory_space<vmem>>, vector<1x2x18xbf16>
    %162 = vector.shape_cast %161 : vector<1x2x18xbf16> to vector<2x18xbf16>
    %cst_143 = arith.constant dense<0.000000e+00> : vector<2x64xf32>
    %163 = tpu.matmul %162, %143, %cst_143 {dimension_numbers = #tpu.dot_dimension_numbers<[1], [0], [0], [1], [0, 0, 1, 1], [], []>} : vector<2x18xbf16>, vector<18x64xbf16>, vector<2x64xf32> -> vector<2x64xf32>
    %164 = arith.truncf %163 : vector<2x64xf32> to vector<2x64xbf16>
    %c2_144 = arith.constant 2 : index
    %c0_145 = arith.constant 0 : index
    %c0_146 = arith.constant 0 : index
    %165 = vector.load %arg7[%c2_144, %c0_145, %c0_146] : memref<9x64x64xbf16, #tpu.memory_space<vmem>>, vector<1x64x64xbf16>
    %166 = vector.shape_cast %165 : vector<1x64x64xbf16> to vector<64x64xbf16>
    %cst_147 = arith.constant dense<0.000000e+00> : vector<2x64xf32>
    %167 = tpu.matmul %164, %166, %cst_147 {dimension_numbers = #tpu.dot_dimension_numbers<[1], [0], [0], [1], [0, 0, 1, 1], [], []>} : vector<2x64xbf16>, vector<64x64xbf16>, vector<2x64xf32> -> vector<2x64xf32>
    %168 = arith.addf %160, %167 : vector<2x64xf32>
    %c3_148 = arith.constant 3 : index
    %c0_149 = arith.constant 0 : index
    %c0_150 = arith.constant 0 : index
    %169 = vector.load %arg6[%c3_148, %c0_149, %c0_150] : memref<9x2x18xbf16, #tpu.memory_space<vmem>>, vector<1x2x18xbf16>
    %170 = vector.shape_cast %169 : vector<1x2x18xbf16> to vector<2x18xbf16>
    %cst_151 = arith.constant dense<0.000000e+00> : vector<2x64xf32>
    %171 = tpu.matmul %170, %143, %cst_151 {dimension_numbers = #tpu.dot_dimension_numbers<[1], [0], [0], [1], [0, 0, 1, 1], [], []>} : vector<2x18xbf16>, vector<18x64xbf16>, vector<2x64xf32> -> vector<2x64xf32>
    %172 = arith.truncf %171 : vector<2x64xf32> to vector<2x64xbf16>
    %c3_152 = arith.constant 3 : index
    %c0_153 = arith.constant 0 : index
    %c0_154 = arith.constant 0 : index
    %173 = vector.load %arg7[%c3_152, %c0_153, %c0_154] : memref<9x64x64xbf16, #tpu.memory_space<vmem>>, vector<1x64x64xbf16>
    %174 = vector.shape_cast %173 : vector<1x64x64xbf16> to vector<64x64xbf16>
    %cst_155 = arith.constant dense<0.000000e+00> : vector<2x64xf32>
    %175 = tpu.matmul %172, %174, %cst_155 {dimension_numbers = #tpu.dot_dimension_numbers<[1], [0], [0], [1], [0, 0, 1, 1], [], []>} : vector<2x64xbf16>, vector<64x64xbf16>, vector<2x64xf32> -> vector<2x64xf32>
    %176 = arith.addf %168, %175 : vector<2x64xf32>
    %c4_156 = arith.constant 4 : index
    %c0_157 = arith.constant 0 : index
    %c0_158 = arith.constant 0 : index
    %177 = vector.load %arg6[%c4_156, %c0_157, %c0_158] : memref<9x2x18xbf16, #tpu.memory_space<vmem>>, vector<1x2x18xbf16>
    %178 = vector.shape_cast %177 : vector<1x2x18xbf16> to vector<2x18xbf16>
    %cst_159 = arith.constant dense<0.000000e+00> : vector<2x64xf32>
    %179 = tpu.matmul %178, %143, %cst_159 {dimension_numbers = #tpu.dot_dimension_numbers<[1], [0], [0], [1], [0, 0, 1, 1], [], []>} : vector<2x18xbf16>, vector<18x64xbf16>, vector<2x64xf32> -> vector<2x64xf32>
    %180 = arith.truncf %179 : vector<2x64xf32> to vector<2x64xbf16>
    %c4_160 = arith.constant 4 : index
    %c0_161 = arith.constant 0 : index
    %c0_162 = arith.constant 0 : index
    %181 = vector.load %arg7[%c4_160, %c0_161, %c0_162] : memref<9x64x64xbf16, #tpu.memory_space<vmem>>, vector<1x64x64xbf16>
    %182 = vector.shape_cast %181 : vector<1x64x64xbf16> to vector<64x64xbf16>
    %cst_163 = arith.constant dense<0.000000e+00> : vector<2x64xf32>
    %183 = tpu.matmul %180, %182, %cst_163 {dimension_numbers = #tpu.dot_dimension_numbers<[1], [0], [0], [1], [0, 0, 1, 1], [], []>} : vector<2x64xbf16>, vector<64x64xbf16>, vector<2x64xf32> -> vector<2x64xf32>
    %184 = arith.addf %176, %183 : vector<2x64xf32>
    %c5_164 = arith.constant 5 : index
    %c0_165 = arith.constant 0 : index
    %c0_166 = arith.constant 0 : index
    %185 = vector.load %arg6[%c5_164, %c0_165, %c0_166] : memref<9x2x18xbf16, #tpu.memory_space<vmem>>, vector<1x2x18xbf16>
    %186 = vector.shape_cast %185 : vector<1x2x18xbf16> to vector<2x18xbf16>
    %cst_167 = arith.constant dense<0.000000e+00> : vector<2x64xf32>
    %187 = tpu.matmul %186, %143, %cst_167 {dimension_numbers = #tpu.dot_dimension_numbers<[1], [0], [0], [1], [0, 0, 1, 1], [], []>} : vector<2x18xbf16>, vector<18x64xbf16>, vector<2x64xf32> -> vector<2x64xf32>
    %188 = arith.truncf %187 : vector<2x64xf32> to vector<2x64xbf16>
    %c5_168 = arith.constant 5 : index
    %c0_169 = arith.constant 0 : index
    %c0_170 = arith.constant 0 : index
    %189 = vector.load %arg7[%c5_168, %c0_169, %c0_170] : memref<9x64x64xbf16, #tpu.memory_space<vmem>>, vector<1x64x64xbf16>
    %190 = vector.shape_cast %189 : vector<1x64x64xbf16> to vector<64x64xbf16>
    %cst_171 = arith.constant dense<0.000000e+00> : vector<2x64xf32>
    %191 = tpu.matmul %188, %190, %cst_171 {dimension_numbers = #tpu.dot_dimension_numbers<[1], [0], [0], [1], [0, 0, 1, 1], [], []>} : vector<2x64xbf16>, vector<64x64xbf16>, vector<2x64xf32> -> vector<2x64xf32>
    %192 = arith.addf %184, %191 : vector<2x64xf32>
    %c6_172 = arith.constant 6 : index
    %c0_173 = arith.constant 0 : index
    %c0_174 = arith.constant 0 : index
    %193 = vector.load %arg6[%c6_172, %c0_173, %c0_174] : memref<9x2x18xbf16, #tpu.memory_space<vmem>>, vector<1x2x18xbf16>
    %194 = vector.shape_cast %193 : vector<1x2x18xbf16> to vector<2x18xbf16>
    %cst_175 = arith.constant dense<0.000000e+00> : vector<2x64xf32>
    %195 = tpu.matmul %194, %143, %cst_175 {dimension_numbers = #tpu.dot_dimension_numbers<[1], [0], [0], [1], [0, 0, 1, 1], [], []>} : vector<2x18xbf16>, vector<18x64xbf16>, vector<2x64xf32> -> vector<2x64xf32>
    %196 = arith.truncf %195 : vector<2x64xf32> to vector<2x64xbf16>
    %c6_176 = arith.constant 6 : index
    %c0_177 = arith.constant 0 : index
    %c0_178 = arith.constant 0 : index
    %197 = vector.load %arg7[%c6_176, %c0_177, %c0_178] : memref<9x64x64xbf16, #tpu.memory_space<vmem>>, vector<1x64x64xbf16>
    %198 = vector.shape_cast %197 : vector<1x64x64xbf16> to vector<64x64xbf16>
    %cst_179 = arith.constant dense<0.000000e+00> : vector<2x64xf32>
    %199 = tpu.matmul %196, %198, %cst_179 {dimension_numbers = #tpu.dot_dimension_numbers<[1], [0], [0], [1], [0, 0, 1, 1], [], []>} : vector<2x64xbf16>, vector<64x64xbf16>, vector<2x64xf32> -> vector<2x64xf32>
    %200 = arith.addf %192, %199 : vector<2x64xf32>
    %c7_180 = arith.constant 7 : index
    %c0_181 = arith.constant 0 : index
    %c0_182 = arith.constant 0 : index
    %201 = vector.load %arg6[%c7_180, %c0_181, %c0_182] : memref<9x2x18xbf16, #tpu.memory_space<vmem>>, vector<1x2x18xbf16>
    %202 = vector.shape_cast %201 : vector<1x2x18xbf16> to vector<2x18xbf16>
    %cst_183 = arith.constant dense<0.000000e+00> : vector<2x64xf32>
    %203 = tpu.matmul %202, %143, %cst_183 {dimension_numbers = #tpu.dot_dimension_numbers<[1], [0], [0], [1], [0, 0, 1, 1], [], []>} : vector<2x18xbf16>, vector<18x64xbf16>, vector<2x64xf32> -> vector<2x64xf32>
    %204 = arith.truncf %203 : vector<2x64xf32> to vector<2x64xbf16>
    %c7_184 = arith.constant 7 : index
    %c0_185 = arith.constant 0 : index
    %c0_186 = arith.constant 0 : index
    %205 = vector.load %arg7[%c7_184, %c0_185, %c0_186] : memref<9x64x64xbf16, #tpu.memory_space<vmem>>, vector<1x64x64xbf16>
    %206 = vector.shape_cast %205 : vector<1x64x64xbf16> to vector<64x64xbf16>
    %cst_187 = arith.constant dense<0.000000e+00> : vector<2x64xf32>
    %207 = tpu.matmul %204, %206, %cst_187 {dimension_numbers = #tpu.dot_dimension_numbers<[1], [0], [0], [1], [0, 0, 1, 1], [], []>} : vector<2x64xbf16>, vector<64x64xbf16>, vector<2x64xf32> -> vector<2x64xf32>
    %208 = arith.addf %200, %207 : vector<2x64xf32>
    %c8_188 = arith.constant 8 : index
    %c0_189 = arith.constant 0 : index
    %c0_190 = arith.constant 0 : index
    %209 = vector.load %arg6[%c8_188, %c0_189, %c0_190] : memref<9x2x18xbf16, #tpu.memory_space<vmem>>, vector<1x2x18xbf16>
    %210 = vector.shape_cast %209 : vector<1x2x18xbf16> to vector<2x18xbf16>
    %cst_191 = arith.constant dense<0.000000e+00> : vector<2x64xf32>
    %211 = tpu.matmul %210, %143, %cst_191 {dimension_numbers = #tpu.dot_dimension_numbers<[1], [0], [0], [1], [0, 0, 1, 1], [], []>} : vector<2x18xbf16>, vector<18x64xbf16>, vector<2x64xf32> -> vector<2x64xf32>
    %212 = arith.truncf %211 : vector<2x64xf32> to vector<2x64xbf16>
    %c8_192 = arith.constant 8 : index
    %c0_193 = arith.constant 0 : index
    %c0_194 = arith.constant 0 : index
    %213 = vector.load %arg7[%c8_192, %c0_193, %c0_194] : memref<9x64x64xbf16, #tpu.memory_space<vmem>>, vector<1x64x64xbf16>
    %214 = vector.shape_cast %213 : vector<1x64x64xbf16> to vector<64x64xbf16>
    %cst_195 = arith.constant dense<0.000000e+00> : vector<2x64xf32>
    %215 = tpu.matmul %212, %214, %cst_195 {dimension_numbers = #tpu.dot_dimension_numbers<[1], [0], [0], [1], [0, 0, 1, 1], [], []>} : vector<2x64xbf16>, vector<64x64xbf16>, vector<2x64xf32> -> vector<2x64xf32>
    %216 = arith.addf %208, %215 : vector<2x64xf32>
    %c0_196 = arith.constant 0 : index
    %c0_197 = arith.constant 0 : index
    %217 = vector.load %arg8[%c0_196, %c0_197] : memref<1x64xf32, #tpu.memory_space<vmem>>, vector<1x64xf32>
    %218 = vector.broadcast %217 : vector<1x64xf32> to vector<2x64xf32>
    %219 = arith.addf %216, %218 : vector<2x64xf32>
    %cst_198 = arith.constant 0.000000e+00 : f32
    %220 = vector.broadcast %cst_198 : f32 to vector<2x64xf32>
    %221 = arith.maximumf %219, %220 : vector<2x64xf32>
    %222 = arith.truncf %221 : vector<2x64xf32> to vector<2x64xbf16>
    %c0_199 = arith.constant 0 : index
    %c0_200 = arith.constant 0 : index
    %223 = vector.load %arg9[%c0_199, %c0_200] : memref<64x512xbf16, #tpu.memory_space<vmem>>, vector<64x512xbf16>
    %cst_201 = arith.constant dense<0.000000e+00> : vector<2x512xf32>
    %224 = tpu.matmul %222, %223, %cst_201 {dimension_numbers = #tpu.dot_dimension_numbers<[1], [0], [0], [1], [0, 0, 1, 1], [], []>} : vector<2x64xbf16>, vector<64x512xbf16>, vector<2x512xf32> -> vector<2x512xf32>
    %c0_202 = arith.constant 0 : index
    %c0_203 = arith.constant 0 : index
    %225 = vector.load %arg10[%c0_202, %c0_203] : memref<1x512xf32, #tpu.memory_space<vmem>>, vector<1x512xf32>
    %226 = vector.broadcast %225 : vector<1x512xf32> to vector<2x512xf32>
    %227 = arith.addf %224, %226 : vector<2x512xf32>
    %cst_204 = arith.constant 0.000000e+00 : f32
    %228 = vector.broadcast %cst_204 : f32 to vector<2x512xf32>
    %229 = arith.maximumf %227, %228 : vector<2x512xf32>
    %230 = arith.truncf %229 : vector<2x512xf32> to vector<2x512xbf16>
    %c0_205 = arith.constant 0 : index
    %c0_206 = arith.constant 0 : index
    %231 = vector.load %arg18[%c0_205, %c0_206] : memref<2x256xf32, #tpu.memory_space<vmem>>, vector<2x256xf32>
    %c0_207 = arith.constant 0 : index
    %c0_208 = arith.constant 0 : index
    %232 = vector.load %arg11[%c0_207, %c0_208] : memref<512x768xbf16, #tpu.memory_space<vmem>>, vector<512x768xbf16>
    %cst_209 = arith.constant dense<0.000000e+00> : vector<2x768xf32>
    %233 = tpu.matmul %230, %232, %cst_209 {dimension_numbers = #tpu.dot_dimension_numbers<[1], [0], [0], [1], [0, 0, 1, 1], [], []>} : vector<2x512xbf16>, vector<512x768xbf16>, vector<2x768xf32> -> vector<2x768xf32>
    %c0_210 = arith.constant 0 : index
    %c0_211 = arith.constant 0 : index
    %234 = vector.load %arg19[%c0_210, %c0_211] : memref<2x8xf32, #tpu.memory_space<vmem>>, vector<2x8xf32>
    %235 = arith.truncf %234 : vector<2x8xf32> to vector<2x8xbf16>
    %c0_212 = arith.constant 0 : index
    %c0_213 = arith.constant 0 : index
    %236 = vector.load %arg12[%c0_212, %c0_213] : memref<8x768xbf16, #tpu.memory_space<vmem>>, vector<8x768xbf16>
    %cst_214 = arith.constant dense<0.000000e+00> : vector<2x768xf32>
    %237 = tpu.matmul %235, %236, %cst_214 {dimension_numbers = #tpu.dot_dimension_numbers<[1], [0], [0], [1], [0, 0, 1, 1], [], []>} : vector<2x8xbf16>, vector<8x768xbf16>, vector<2x768xf32> -> vector<2x768xf32>
    %238 = arith.addf %233, %237 : vector<2x768xf32>
    %c0_215 = arith.constant 0 : index
    %c0_216 = arith.constant 0 : index
    %239 = vector.load %arg13[%c0_215, %c0_216] : memref<1x768xf32, #tpu.memory_space<vmem>>, vector<1x768xf32>
    %240 = vector.broadcast %239 : vector<1x768xf32> to vector<2x768xf32>
    %241 = arith.addf %238, %240 : vector<2x768xf32>
    %242 = arith.truncf %231 : vector<2x256xf32> to vector<2x256xbf16>
    %c0_217 = arith.constant 0 : index
    %c0_218 = arith.constant 0 : index
    %243 = vector.load %arg14[%c0_217, %c0_218] : memref<256x768xbf16, #tpu.memory_space<vmem>>, vector<256x768xbf16>
    %cst_219 = arith.constant dense<0.000000e+00> : vector<2x768xf32>
    %244 = tpu.matmul %242, %243, %cst_219 {dimension_numbers = #tpu.dot_dimension_numbers<[1], [0], [0], [1], [0, 0, 1, 1], [], []>} : vector<2x256xbf16>, vector<256x768xbf16>, vector<2x768xf32> -> vector<2x768xf32>
    %c0_220 = arith.constant 0 : index
    %c0_221 = arith.constant 0 : index
    %245 = vector.load %arg15[%c0_220, %c0_221] : memref<1x768xf32, #tpu.memory_space<vmem>>, vector<1x768xf32>
    %246 = vector.broadcast %245 : vector<1x768xf32> to vector<2x768xf32>
    %247 = arith.addf %244, %246 : vector<2x768xf32>
    %248 = vector.extract_strided_slice %241 {offsets = [0, 0], sizes = [2, 256], strides = [1, 1]} : vector<2x768xf32> to vector<2x256xf32>
    %249 = vector.extract_strided_slice %247 {offsets = [0, 0], sizes = [2, 256], strides = [1, 1]} : vector<2x768xf32> to vector<2x256xf32>
    %250 = arith.addf %248, %249 : vector<2x256xf32>
    %251 = arith.negf %250 : vector<2x256xf32>
    %252 = math.exp %251 : vector<2x256xf32>
    %cst_222 = arith.constant 1.000000e+00 : f32
    %253 = vector.broadcast %cst_222 : f32 to vector<2x256xf32>
    %254 = arith.addf %253, %252 : vector<2x256xf32>
    %255 = arith.divf %253, %254 : vector<2x256xf32>
    %256 = vector.extract_strided_slice %241 {offsets = [0, 256], sizes = [2, 256], strides = [1, 1]} : vector<2x768xf32> to vector<2x256xf32>
    %257 = vector.extract_strided_slice %247 {offsets = [0, 256], sizes = [2, 256], strides = [1, 1]} : vector<2x768xf32> to vector<2x256xf32>
    %258 = arith.addf %256, %257 : vector<2x256xf32>
    %259 = arith.negf %258 : vector<2x256xf32>
    %260 = math.exp %259 : vector<2x256xf32>
    %cst_223 = arith.constant 1.000000e+00 : f32
    %261 = vector.broadcast %cst_223 : f32 to vector<2x256xf32>
    %262 = arith.addf %261, %260 : vector<2x256xf32>
    %263 = arith.divf %261, %262 : vector<2x256xf32>
    %264 = vector.extract_strided_slice %241 {offsets = [0, 512], sizes = [2, 256], strides = [1, 1]} : vector<2x768xf32> to vector<2x256xf32>
    %265 = vector.extract_strided_slice %247 {offsets = [0, 512], sizes = [2, 256], strides = [1, 1]} : vector<2x768xf32> to vector<2x256xf32>
    %266 = arith.mulf %255, %265 : vector<2x256xf32>
    %267 = arith.addf %264, %266 : vector<2x256xf32>
    %268 = math.tanh %267 : vector<2x256xf32>
    %269 = arith.subf %231, %268 : vector<2x256xf32>
    %270 = arith.mulf %263, %269 : vector<2x256xf32>
    %271 = arith.addf %268, %270 : vector<2x256xf32>
    %c0_224 = arith.constant 0 : index
    %c0_225 = arith.constant 0 : index
    %272 = vector.load %arg20[%c0_224, %c0_225] : memref<2x256xf32, #tpu.memory_space<vmem>>, vector<2x256xf32>
    tpu.vector_store %arg20[%c0_224, %c0_225], %271 {strides = array<i32>} : memref<2x256xf32, #tpu.memory_space<vmem>>, vector<2x256xf32>,
    %273 = arith.truncf %271 : vector<2x256xf32> to vector<2x256xbf16>
    %c0_226 = arith.constant 0 : index
    %c0_227 = arith.constant 0 : index
    %274 = vector.load %arg16[%c0_226, %c0_227] : memref<256x128xbf16, #tpu.memory_space<vmem>>, vector<256x128xbf16>
    %cst_228 = arith.constant dense<0.000000e+00> : vector<2x128xf32>
    %275 = tpu.matmul %273, %274, %cst_228 {dimension_numbers = #tpu.dot_dimension_numbers<[1], [0], [0], [1], [0, 0, 1, 1], [], []>} : vector<2x256xbf16>, vector<256x128xbf16>, vector<2x128xf32> -> vector<2x128xf32>
    %c0_229 = arith.constant 0 : index
    %c0_230 = arith.constant 0 : index
    %276 = vector.load %arg17[%c0_229, %c0_230] : memref<1x128xf32, #tpu.memory_space<vmem>>, vector<1x128xf32>
    %277 = vector.broadcast %276 : vector<1x128xf32> to vector<2x128xf32>
    %278 = arith.addf %275, %277 : vector<2x128xf32>
    %c0_231 = arith.constant 0 : index
    %c0_232 = arith.constant 0 : index
    %279 = vector.load %arg21[%c0_231, %c0_232] : memref<2x128xf32, #tpu.memory_space<vmem>>, vector<2x128xf32>
    tpu.vector_store %arg21[%c0_231, %c0_232], %278 {strides = array<i32>} : memref<2x128xf32, #tpu.memory_space<vmem>>, vector<2x128xf32>,
    return
  }
}

</mosaic_0001>

<bundles_post_ra>
// kernel: conv_gru_policy_forward.1
= control target key start
LH: loop header
LB: loop body
LE: loop exit
PB: predicated region body
PF: predicated region fallthrough
CT: control target
= control target key end

     0   :  { %s11091_s0 = inlined_call_operand.vmem [shape: bf16[128,256], index: 0, kind: input, shape index: {}]   ;;  %s11092_s1 = inlined_call_operand.vmem [shape: bf16[256,32], index: 1, kind: input, shape index: {}]   ;;  %s11093_s2 = inlined_call_operand.vmem [shape: f32[1,32], index: 2, kind: input, shape index: {}]   ;;  %s11094_s3 = inlined_call_operand.vmem [shape: bf16[16,18,128], index: 3, kind: input, shape index: {}]   ;;  %s11095_s4 = inlined_call_operand.vmem [shape: bf16[16,32,64], index: 4, kind: input, shape index: {}]   ;;  %s11096_s5 = inlined_call_operand.vmem [shape: f32[1,64], index: 5, kind: input, shape index: {}]   ;;  %s11097_s6 = inlined_call_operand.vmem [shape: bf16[9,2,18], index: 6, kind: input, shape index: {}]   ;;  %s11098_s7 = inlined_call_operand.vmem [shape: bf16[9,64,64], index: 7, kind: input, shape index: {}]   ;;  %s11099_s8 = inlined_call_operand.vmem [shape: f32[1,64], index: 8, kind: input, shape index: {}]   ;;  %s11100_s9 = inlined_call_operand.vmem [shape: bf16[64,512], index: 9, kind: input, shape index: {}]   ;;  %s11101_s10 = inlined_call_operand.vmem [shape: f32[1,512], index: 10, kind: input, shape index: {}]   ;;  %s11102_s11 = inlined_call_operand.vmem [shape: bf16[512,768], index: 11, kind: input, shape index: {}]   ;;  %s11103_s12 = inlined_call_operand.vmem [shape: bf16[8,768], index: 12, kind: input, shape index: {}]   ;;  %s11104_s13 = inlined_call_operand.vmem [shape: f32[1,768], index: 13, kind: input, shape index: {}]   ;;  %s11105_s14 = inlined_call_operand.vmem [shape: bf16[256,768], index: 14, kind: input, shape index: {}]   ;;  %s11106_s15 = inlined_call_operand.vmem [shape: f32[1,768], index: 15, kind: input, shape index: {}]   ;;  %s11107_s16 = inlined_call_operand.vmem [shape: bf16[256,128], index: 16, kind: input, shape index: {}]   ;;  %s11108_s17 = inlined_call_operand.vmem [shape: f32[1,128], index: 17, kind: input, shape index: {}]   ;;  %s11109_s18 = inlined_call_operand.vmem [shape: f32[2,256], index: 18, kind: input, shape index: {}]   ;;  %s11110_s19 = inlined_call_operand.vmem [shape: f32[2,8], index: 19, kind: input, shape index: {}]   ;;  %s11111_s20 = inlined_call_operand.hbm [shape: f32[2,256], index: 20, kind: output, shape index: {0}]   ;;  %s11112_s21 = inlined_call_operand.vmem [shape: f32[2,128], index: 21, kind: output, shape index: {1}]  }
   0x1   :  { %11117 = sst [smem:[#allocation5_spill]] %s11091_s0 }
   0x2   :  { %11118 = sst [smem:[#allocation6_spill]] %s11092_s1 }
   0x3   :  { %11119 = sst [smem:[#allocation7_spill]] %s11093_s2 }
   0x4   :  { %11120 = sst [smem:[#allocation8_spill]] %s11094_s3 }
   0x5   :  { %11121 = sst [smem:[#allocation9_spill]] %s11095_s4 }
   0x6   :  { %11122 = sst [smem:[#allocation10_spill]] %s11096_s5 }
   0x7   :  { %s11123_s26 = sld [smem:[#allocation6_spill]] }
   0x8   :  { %s11124_s22 = sld [smem:[#allocation5_spill]] }
   0x9   :  { %s11125_s1 = sld [smem:[#allocation8_spill]] }
   0xd   :  { %v8300_v0 = vld [vmem:[%s11123_s26 + $0x78] sm:$0xff]   ;;  %v8302_v2 = vld [vmem:[%s11123_s26 + $0x70] sm:$0xff]   ;;  %v8304_v4 = vld [vmem:[%s11123_s26 + $0x68] sm:$0xff]  }
   0xe   :  { %v8301_v1 = vld [vmem:[%s11123_s26 + $0x38] sm:$0xff]   ;;  %7285 = vmatprep.subr.bf16.mxu0 %v8300_v0  ;;  %v8303_v3 = vld [vmem:[%s11123_s26 + $0x30] sm:$0xff]   ;;  %v8305_v5 = vld [vmem:[%s11123_s26 + $0x28] sm:$0xff]  }
   0xf   :  { %7286 = vmatpush3.bf16.msra.mxu0 %v8301_v1  ;;  %v8306_v6 = vld [vmem:[%s11123_s26 + $0x60] sm:$0xff]   ;;  %v8308_v8 = vld [vmem:[%s11123_s26 + $0x58] sm:$0xff]   ;;  %v8310_v10 = vld [vmem:[%s11123_s26 + $0x50] sm:$0xff]  }
  0x10   :  { %7287 = vmatprep.subr.bf16.mxu0 %v8302_v2  ;;  %v8307_v7 = vld [vmem:[%s11123_s26 + $0x20] sm:$0xff]   ;;  %v8309_v9 = vld [vmem:[%s11123_s26 + $0x18] sm:$0xff]   ;;  %v8311_v12 = vld [vmem:[%s11123_s26 + $0x10] sm:$0xff]  }
  0x11   :  { %v8318_v11 = vld [vmem:[%s11124_s22 + $0x4] ss:$8 sps:$4 sm:$0xff]   ;;  %v8316_v17 = vld [vmem:[%s11124_s22] ss:$8 sps:$4 sm:$0xff]   ;;  %v8319_v18 = vld [vmem:[%s11124_s22 + $0x14] ss:$8 sps:$4 sm:$0xff]  }
  0x12   :  { %332 = vmatprep.mubr.bf16.mxu0 %v8318_v11  ;;  %v8312_v13 = vld [vmem:[%s11123_s26 + $0x48] sm:$0xff]   ;;  %v8314_v15 = vld [vmem:[%s11123_s26 + $0x40] sm:$0xff]   ;;  %v8321_v19 = vld [vmem:[%s11124_s22 + $0x10] ss:$8 sps:$4 sm:$0xff]  }
  0x13   :  { %7288 = vmatpush3.bf16.msra.mxu0 %v8303_v3  ;;  %v8313_v14 = vld [vmem:[%s11123_s26 + $0x8] sm:$0xff]   ;;  %v8315_v16 = vld [vmem:[%s11123_s26] sm:$0xff]   ;;  %v8325_v22 = vld [vmem:[%s11124_s22 + $0x34] ss:$8 sps:$4 sm:$0xff]  }
  0x14   :  { %7289 = vmatprep.subr.bf16.mxu0 %v8304_v4  ;;  %v8322_v20 = vld [vmem:[%s11124_s22 + $0x24] ss:$8 sps:$4 sm:$0xff]   ;;  %v8324_v21 = vld [vmem:[%s11124_s22 + $0x20] ss:$8 sps:$4 sm:$0xff]   ;;  %v8327_v23 = vld [vmem:[%s11124_s22 + $0x30] ss:$8 sps:$4 sm:$0xff]  }
  0x15   :  { %v8328_v24 = vld [vmem:[%s11124_s22 + $0x44] ss:$8 sps:$4 sm:$0xff]   ;;  %v8330_v25 = vld [vmem:[%s11124_s22 + $0x40] ss:$8 sps:$4 sm:$0xff]   ;;  %v8331_v26 = vld [vmem:[%s11124_s22 + $0x54] ss:$8 sps:$4 sm:$0xff]  }
  0x16   :  { %v8333_v27 = vld [vmem:[%s11124_s22 + $0x50] ss:$8 sps:$4 sm:$0xff]   ;;  %v8334_v28 = vld [vmem:[%s11124_s22 + $0x64] ss:$8 sps:$4 sm:$0xff]   ;;  %v8336_v29 = vld [vmem:[%s11124_s22 + $0x60] ss:$8 sps:$4 sm:$0xff]  }
  0x17   :  { %7290 = vmatpush3.bf16.msra.mxu0 %v8305_v5  ;;  %v8337_v30 = vld [vmem:[%s11124_s22 + $0x74] ss:$8 sps:$4 sm:$0xff]   ;;  %v8339_v31 = vld [vmem:[%s11124_s22 + $0x70] ss:$8 sps:$4 sm:$0xff]   ;;  %v8340_v32 = vld [vmem:[%s11125_s1] sm:$0xff]  }
  0x18   :  { %7291 = vmatprep.subr.bf16.mxu0 %v8306_v6  ;;  %v8342_v33 = vld [vmem:[%s11125_s1 + $0x18] sm:$0xff]   ;;  %7683 = vmatprep.mubr.bf16.mxu1 %v8340_v32 }
  0x1b   :  { %7292 = vmatpush3.bf16.msra.mxu0 %v8307_v7 }
  0x1c   :  { %7293 = vmatprep.subr.bf16.mxu0 %v8308_v8 }
  0x1f   :  { %7294 = vmatpush3.bf16.msra.mxu0 %v8309_v9 }
  0x20   :  { %7295 = vmatprep.subr.bf16.mxu0 %v8310_v10 }
  0x23   :  { %7296 = vmatpush3.bf16.msra.mxu0 %v8311_v12 }
  0x24   :  { %7297 = vmatprep.subr.bf16.mxu0 %v8312_v13 }
  0x27   :  { %7298 = vmatpush3.bf16.msra.mxu0 %v8313_v14 }
  0x28   :  { %7299 = vmatprep.subr.bf16.mxu0 %v8314_v15 }
  0x2b   :  { %7300 = vmatpush3.bf16.msra.mxu0 %v8315_v16 }
  0x2e   :  { %333 = vmatmul.mubr.bf16.vlgmr.msra.gmra.mxu0 %v8316_v17 }
  0x2f   :  { %340 = vmatprep.mubr.bf16.mxu0 %v8319_v18 }
  0x36   :  { %341 = vmatmul.mubr.bf16.gmra.mxu0 %v8321_v19 }
  0x37   :  { %348 = vmatprep.mubr.bf16.mxu0 %v8322_v20 }
  0x3e   :  { %349 = vmatmul.mubr.bf16.gmra.mxu0 %v8324_v21 }
  0x3f   :  { %356 = vmatprep.mubr.bf16.mxu0 %v8325_v22 }
  0x46   :  { %357 = vmatmul.mubr.bf16.gmra.mxu0 %v8327_v23 }
  0x47   :  { %364 = vmatprep.mubr.bf16.mxu0 %v8328_v24 }
  0x4e   :  { %365 = vmatmul.mubr.bf16.gmra.mxu0 %v8330_v25 }
  0x4f   :  { %372 = vmatprep.mubr.bf16.mxu0 %v8331_v26 }
  0x56   :  { %373 = vmatmul.mubr.bf16.gmra.mxu0 %v8333_v27 }
  0x57   :  { %380 = vmatprep.mubr.bf16.mxu0 %v8334_v28 }
  0x5e   :  { %381 = vmatmul.mubr.bf16.gmra.mxu0 %v8336_v29 }
  0x5f   :  { %388 = vmatprep.mubr.bf16.mxu0 %v8337_v30 }
  0x66   :  { %389 = vmatmul.mubr.bf16.gmra.mxu0 %v8339_v31 }
  0x67   :  { %7739 = vmatprep.mubr.bf16.mxu0 %v8342_v33 }
  0x68   :  { %27 = vsyncpa [#allocation3], 0  ;;  %s11126_s27 = sld [smem:[#allocation7_spill]]  ;;  %vm569_vm0 = vcmask 261120   ;;  %vm8961_vm1 = vmmov 0   ;;  %vm2642_vm2 = vcmask 1040384  }
  0x69   :  { %s11127_s28 = sld [smem:[#allocation9_spill]]  ;;  %vm2638_vm3 = vcmask 146432   ;;  %vm2774_vm4 = vcmask 523264   ;;  %vm4184_vm5 = vcmask 1043456   ;;  %vm4180_vm6 = vcmask 64512  }
  0x6a   :  { %s11128_s26 = sld [smem:[#allocation10_spill]] }
  0x6e   :  { %v9180_v37 = vld [vmem:[%s11126_s27] ss:$0 sm:$0xff] }
  0xee   :  { %v7301_v34 = vpop.f32.mrf.mxu0 }
  0xf0   :  { %v7302_v35 = vpop.f32.mrf.mxu0 }
  0xf1   :  { %v7303_v36 = vadd.f32 %v7302_v35, %v7301_v34 }
  0xf2   :  { %v7304_v38 = vpop.f32.mrf.mxu0 }
  0xf3   :  { %v335_v40 = vadd.f32 %v7303_v36, %v9180_v37 }
  0xf4   :  { %v7305_v39 = vpop.f32.mrf.mxu0 }
  0xf5   :  { %v7306_v41 = vadd.f32 %v7305_v39, %v7304_v38  ;;  %v397_v45 = vmax.f32 %v335_v40, 0.0 }
  0xf6   :  { %v7307_v42 = vpop.f32.mrf.mxu0 }
  0xf7   :  { %v338_v43 = vadd.f32 %v7306_v41, %v9180_v37 }
  0xf8   :  { %v7308_v44 = vpop.f32.mrf.mxu0 }
  0xf9   :  { %v398_v46 = vmax.f32 %v338_v43, 0.0  ;;  %v7309_v47 = vadd.f32 %v7308_v44, %v7307_v42 }
  0xfa   :  { %v7310_v48 = vpop.f32.mrf.mxu0 }
  0xfb   :  { %v9184_v49 = vpack.c.bf16 %v398_v46, %v397_v45  ;;  %v343_v51 = vadd.f32 %v7309_v47, %v9180_v37 }
  0xfc   :  { %v7311_v50 = vpop.f32.mrf.mxu0 }
  0xfd   :  { %v7312_v52 = vadd.f32 %v7311_v50, %v7310_v48  ;;  %v399_v56 = vmax.f32 %v343_v51, 0.0 }
  0xfe   :  { %v9187_v53 = vpop.f32.mrf.mxu0 }
  0xff   :  { %v346_v54 = vadd.f32 %v7312_v52, %v9180_v37 }
 0x100   :  { %v9190_v55 = vpop.f32.mrf.mxu0 }
 0x101   :  { %v400_v57 = vmax.f32 %v346_v54, 0.0  ;;  %v7315_v48 = vadd.f32 %v9190_v55, %v9187_v53 }
 0x102   :  { %v7316_v58 = vpop.f32.mrf.mxu0 }
 0x103   :  { %v9192_v59 = vpack.c.bf16 %v400_v57, %v399_v56  ;;  %v351_v57 = vadd.f32 %v7315_v48, %v9180_v37 }
 0x104   :  { %v7317_v60 = vpop.f32.mrf.mxu0 }
 0x105   :  { %v7318_v44 = vadd.f32 %v7317_v60, %v7316_v58  ;;  %v401_v60 = vmax.f32 %v351_v57, 0.0 }
 0x106   :  { %v7319_v61 = vpop.f32.mrf.mxu0 }
 0x107   :  { %v354_v52 = vadd.f32 %v7318_v44, %v9180_v37 }
 0x108   :  { %v7320_v62 = vpop.f32.mrf.mxu0 }
 0x109   :  { %v7321_v41 = vadd.f32 %v7320_v62, %v7319_v61  ;;  %v402_v53 = vmax.f32 %v354_v52, 0.0  ;;  %v8341_v62 = vld [vmem:[%s11125_s1 + $0x8] ss:$0 sps:$4 sm:$0x11]  }
 0x10a   :  { %v7322_v63 = vpop.f32.mrf.mxu0 }
 0x10b   :  { %v359_v50 = vadd.f32 %v7321_v41, %v9180_v37  ;;  %v9236_v61 = vpack.c.bf16 %v402_v53, %v401_v60  ;;  %v8358_v60 = vld [vmem:[%s11125_s1 + $0x30] sm:$0xff]  }
 0x10c   :  { %v7323_v0 = vpop.f32.mrf.mxu0 }
 0x10d   :  { %v7324_v36 = vadd.f32 %v7323_v0, %v7322_v63  ;;  %v403_v58 = vmax.f32 %v359_v50, 0.0  ;;  %v8344_v63 = vld [vmem:[%s11125_s1 + $0x20] ss:$0 sps:$4 sm:$0x11]   ;;  %v8345_v0 = vld [vmem:[%s11127_s28 + $0x30] sm:$0xff]  }
 0x10e   :  { %v7325_v1 = vpop.f32.mrf.mxu0 }
 0x10f   :  { %v362_v45 = vadd.f32 %v7324_v36, %v9180_v37 }
 0x110   :  { %v7326_v2 = vpop.f32.mrf.mxu0 }
 0x111   :  { %v7327_v32 = vadd.f32 %v7326_v2, %v7325_v1  ;;  %v404_v54 = vmax.f32 %v362_v45, 0.0  ;;  %v8346_v1 = vld [vmem:[%s11125_s1 + $0xc] sm:$0xff]   ;;  %v8347_v2 = vld [vmem:[%s11125_s1 + $0x14] ss:$0 sps:$4 sm:$0x11]  }
 0x112   :  { %v7328_v3 = vpop.f32.mrf.mxu0 }
 0x113   :  { %v367_v42 = vadd.f32 %v7327_v32, %v9180_v37  ;;  %v9230_v55 = vpack.c.bf16 %v404_v54, %v403_v58 }
 0x114   :  { %v7329_v4 = vpop.f32.mrf.mxu0 }
 0x115   :  { %v7330_v27 = vadd.f32 %v7329_v4, %v7328_v3  ;;  %v405_v51 = vmax.f32 %v367_v42, 0.0  ;;  %v8348_v3 = vld [vmem:[%s11127_s28 + $0x18] sm:$0xff]   ;;  %v8349_v4 = vld [vmem:[%s11127_s28 + $0x10] sm:$0xff]  }
 0x116   :  { %v7331_v5 = vpop.f32.mrf.mxu0 }
 0x117   :  { %v370_v38 = vadd.f32 %v7330_v27, %v9180_v37 }
 0x118   :  { %v7332_v6 = vpop.f32.mrf.mxu0 }
 0x119   :  { %v7333_v24 = vadd.f32 %v7332_v6, %v7331_v5  ;;  %v406_v46 = vmax.f32 %v370_v38, 0.0  ;;  %v8350_v5 = vld [vmem:[%s11127_s28 + $0x8] sm:$0xff]  }
 0x11a   :  { %v7334_v7 = vpop.f32.mrf.mxu0 }
 0x11b   :  { %v375_v33 = vadd.f32 %v7333_v24, %v9180_v37  ;;  %v9223_v56 = vpack.c.bf16 %v406_v46, %v405_v51 }
 0x11c   :  { %v7335_v8 = vpop.f32.mrf.mxu0 }
 0x11d   :  { %v7336_v20 = vadd.f32 %v7335_v8, %v7334_v7  ;;  %v407_v43 = vmax.f32 %v375_v33, 0.0 }
 0x11e   :  { %v7337_v9 = vpop.f32.mrf.mxu0 }
 0x11f   :  { %v378_v28 = vadd.f32 %v7336_v20, %v9180_v37 }
 0x120   :  { %v7338_v10 = vpop.f32.mrf.mxu0 }
 0x121   :  { %v7339_v18 = vadd.f32 %v7338_v10, %v7337_v9  ;;  %v408_v39 = vmax.f32 %v378_v28, 0.0  ;;  %v8356_v28 = vld [vmem:[%s11127_s28 + $0x48] sm:$0xff]  }
 0x122   :  { %v7340_v11 = vpop.f32.mrf.mxu0 }
 0x123   :  { %v383_v25 = vadd.f32 %v7339_v18, %v9180_v37  ;;  %v9213_v47 = vpack.c.bf16 %v408_v39, %v407_v43 }
 0x124   :  { %v7341_v12 = vpop.f32.mrf.mxu0 }
 0x125   :  { %v7342_v15 = vadd.f32 %v7341_v12, %v7340_v11  ;;  %v409_v34 = vmax.f32 %v383_v25, 0.0  ;;  %v8353_v25 = vld [vmem:[%s11127_s28 + $0x20] sm:$0xff]  }
 0x126   :  { %v7343_v13 = vpop.f32.mrf.mxu0 }
 0x127   :  { %v386_v21 = vadd.f32 %v7342_v15, %v9180_v37 }
 0x128   :  { %v7344_v14 = vpop.f32.mrf.mxu0 }
 0x129   :  { %v7345_v16 = vadd.f32 %v7344_v14, %v7343_v13  ;;  %v410_v29 = vmax.f32 %v386_v21, 0.0 }
 0x12a   :  { %v7346_v17 = vpop.f32.mrf.mxu0 }
 0x12b   :  { %v391_v22 = vadd.f32 %v7345_v16, %v9180_v37  ;;  %v9203_v40 = vpack.c.bf16 %v410_v29, %v409_v34  ;;  %v8355_v29 = vld [vmem:[%s11125_s1 + $0x2c] ss:$0 sps:$4 sm:$0x11]  }
 0x12c   :  { %v7347_v19 = vpop.f32.mrf.mxu0 }
 0x12d   :  { %v7348_v23 = vadd.f32 %v7347_v19, %v7346_v17  ;;  %v411_v30 = vmax.f32 %v391_v22, 0.0  ;;  %v8351_v19 = vld [vmem:[%s11127_s28] sm:$0xff]   ;;  %v8352_v22 = vld [vmem:[%s11127_s28 + $0x28] sm:$0xff]  }
 0x12f   :  { %v394_v26 = vadd.f32 %v7348_v23, %v9180_v37  ;;  %v8343_v37 = vld [vmem:[%s11127_s28 + $0x38] sm:$0xff]  }
 0x131   :  { %v412_v31 = vmax.f32 %v394_v26, 0.0  ;;  %v8354_v26 = vld [vmem:[%s11125_s1 + $0x24] sm:$0xff]  }
 0x133   :  { %v9200_v35 = vpack.c.bf16 %v412_v31, %v411_v30  ;;  %v8357_v30 = vld [vmem:[%s11127_s28 + $0x40] sm:$0xff]  }
 0x135   :  { %7667 = vmatprep.subr.bf16.mxu1 %v9200_v35  ;;  %7723 = vmatprep.subr.bf16.mxu0 %v9200_v35 }
 0x136   :  { %7668 = vmatpush3.bf16.msra.mxu1 %v9200_v35  ;;  %7724 = vmatpush3.bf16.msra.mxu0 %v9200_v35 }
 0x137   :  { %7669 = vmatprep.subr.bf16.mxu1 %v9203_v40  ;;  %7725 = vmatprep.subr.bf16.mxu0 %v9203_v40 }
 0x13a   :  { %7670 = vmatpush3.bf16.msra.mxu1 %v9203_v40  ;;  %7726 = vmatpush3.bf16.msra.mxu0 %v9203_v40 }
 0x13b   :  { %7671 = vmatprep.subr.bf16.mxu1 %v9213_v47  ;;  %7727 = vmatprep.subr.bf16.mxu0 %v9213_v47 }
 0x13e   :  { %7672 = vmatpush3.bf16.msra.mxu1 %v9213_v47  ;;  %7728 = vmatpush3.bf16.msra.mxu0 %v9213_v47 }
 0x13f   :  { %7673 = vmatprep.subr.bf16.mxu1 %v9223_v56  ;;  %7729 = vmatprep.subr.bf16.mxu0 %v9223_v56 }
 0x142   :  { %7674 = vmatpush3.bf16.msra.mxu1 %v9223_v56  ;;  %7730 = vmatpush3.bf16.msra.mxu0 %v9223_v56 }
 0x143   :  { %7675 = vmatprep.subr.bf16.mxu1 %v9230_v55  ;;  %7731 = vmatprep.subr.bf16.mxu0 %v9230_v55 }
 0x146   :  { %7676 = vmatpush3.bf16.msra.mxu1 %v9230_v55  ;;  %7732 = vmatpush3.bf16.msra.mxu0 %v9230_v55 }
 0x147   :  { %7677 = vmatprep.subr.bf16.mxu1 %v9236_v61  ;;  %7733 = vmatprep.subr.bf16.mxu0 %v9236_v61 }
 0x14a   :  { %7678 = vmatpush3.bf16.msra.mxu1 %v9236_v61  ;;  %7734 = vmatpush3.bf16.msra.mxu0 %v9236_v61 }
 0x14b   :  { %7679 = vmatprep.subr.bf16.mxu1 %v9192_v59  ;;  %7735 = vmatprep.subr.bf16.mxu0 %v9192_v59 }
 0x14e   :  { %7680 = vmatpush3.bf16.msra.mxu1 %v9192_v59  ;;  %7736 = vmatpush3.bf16.msra.mxu0 %v9192_v59 }
 0x14f   :  { %7681 = vmatprep.subr.bf16.mxu1 %v9184_v49  ;;  %7737 = vmatprep.subr.bf16.mxu0 %v9184_v49 }
 0x152   :  { %7682 = vmatpush3.bf16.msra.mxu1 %v9184_v49  ;;  %7738 = vmatpush3.bf16.msra.mxu0 %v9184_v49 }
 0x153   :  { %7687 = vmatprep.subr.bf16.mxu1 %v9200_v35  ;;  %7771 = vmatprep.subr.bf16.mxu0 %v8343_v37 }
 0x155   :  { %7684 = vmatmul.mubr.bf16.vlgmr.msra.gmra.mxu1 %v8341_v62  ;;  %7740 = vmatmul.mubr.bf16.vlgmr.msra.gmra.mxu0 %v8344_v63  ;;  %v8360_v62 = vld [vmem:[%s11127_s28 + $0x58] sm:$0xff]  }
 0x156   :  { %7688 = vmatpush3.bf16.msra.mxu1 %v9200_v35  ;;  %7772 = vmatpush3.bf16.msra.mxu0 %v8343_v37  ;;  %v8359_v63 = vld [vmem:[%s11125_s1 + $0x38] ss:$0 sps:$4 sm:$0x11]  }
 0x157   :  { %7689 = vmatprep.subr.bf16.mxu1 %v9203_v40  ;;  %7773 = vmatprep.subr.bf16.mxu0 %v8345_v0 }
 0x158   :  { %7703 = vmatprep.mubr.bf16.mxu1 %v8346_v1 }
 0x15a   :  { %7690 = vmatpush3.bf16.msra.mxu1 %v9203_v40  ;;  %7774 = vmatpush3.bf16.msra.mxu0 %v8345_v0  ;;  %v8361_v0 = vld [vmem:[%s11127_s28 + $0x50] sm:$0xff]  }
 0x15b   :  { %7691 = vmatprep.subr.bf16.mxu1 %v9213_v47  ;;  %7779 = vmatprep.subr.bf16.mxu0 %v9200_v35 }
 0x15e   :  { %7692 = vmatpush3.bf16.msra.mxu1 %v9213_v47 }
 0x15f   :  { %7693 = vmatprep.subr.bf16.mxu1 %v9223_v56 }
 0x162   :  { %7694 = vmatpush3.bf16.msra.mxu1 %v9223_v56 }
 0x163   :  { %7695 = vmatprep.subr.bf16.mxu1 %v9230_v55 }
 0x166   :  { %7696 = vmatpush3.bf16.msra.mxu1 %v9230_v55 }
 0x167   :  { %7697 = vmatprep.subr.bf16.mxu1 %v9236_v61 }
 0x16a   :  { %7698 = vmatpush3.bf16.msra.mxu1 %v9236_v61 }
 0x16b   :  { %7699 = vmatprep.subr.bf16.mxu1 %v9192_v59 }
 0x16e   :  { %7700 = vmatpush3.bf16.msra.mxu1 %v9192_v59 }
 0x16f   :  { %7701 = vmatprep.subr.bf16.mxu1 %v9184_v49 }
 0x172   :  { %7702 = vmatpush3.bf16.msra.mxu1 %v9184_v49 }
 0x173   :  { %7707 = vmatprep.subr.bf16.mxu1 %v8348_v3 }
 0x175   :  { %7704 = vmatmul.mubr.bf16.vlgmr.msra.gmra.mxu1 %v8347_v2 }
 0x176   :  { %7708 = vmatpush3.bf16.msra.mxu1 %v8348_v3 }
 0x177   :  { %7709 = vmatprep.subr.bf16.mxu1 %v8349_v4 }
 0x17a   :  { %7710 = vmatpush3.bf16.msra.mxu1 %v8349_v4 }
 0x17b   :  { %7715 = vmatprep.subr.bf16.mxu1 %v8350_v5 }
 0x215   :  { %v7685_v6 = vpop.f32.mrf.mxu1  ;;  %v7741_v7 = vpop.f32.mrf.mxu0 }
 0x216   :  { %v483_v24 = vpack.c.bf16 %v7685_v6, %v7685_v6  ;;  %v753_v27 = vpack.c.bf16 %v7741_v7, %v7741_v7 }
 0x217   :  { %v468_v8 = vpop.f32.mrf.mxu1  ;;  %v738_v9 = vpop.f32.mrf.mxu0 }
 0x219   :  { %v7686_v10 = vpop.f32.mrf.mxu1  ;;  %v7742_v11 = vpop.f32.mrf.mxu0 }
 0x21b   :  { %v471_v12 = vpop.f32.mrf.mxu1  ;;  %v741_v21 = vpop.f32.mrf.mxu0 }
 0x21c   :  { %v482_v20 = vpack.c.bf16 %v471_v12, %v468_v8  ;;  %v752_v23 = vpack.c.bf16 %v741_v21, %v738_v9  ;;  %v8362_v12 = vld [vmem:[%s11125_s1 + $0x3c] sm:$0xff]  }
 0x235   :  { %v7705_v13 = vpop.f32.mrf.mxu1 }
 0x236   :  { %v551_v18 = vpack.c.bf16 %v7705_v13, %v7705_v13 }
 0x237   :  { %v536_v14 = vpop.f32.mrf.mxu1 }
 0x239   :  { %v7706_v15 = vpop.f32.mrf.mxu1 }
 0x23a   :  { %v8363_v15 = vld [vmem:[%s11125_s1 + $0x44] ss:$0 sps:$4 sm:$0x11]  }
 0x23b   :  { %v539_v16 = vpop.f32.mrf.mxu1 }
 0x23c   :  { %v550_v17 = vpack.c.bf16 %v539_v16, %v536_v14  ;;  %v8364_v14 = vld [vmem:[%s11127_s28 + $0x68] sm:$0xff]   ;;  %v8365_v16 = vld [vmem:[%s11127_s28 + $0x60] sm:$0xff]  }
 0x23e   :  { %7711 = vmatprep.mubr.msk.bf16.mxu1 %vm569_vm0, %v550_v17 }
 0x23f   :  { %7712 = vmatmul.mubr.msk.bf16.vlgmr.msra.gmra.mxu1 %vm569_vm0, %v551_v18 }
 0x240   :  { %7716 = vmatpush3.bf16.msra.mxu1 %v8350_v5  ;;  %7719 = vmatprep.mubr.msk.bf16.mxu1 %vm569_vm0, %v482_v20 }
 0x241   :  { %7717 = vmatprep.subr.bf16.mxu1 %v8351_v19 }
 0x244   :  { %7718 = vmatpush3.bf16.msra.mxu1 %v8351_v19 }
 0x245   :  { %7743 = vmatprep.subr.bf16.mxu1 %v8352_v22 }
 0x247   :  { %7720 = vmatmul.mubr.msk.bf16.vlgmr.msra.gmra.mxu1 %vm569_vm0, %v483_v24 }
 0x248   :  { %7744 = vmatpush3.bf16.msra.mxu1 %v8352_v22  ;;  %7747 = vmatprep.mubr.msk.bf16.mxu1 %vm569_vm0, %v752_v23 }
 0x249   :  { %7745 = vmatprep.subr.bf16.mxu1 %v8353_v25 }
 0x24c   :  { %7746 = vmatpush3.bf16.msra.mxu1 %v8353_v25 }
 0x24d   :  { %7751 = vmatprep.subr.bf16.mxu1 %v9200_v35 }
 0x24f   :  { %7748 = vmatmul.mubr.msk.bf16.vlgmr.msra.gmra.mxu1 %vm569_vm0, %v753_v27 }
 0x250   :  { %7752 = vmatpush3.bf16.msra.mxu1 %v9200_v35  ;;  %7767 = vmatprep.mubr.bf16.mxu1 %v8354_v26 }
 0x251   :  { %7753 = vmatprep.subr.bf16.mxu1 %v9203_v40 }
 0x254   :  { %7754 = vmatpush3.bf16.msra.mxu1 %v9203_v40 }
 0x255   :  { %7755 = vmatprep.subr.bf16.mxu1 %v9213_v47 }
 0x258   :  { %7756 = vmatpush3.bf16.msra.mxu1 %v9213_v47 }
 0x259   :  { %7757 = vmatprep.subr.bf16.mxu1 %v9223_v56 }
 0x25c   :  { %7758 = vmatpush3.bf16.msra.mxu1 %v9223_v56 }
 0x25d   :  { %7759 = vmatprep.subr.bf16.mxu1 %v9230_v55 }
 0x260   :  { %7760 = vmatpush3.bf16.msra.mxu1 %v9230_v55 }
 0x261   :  { %7761 = vmatprep.subr.bf16.mxu1 %v9236_v61 }
 0x264   :  { %7762 = vmatpush3.bf16.msra.mxu1 %v9236_v61 }
 0x265   :  { %7763 = vmatprep.subr.bf16.mxu1 %v9192_v59 }
 0x268   :  { %7764 = vmatpush3.bf16.msra.mxu1 %v9192_v59 }
 0x269   :  { %7765 = vmatprep.subr.bf16.mxu1 %v9184_v49 }
 0x26c   :  { %7766 = vmatpush3.bf16.msra.mxu1 %v9184_v49 }
 0x26d   :  { %7799 = vmatprep.subr.bf16.mxu1 %v8356_v28 }
 0x26f   :  { %7768 = vmatmul.mubr.bf16.vlgmr.msra.gmra.mxu1 %v8355_v29 }
 0x270   :  { %7800 = vmatpush3.bf16.msra.mxu1 %v8356_v28  ;;  %v8366_v28 = vld [vmem:[%s11125_s1 + $0x48] sm:$0xff]  }
 0x271   :  { %7801 = vmatprep.subr.bf16.mxu1 %v8357_v30 }
 0x274   :  { %7802 = vmatpush3.bf16.msra.mxu1 %v8357_v30  ;;  %v8368_v30 = vld [vmem:[%s11127_s28 + $0x78] sm:$0xff]  }
 0x275   :  { %7807 = vmatprep.subr.bf16.mxu1 %v9200_v35 }
 0x2ff   :  { %v7713_v31 = vpop.f32.mrf.mxu1 }
 0x301   :  { %v610_v32 = vpop.f32.mrf.mxu1 }
 0x303   :  { %v7714_v33 = vpop.f32.mrf.mxu1 }
 0x305   :  { %v9340_v34 = vpop.f32.mrf.mxu1 }
 0x307   :  { %v7721_v36 = vpop.f32.mrf.mxu1 }
 0x308   :  { %v685_v38 = vadd.f32 %v7721_v36, %v7713_v31  ;;  %v8367_v31 = vld [vmem:[%s11125_s1 + $0x50] ss:$0 sps:$4 sm:$0x11]  }
 0x309   :  { %v676_v39 = vpop.f32.mrf.mxu1 }
 0x30a   :  { %v677_v41 = vadd.f32 %v676_v39, %v610_v32  ;;  %v8369_v32 = vld [vmem:[%s11127_s28 + $0x70] sm:$0xff]  }
 0x30b   :  { %v7722_v42 = vpop.f32.mrf.mxu1 }
 0x30d   :  { %v9342_v43 = vpop.f32.mrf.mxu1 }
 0x30e   :  { %v680_v33 = vadd.f32 %v9342_v43, %v9340_v34  ;;  %v8370_v34 = vld [vmem:[%s11125_s1 + $0x54] sm:$0xff]  }
 0x30f   :  { %v7749_v44 = vpop.f32.mrf.mxu1 }
 0x310   :  { %v827_v45 = vadd.f32 %v7749_v44, %v685_v38 }
 0x311   :  { %v811_v46 = vpop.f32.mrf.mxu1 }
 0x312   :  { %v825_v48 = vadd.f32 %v811_v46, %v677_v41 }
 0x313   :  { %v7750_v50 = vpop.f32.mrf.mxu1 }
 0x315   :  { %v9344_v51 = vpop.f32.mrf.mxu1 }
 0x316   :  { %v826_v38 = vadd.f32 %v9344_v51, %v680_v33  ;;  %v8372_v51 = vld [vmem:[%s11127_s28 + $0x88] sm:$0xff]  }
 0x32f   :  { %v7769_v52 = vpop.f32.mrf.mxu1 }
 0x330   :  { %v891_v37 = vpack.c.bf16 %v7769_v52, %v7769_v52 }
 0x331   :  { %v876_v54 = vpop.f32.mrf.mxu1 }
 0x333   :  { %v7770_v57 = vpop.f32.mrf.mxu1 }
 0x335   :  { %v879_v58 = vpop.f32.mrf.mxu1 }
 0x336   :  { %v890_v53 = vpack.c.bf16 %v879_v58, %v876_v54 }
 0x338   :  { %7775 = vmatprep.mubr.msk.bf16.mxu0 %vm569_vm0, %v890_v53 }
 0x339   :  { %7776 = vmatmul.mubr.msk.bf16.vlgmr.msra.gmra.mxu0 %vm569_vm0, %v891_v37  ;;  %v8373_v37 = vld [vmem:[%s11127_s28 + $0x80] sm:$0xff]  }
 0x33a   :  { %7780 = vmatpush3.bf16.msra.mxu0 %v9200_v35  ;;  %7795 = vmatprep.mubr.bf16.mxu0 %v8358_v60  ;;  %v8371_v60 = vld [vmem:[%s11125_s1 + $0x5c] ss:$0 sps:$4 sm:$0x11]  }
 0x33b   :  { %7781 = vmatprep.subr.bf16.mxu0 %v9203_v40 }
 0x33e   :  { %7782 = vmatpush3.bf16.msra.mxu0 %v9203_v40 }
 0x33f   :  { %7783 = vmatprep.subr.bf16.mxu0 %v9213_v47 }
 0x342   :  { %7784 = vmatpush3.bf16.msra.mxu0 %v9213_v47 }
 0x343   :  { %7785 = vmatprep.subr.bf16.mxu0 %v9223_v56 }
 0x346   :  { %7786 = vmatpush3.bf16.msra.mxu0 %v9223_v56 }
 0x347   :  { %7787 = vmatprep.subr.bf16.mxu0 %v9230_v55 }
 0x34a   :  { %7788 = vmatpush3.bf16.msra.mxu0 %v9230_v55 }
 0x34b   :  { %7789 = vmatprep.subr.bf16.mxu0 %v9236_v61 }
 0x34e   :  { %7790 = vmatpush3.bf16.msra.mxu0 %v9236_v61 }
 0x34f   :  { %7791 = vmatprep.subr.bf16.mxu0 %v9192_v59 }
 0x352   :  { %7792 = vmatpush3.bf16.msra.mxu0 %v9192_v59 }
 0x353   :  { %7793 = vmatprep.subr.bf16.mxu0 %v9184_v49 }
 0x356   :  { %7794 = vmatpush3.bf16.msra.mxu0 %v9184_v49 }
 0x357   :  { %7827 = vmatprep.subr.bf16.mxu0 %v8360_v62 }
 0x359   :  { %7796 = vmatmul.mubr.bf16.vlgmr.msra.gmra.mxu0 %v8359_v63 }
 0x35a   :  { %7828 = vmatpush3.bf16.msra.mxu0 %v8360_v62 }
 0x35b   :  { %7829 = vmatprep.subr.bf16.mxu0 %v8361_v0 }
 0x35e   :  { %7830 = vmatpush3.bf16.msra.mxu0 %v8361_v0 }
 0x35f   :  { %7835 = vmatprep.subr.bf16.mxu0 %v9200_v35 }
 0x3f9   :  { %v7777_v1 = vpop.f32.mrf.mxu0 }
 0x3fa   :  { %v965_v2 = vadd.f32 %v7777_v1, %v827_v45 }
 0x3fb   :  { %v949_v3 = vpop.f32.mrf.mxu0 }
 0x3fc   :  { %v963_v4 = vadd.f32 %v949_v3, %v825_v48 }
 0x3fd   :  { %v7778_v5 = vpop.f32.mrf.mxu0 }
 0x3ff   :  { %v9376_v6 = vpop.f32.mrf.mxu0 }
 0x400   :  { %v964_v42 = vadd.f32 %v9376_v6, %v826_v38 }
 0x419   :  { %v7797_v7 = vpop.f32.mrf.mxu0 }
 0x41a   :  { %v1029_v13 = vpack.c.bf16 %v7797_v7, %v7797_v7 }
 0x41b   :  { %v1014_v8 = vpop.f32.mrf.mxu0 }
 0x41d   :  { %v7798_v9 = vpop.f32.mrf.mxu0 }
 0x41f   :  { %v1017_v10 = vpop.f32.mrf.mxu0 }
 0x420   :  { %v1028_v11 = vpack.c.bf16 %v1017_v10, %v1014_v8  ;;  %v8374_v10 = vld [vmem:[%s11125_s1 + $0x60] sm:$0xff]  }
 0x422   :  { %7803 = vmatprep.mubr.msk.bf16.mxu1 %vm569_vm0, %v1028_v11 }
 0x423   :  { %7804 = vmatmul.mubr.msk.bf16.vlgmr.msra.gmra.mxu1 %vm569_vm0, %v1029_v13  ;;  %v8375_v13 = vld [vmem:[%s11125_s1 + $0x68] ss:$0 sps:$4 sm:$0x11]  }
 0x424   :  { %7808 = vmatpush3.bf16.msra.mxu1 %v9200_v35  ;;  %7823 = vmatprep.mubr.bf16.mxu1 %v8362_v12  ;;  %v8376_v12 = vld [vmem:[%s11127_s28 + $0x98] sm:$0xff]  }
 0x425   :  { %7809 = vmatprep.subr.bf16.mxu1 %v9203_v40 }
 0x428   :  { %7810 = vmatpush3.bf16.msra.mxu1 %v9203_v40 }
 0x429   :  { %7811 = vmatprep.subr.bf16.mxu1 %v9213_v47 }
 0x42c   :  { %7812 = vmatpush3.bf16.msra.mxu1 %v9213_v47 }
 0x42d   :  { %7813 = vmatprep.subr.bf16.mxu1 %v9223_v56 }
 0x430   :  { %7814 = vmatpush3.bf16.msra.mxu1 %v9223_v56 }
 0x431   :  { %7815 = vmatprep.subr.bf16.mxu1 %v9230_v55 }
 0x434   :  { %7816 = vmatpush3.bf16.msra.mxu1 %v9230_v55 }
 0x435   :  { %7817 = vmatprep.subr.bf16.mxu1 %v9236_v61 }
 0x438   :  { %7818 = vmatpush3.bf16.msra.mxu1 %v9236_v61 }
 0x439   :  { %7819 = vmatprep.subr.bf16.mxu1 %v9192_v59 }
 0x43c   :  { %7820 = vmatpush3.bf16.msra.mxu1 %v9192_v59 }
 0x43d   :  { %7821 = vmatprep.subr.bf16.mxu1 %v9184_v49 }
 0x440   :  { %7822 = vmatpush3.bf16.msra.mxu1 %v9184_v49 }
 0x441   :  { %7855 = vmatprep.subr.bf16.mxu1 %v8364_v14 }
 0x443   :  { %7824 = vmatmul.mubr.bf16.vlgmr.msra.gmra.mxu1 %v8363_v15 }
 0x444   :  { %7856 = vmatpush3.bf16.msra.mxu1 %v8364_v14  ;;  %v8377_v14 = vld [vmem:[%s11127_s28 + $0x90] sm:$0xff]  }
 0x445   :  { %7857 = vmatprep.subr.bf16.mxu1 %v8365_v16 }
 0x448   :  { %7858 = vmatpush3.bf16.msra.mxu1 %v8365_v16 }
 0x449   :  { %7863 = vmatprep.subr.bf16.mxu1 %v9200_v35 }
 0x4e3   :  { %v7805_v17 = vpop.f32.mrf.mxu1 }
 0x4e4   :  { %v1103_v18 = vadd.f32 %v7805_v17, %v965_v2 }
 0x4e5   :  { %v1087_v19 = vpop.f32.mrf.mxu1 }
 0x4e6   :  { %v1101_v20 = vadd.f32 %v1087_v19, %v963_v4 }
 0x4e7   :  { %v7806_v21 = vpop.f32.mrf.mxu1 }
 0x4e9   :  { %v1090_v22 = vpop.f32.mrf.mxu1 }
 0x4ea   :  { %v1102_v46 = vadd.f32 %v1090_v22, %v964_v42 }
 0x503   :  { %v7825_v23 = vpop.f32.mrf.mxu1 }
 0x504   :  { %v1167_v29 = vpack.c.bf16 %v7825_v23, %v7825_v23 }
 0x505   :  { %v1152_v24 = vpop.f32.mrf.mxu1 }
 0x507   :  { %v7826_v25 = vpop.f32.mrf.mxu1 }
 0x509   :  { %v1155_v26 = vpop.f32.mrf.mxu1 }
 0x50a   :  { %v1166_v27 = vpack.c.bf16 %v1155_v26, %v1152_v24 }
 0x50c   :  { %7831 = vmatprep.mubr.msk.bf16.mxu0 %vm569_vm0, %v1166_v27  ;;  %v8378_v27 = vld [vmem:[%s11125_s1 + $0x6c] sm:$0xff]  }
 0x50d   :  { %7832 = vmatmul.mubr.msk.bf16.vlgmr.msra.gmra.mxu0 %vm569_vm0, %v1167_v29  ;;  %v8380_v29 = vld [vmem:[%s11127_s28 + $0xa8] sm:$0xff]  }
 0x50e   :  { %7836 = vmatpush3.bf16.msra.mxu0 %v9200_v35  ;;  %7851 = vmatprep.mubr.bf16.mxu0 %v8366_v28 }
 0x50f   :  { %7837 = vmatprep.subr.bf16.mxu0 %v9203_v40 }
 0x512   :  { %7838 = vmatpush3.bf16.msra.mxu0 %v9203_v40 }
 0x513   :  { %7839 = vmatprep.subr.bf16.mxu0 %v9213_v47 }
 0x516   :  { %7840 = vmatpush3.bf16.msra.mxu0 %v9213_v47 }
 0x517   :  { %7841 = vmatprep.subr.bf16.mxu0 %v9223_v56 }
 0x51a   :  { %7842 = vmatpush3.bf16.msra.mxu0 %v9223_v56 }
 0x51b   :  { %7843 = vmatprep.subr.bf16.mxu0 %v9230_v55 }
 0x51e   :  { %7844 = vmatpush3.bf16.msra.mxu0 %v9230_v55 }
 0x51f   :  { %7845 = vmatprep.subr.bf16.mxu0 %v9236_v61 }
 0x522   :  { %7846 = vmatpush3.bf16.msra.mxu0 %v9236_v61 }
 0x523   :  { %7847 = vmatprep.subr.bf16.mxu0 %v9192_v59 }
 0x526   :  { %7848 = vmatpush3.bf16.msra.mxu0 %v9192_v59 }
 0x527   :  { %7849 = vmatprep.subr.bf16.mxu0 %v9184_v49 }
 0x52a   :  { %7850 = vmatpush3.bf16.msra.mxu0 %v9184_v49 }
 0x52b   :  { %7883 = vmatprep.subr.bf16.mxu0 %v8368_v30 }
 0x52d   :  { %7852 = vmatmul.mubr.bf16.vlgmr.msra.gmra.mxu0 %v8367_v31  ;;  %v8381_v31 = vld [vmem:[%s11127_s28 + $0xa0] sm:$0xff]  }
 0x52e   :  { %7884 = vmatpush3.bf16.msra.mxu0 %v8368_v30  ;;  %v8379_v30 = vld [vmem:[%s11125_s1 + $0x74] ss:$0 sps:$4 sm:$0x11]  }
 0x52f   :  { %7885 = vmatprep.subr.bf16.mxu0 %v8369_v32 }
 0x532   :  { %7886 = vmatpush3.bf16.msra.mxu0 %v8369_v32 }
 0x533   :  { %7891 = vmatprep.subr.bf16.mxu0 %v9200_v35 }
 0x5cd   :  { %v7833_v36 = vpop.f32.mrf.mxu0 }
 0x5ce   :  { %v1241_v39 = vadd.f32 %v7833_v36, %v1103_v18 }
 0x5cf   :  { %v1225_v41 = vpop.f32.mrf.mxu0 }
 0x5d0   :  { %v1239_v44 = vadd.f32 %v1225_v41, %v1101_v20 }
 0x5d1   :  { %v7834_v45 = vpop.f32.mrf.mxu0 }
 0x5d3   :  { %v1228_v48 = vpop.f32.mrf.mxu0 }
 0x5d4   :  { %v1240_v50 = vadd.f32 %v1228_v48, %v1102_v46 }
 0x5ed   :  { %v7853_v52 = vpop.f32.mrf.mxu0 }
 0x5ee   :  { %v1305_v43 = vpack.c.bf16 %v7853_v52, %v7853_v52  ;;  %v8382_v52 = vld [vmem:[%s11125_s1 + $0x78] sm:$0xff]  }
 0x5ef   :  { %v1290_v54 = vpop.f32.mrf.mxu0 }
 0x5f1   :  { %v7854_v57 = vpop.f32.mrf.mxu0 }
 0x5f2   :  { %v8384_v57 = vld [vmem:[%s11127_s28 + $0xb8] sm:$0xff]  }
 0x5f3   :  { %v1293_v58 = vpop.f32.mrf.mxu0 }
 0x5f4   :  { %v1304_v53 = vpack.c.bf16 %v1293_v58, %v1290_v54  ;;  %v8383_v58 = vld [vmem:[%s11125_s1 + $0x80] ss:$0 sps:$4 sm:$0x11]  }
 0x5f6   :  { %7859 = vmatprep.mubr.msk.bf16.mxu1 %vm569_vm0, %v1304_v53  ;;  %v8385_v53 = vld [vmem:[%s11127_s28 + $0xb0] sm:$0xff]  }
 0x5f7   :  { %7860 = vmatmul.mubr.msk.bf16.vlgmr.msra.gmra.mxu1 %vm569_vm0, %v1305_v43 }
 0x5f8   :  { %7864 = vmatpush3.bf16.msra.mxu1 %v9200_v35  ;;  %7879 = vmatprep.mubr.bf16.mxu1 %v8370_v34 }
 0x5f9   :  { %7865 = vmatprep.subr.bf16.mxu1 %v9203_v40 }
 0x5fc   :  { %7866 = vmatpush3.bf16.msra.mxu1 %v9203_v40 }
 0x5fd   :  { %7867 = vmatprep.subr.bf16.mxu1 %v9213_v47 }
 0x600   :  { %7868 = vmatpush3.bf16.msra.mxu1 %v9213_v47 }
 0x601   :  { %7869 = vmatprep.subr.bf16.mxu1 %v9223_v56 }
 0x604   :  { %7870 = vmatpush3.bf16.msra.mxu1 %v9223_v56 }
 0x605   :  { %7871 = vmatprep.subr.bf16.mxu1 %v9230_v55 }
 0x608   :  { %7872 = vmatpush3.bf16.msra.mxu1 %v9230_v55 }
 0x609   :  { %7873 = vmatprep.subr.bf16.mxu1 %v9236_v61 }
 0x60c   :  { %7874 = vmatpush3.bf16.msra.mxu1 %v9236_v61 }
 0x60d   :  { %7875 = vmatprep.subr.bf16.mxu1 %v9192_v59 }
 0x610   :  { %7876 = vmatpush3.bf16.msra.mxu1 %v9192_v59 }
 0x611   :  { %7877 = vmatprep.subr.bf16.mxu1 %v9184_v49 }
 0x614   :  { %7878 = vmatpush3.bf16.msra.mxu1 %v9184_v49 }
 0x615   :  { %7911 = vmatprep.subr.bf16.mxu1 %v8372_v51 }
 0x617   :  { %7880 = vmatmul.mubr.bf16.vlgmr.msra.gmra.mxu1 %v8371_v60 }
 0x618   :  { %7912 = vmatpush3.bf16.msra.mxu1 %v8372_v51 }
 0x619   :  { %7913 = vmatprep.subr.bf16.mxu1 %v8373_v37 }
 0x61c   :  { %7914 = vmatpush3.bf16.msra.mxu1 %v8373_v37 }
 0x61d   :  { %7919 = vmatprep.subr.bf16.mxu1 %v9200_v35 }
 0x6b7   :  { %v7861_v62 = vpop.f32.mrf.mxu1 }
 0x6b8   :  { %v1379_v63 = vadd.f32 %v7861_v62, %v1241_v39 }
 0x6b9   :  { %v1363_v0 = vpop.f32.mrf.mxu1 }
 0x6ba   :  { %v1377_v1 = vadd.f32 %v1363_v0, %v1239_v44 }
 0x6bb   :  { %v7862_v2 = vpop.f32.mrf.mxu1 }
 0x6bd   :  { %v1366_v3 = vpop.f32.mrf.mxu1 }
 0x6be   :  { %v1378_v4 = vadd.f32 %v1366_v3, %v1240_v50 }
 0x6d7   :  { %v7881_v5 = vpop.f32.mrf.mxu1 }
 0x6d8   :  { %v1443_v11 = vpack.c.bf16 %v7881_v5, %v7881_v5  ;;  %v8386_v5 = vld [vmem:[%s11125_s1 + $0x84] sm:$0xff]  }
 0x6d9   :  { %v1428_v6 = vpop.f32.mrf.mxu1 }
 0x6db   :  { %v7882_v7 = vpop.f32.mrf.mxu1 }
 0x6dc   :  { %v8388_v7 = vld [vmem:[%s11127_s28 + $0xc8] sm:$0xff]  }
 0x6dd   :  { %v1431_v8 = vpop.f32.mrf.mxu1 }
 0x6de   :  { %v1442_v9 = vpack.c.bf16 %v1431_v8, %v1428_v6  ;;  %v8387_v8 = vld [vmem:[%s11125_s1 + $0x8c] ss:$0 sps:$4 sm:$0x11]  }
 0x6e0   :  { %7887 = vmatprep.mubr.msk.bf16.mxu0 %vm569_vm0, %v1442_v9  ;;  %v8389_v9 = vld [vmem:[%s11127_s28 + $0xc0] sm:$0xff]  }
 0x6e1   :  { %7888 = vmatmul.mubr.msk.bf16.vlgmr.msra.gmra.mxu0 %vm569_vm0, %v1443_v11 }
 0x6e2   :  { %7892 = vmatpush3.bf16.msra.mxu0 %v9200_v35  ;;  %7907 = vmatprep.mubr.bf16.mxu0 %v8374_v10 }
 0x6e3   :  { %7893 = vmatprep.subr.bf16.mxu0 %v9203_v40 }
 0x6e6   :  { %7894 = vmatpush3.bf16.msra.mxu0 %v9203_v40 }
 0x6e7   :  { %7895 = vmatprep.subr.bf16.mxu0 %v9213_v47 }
 0x6ea   :  { %7896 = vmatpush3.bf16.msra.mxu0 %v9213_v47 }
 0x6eb   :  { %7897 = vmatprep.subr.bf16.mxu0 %v9223_v56 }
 0x6ee   :  { %7898 = vmatpush3.bf16.msra.mxu0 %v9223_v56 }
 0x6ef   :  { %7899 = vmatprep.subr.bf16.mxu0 %v9230_v55 }
 0x6f2   :  { %7900 = vmatpush3.bf16.msra.mxu0 %v9230_v55 }
 0x6f3   :  { %7901 = vmatprep.subr.bf16.mxu0 %v9236_v61 }
 0x6f6   :  { %7902 = vmatpush3.bf16.msra.mxu0 %v9236_v61 }
 0x6f7   :  { %7903 = vmatprep.subr.bf16.mxu0 %v9192_v59 }
 0x6fa   :  { %7904 = vmatpush3.bf16.msra.mxu0 %v9192_v59 }
 0x6fb   :  { %7905 = vmatprep.subr.bf16.mxu0 %v9184_v49 }
 0x6fe   :  { %7906 = vmatpush3.bf16.msra.mxu0 %v9184_v49 }
 0x6ff   :  { %7939 = vmatprep.subr.bf16.mxu0 %v8376_v12 }
 0x701   :  { %7908 = vmatmul.mubr.bf16.vlgmr.msra.gmra.mxu0 %v8375_v13 }
 0x702   :  { %7940 = vmatpush3.bf16.msra.mxu0 %v8376_v12 }
 0x703   :  { %7941 = vmatprep.subr.bf16.mxu0 %v8377_v14 }
 0x706   :  { %7942 = vmatpush3.bf16.msra.mxu0 %v8377_v14 }
 0x707   :  { %7947 = vmatprep.subr.bf16.mxu0 %v9200_v35 }
 0x7a1   :  { %v7889_v15 = vpop.f32.mrf.mxu0 }
 0x7a2   :  { %v1517_v16 = vadd.f32 %v7889_v15, %v1379_v63 }
 0x7a3   :  { %v1501_v17 = vpop.f32.mrf.mxu0 }
 0x7a4   :  { %v1515_v18 = vadd.f32 %v1501_v17, %v1377_v1 }
 0x7a5   :  { %v7890_v19 = vpop.f32.mrf.mxu0 }
 0x7a7   :  { %v1504_v20 = vpop.f32.mrf.mxu0 }
 0x7a8   :  { %v1516_v21 = vadd.f32 %v1504_v20, %v1378_v4 }
 0x7c1   :  { %v7909_v22 = vpop.f32.mrf.mxu0 }
 0x7c2   :  { %v1581_v28 = vpack.c.bf16 %v7909_v22, %v7909_v22  ;;  %v8390_v22 = vld [vmem:[%s11125_s1 + $0x90] sm:$0xff]  }
 0x7c3   :  { %v1566_v23 = vpop.f32.mrf.mxu0 }
 0x7c5   :  { %v7910_v24 = vpop.f32.mrf.mxu0 }
 0x7c6   :  { %v8392_v24 = vld [vmem:[%s11127_s28 + $0xd8] sm:$0xff]  }
 0x7c7   :  { %v1569_v25 = vpop.f32.mrf.mxu0 }
 0x7c8   :  { %v1580_v26 = vpack.c.bf16 %v1569_v25, %v1566_v23  ;;  %v8391_v25 = vld [vmem:[%s11125_s1 + $0x98] ss:$0 sps:$4 sm:$0x11]  }
 0x7ca   :  { %7915 = vmatprep.mubr.msk.bf16.mxu1 %vm569_vm0, %v1580_v26  ;;  %v8393_v26 = vld [vmem:[%s11127_s28 + $0xd0] sm:$0xff]  }
 0x7cb   :  { %7916 = vmatmul.mubr.msk.bf16.vlgmr.msra.gmra.mxu1 %vm569_vm0, %v1581_v28 }
 0x7cc   :  { %7920 = vmatpush3.bf16.msra.mxu1 %v9200_v35  ;;  %7935 = vmatprep.mubr.bf16.mxu1 %v8378_v27 }
 0x7cd   :  { %7921 = vmatprep.subr.bf16.mxu1 %v9203_v40 }
 0x7d0   :  { %7922 = vmatpush3.bf16.msra.mxu1 %v9203_v40 }
 0x7d1   :  { %7923 = vmatprep.subr.bf16.mxu1 %v9213_v47 }
 0x7d4   :  { %7924 = vmatpush3.bf16.msra.mxu1 %v9213_v47 }
 0x7d5   :  { %7925 = vmatprep.subr.bf16.mxu1 %v9223_v56 }
 0x7d8   :  { %7926 = vmatpush3.bf16.msra.mxu1 %v9223_v56 }
 0x7d9   :  { %7927 = vmatprep.subr.bf16.mxu1 %v9230_v55 }
 0x7dc   :  { %7928 = vmatpush3.bf16.msra.mxu1 %v9230_v55 }
 0x7dd   :  { %7929 = vmatprep.subr.bf16.mxu1 %v9236_v61 }
 0x7e0   :  { %7930 = vmatpush3.bf16.msra.mxu1 %v9236_v61 }
 0x7e1   :  { %7931 = vmatprep.subr.bf16.mxu1 %v9192_v59 }
 0x7e4   :  { %7932 = vmatpush3.bf16.msra.mxu1 %v9192_v59 }
 0x7e5   :  { %7933 = vmatprep.subr.bf16.mxu1 %v9184_v49 }
 0x7e8   :  { %7934 = vmatpush3.bf16.msra.mxu1 %v9184_v49 }
 0x7e9   :  { %7967 = vmatprep.subr.bf16.mxu1 %v8380_v29 }
 0x7eb   :  { %7936 = vmatmul.mubr.bf16.vlgmr.msra.gmra.mxu1 %v8379_v30 }
 0x7ec   :  { %7968 = vmatpush3.bf16.msra.mxu1 %v8380_v29 }
 0x7ed   :  { %7969 = vmatprep.subr.bf16.mxu1 %v8381_v31 }
 0x7f0   :  { %7970 = vmatpush3.bf16.msra.mxu1 %v8381_v31 }
 0x7f1   :  { %7975 = vmatprep.subr.bf16.mxu1 %v9200_v35 }
 0x88b   :  { %v7917_v32 = vpop.f32.mrf.mxu1 }
 0x88c   :  { %v1655_v33 = vadd.f32 %v7917_v32, %v1517_v16 }
 0x88d   :  { %v1639_v36 = vpop.f32.mrf.mxu1 }
 0x88e   :  { %v1653_v38 = vadd.f32 %v1639_v36, %v1515_v18 }
 0x88f   :  { %v7918_v39 = vpop.f32.mrf.mxu1 }
 0x891   :  { %v1642_v41 = vpop.f32.mrf.mxu1 }
 0x892   :  { %v1654_v42 = vadd.f32 %v1642_v41, %v1516_v21 }
 0x8ab   :  { %v7937_v44 = vpop.f32.mrf.mxu1 }
 0x8ac   :  { %v1719_v54 = vpack.c.bf16 %v7937_v44, %v7937_v44  ;;  %v8394_v44 = vld [vmem:[%s11125_s1 + $0x9c] sm:$0xff]  }
 0x8ad   :  { %v1704_v45 = vpop.f32.mrf.mxu1 }
 0x8af   :  { %v7938_v46 = vpop.f32.mrf.mxu1 }
 0x8b0   :  { %v8396_v46 = vld [vmem:[%s11127_s28 + $0xe8] sm:$0xff]  }
 0x8b1   :  { %v1707_v48 = vpop.f32.mrf.mxu1 }
 0x8b2   :  { %v1718_v50 = vpack.c.bf16 %v1707_v48, %v1704_v45  ;;  %v8395_v48 = vld [vmem:[%s11125_s1 + $0xa4] ss:$0 sps:$4 sm:$0x11]  }
 0x8b4   :  { %7943 = vmatprep.mubr.msk.bf16.mxu0 %vm569_vm0, %v1718_v50  ;;  %v8397_v50 = vld [vmem:[%s11127_s28 + $0xe0] sm:$0xff]  }
 0x8b5   :  { %7944 = vmatmul.mubr.msk.bf16.vlgmr.msra.gmra.mxu0 %vm569_vm0, %v1719_v54 }
 0x8b6   :  { %7948 = vmatpush3.bf16.msra.mxu0 %v9200_v35  ;;  %7963 = vmatprep.mubr.bf16.mxu0 %v8382_v52 }
 0x8b7   :  { %7949 = vmatprep.subr.bf16.mxu0 %v9203_v40 }
 0x8ba   :  { %7950 = vmatpush3.bf16.msra.mxu0 %v9203_v40 }
 0x8bb   :  { %7951 = vmatprep.subr.bf16.mxu0 %v9213_v47 }
 0x8be   :  { %7952 = vmatpush3.bf16.msra.mxu0 %v9213_v47 }
 0x8bf   :  { %7953 = vmatprep.subr.bf16.mxu0 %v9223_v56 }
 0x8c2   :  { %7954 = vmatpush3.bf16.msra.mxu0 %v9223_v56 }
 0x8c3   :  { %7955 = vmatprep.subr.bf16.mxu0 %v9230_v55 }
 0x8c6   :  { %7956 = vmatpush3.bf16.msra.mxu0 %v9230_v55 }
 0x8c7   :  { %7957 = vmatprep.subr.bf16.mxu0 %v9236_v61 }
 0x8ca   :  { %7958 = vmatpush3.bf16.msra.mxu0 %v9236_v61 }
 0x8cb   :  { %7959 = vmatprep.subr.bf16.mxu0 %v9192_v59 }
 0x8ce   :  { %7960 = vmatpush3.bf16.msra.mxu0 %v9192_v59 }
 0x8cf   :  { %7961 = vmatprep.subr.bf16.mxu0 %v9184_v49 }
 0x8d2   :  { %7962 = vmatpush3.bf16.msra.mxu0 %v9184_v49 }
 0x8d3   :  { %7995 = vmatprep.subr.bf16.mxu0 %v8384_v57 }
 0x8d5   :  { %7964 = vmatmul.mubr.bf16.vlgmr.msra.gmra.mxu0 %v8383_v58 }
 0x8d6   :  { %7996 = vmatpush3.bf16.msra.mxu0 %v8384_v57 }
 0x8d7   :  { %7997 = vmatprep.subr.bf16.mxu0 %v8385_v53 }
 0x8da   :  { %7998 = vmatpush3.bf16.msra.mxu0 %v8385_v53 }
 0x8db   :  { %8003 = vmatprep.subr.bf16.mxu0 %v9200_v35 }
 0x975   :  { %v7945_v34 = vpop.f32.mrf.mxu0 }
 0x976   :  { %v1793_v43 = vadd.f32 %v7945_v34, %v1655_v33 }
 0x977   :  { %v1777_v51 = vpop.f32.mrf.mxu0 }
 0x978   :  { %v1791_v60 = vadd.f32 %v1777_v51, %v1653_v38 }
 0x979   :  { %v7946_v37 = vpop.f32.mrf.mxu0 }
 0x97b   :  { %v1780_v62 = vpop.f32.mrf.mxu0 }
 0x97c   :  { %v1792_v63 = vadd.f32 %v1780_v62, %v1654_v42 }
 0x995   :  { %v7965_v0 = vpop.f32.mrf.mxu0 }
 0x996   :  { %v1857_v6 = vpack.c.bf16 %v7965_v0, %v7965_v0  ;;  %v8398_v0 = vld [vmem:[%s11125_s1 + $0xa8] sm:$0xff]  }
 0x997   :  { %v1842_v1 = vpop.f32.mrf.mxu0 }
 0x999   :  { %v7966_v2 = vpop.f32.mrf.mxu0 }
 0x99a   :  { %v8399_v2 = vld [vmem:[%s11125_s1 + $0xb0] ss:$0 sps:$4 sm:$0x11]  }
 0x99b   :  { %v1845_v3 = vpop.f32.mrf.mxu0 }
 0x99c   :  { %v1856_v4 = vpack.c.bf16 %v1845_v3, %v1842_v1 }
 0x99e   :  { %7971 = vmatprep.mubr.msk.bf16.mxu1 %vm569_vm0, %v1856_v4 }
 0x99f   :  { %7972 = vmatmul.mubr.msk.bf16.vlgmr.msra.gmra.mxu1 %vm569_vm0, %v1857_v6 }
 0x9a0   :  { %7976 = vmatpush3.bf16.msra.mxu1 %v9200_v35  ;;  %7991 = vmatprep.mubr.bf16.mxu1 %v8386_v5 }
 0x9a1   :  { %7977 = vmatprep.subr.bf16.mxu1 %v9203_v40 }
 0x9a4   :  { %7978 = vmatpush3.bf16.msra.mxu1 %v9203_v40 }
 0x9a5   :  { %7979 = vmatprep.subr.bf16.mxu1 %v9213_v47 }
 0x9a8   :  { %7980 = vmatpush3.bf16.msra.mxu1 %v9213_v47 }
 0x9a9   :  { %7981 = vmatprep.subr.bf16.mxu1 %v9223_v56 }
 0x9ac   :  { %7982 = vmatpush3.bf16.msra.mxu1 %v9223_v56 }
 0x9ad   :  { %7983 = vmatprep.subr.bf16.mxu1 %v9230_v55 }
 0x9b0   :  { %7984 = vmatpush3.bf16.msra.mxu1 %v9230_v55 }
 0x9b1   :  { %7985 = vmatprep.subr.bf16.mxu1 %v9236_v61 }
 0x9b4   :  { %7986 = vmatpush3.bf16.msra.mxu1 %v9236_v61 }
 0x9b5   :  { %7987 = vmatprep.subr.bf16.mxu1 %v9192_v59 }
 0x9b8   :  { %7988 = vmatpush3.bf16.msra.mxu1 %v9192_v59 }
 0x9b9   :  { %7989 = vmatprep.subr.bf16.mxu1 %v9184_v49 }
 0x9bc   :  { %7990 = vmatpush3.bf16.msra.mxu1 %v9184_v49 }
 0x9bd   :  { %8023 = vmatprep.subr.bf16.mxu1 %v8388_v7 }
 0x9bf   :  { %7992 = vmatmul.mubr.bf16.vlgmr.msra.gmra.mxu1 %v8387_v8 }
 0x9c0   :  { %8024 = vmatpush3.bf16.msra.mxu1 %v8388_v7 }
 0x9c1   :  { %8025 = vmatprep.subr.bf16.mxu1 %v8389_v9 }
 0x9c4   :  { %8026 = vmatpush3.bf16.msra.mxu1 %v8389_v9 }
 0x9c5   :  { %8031 = vmatprep.subr.bf16.mxu1 %v9200_v35 }
 0xa5f   :  { %v7973_v10 = vpop.f32.mrf.mxu1 }
 0xa60   :  { %v1931_v11 = vadd.f32 %v7973_v10, %v1793_v43 }
 0xa61   :  { %v1915_v12 = vpop.f32.mrf.mxu1 }
 0xa62   :  { %v1929_v13 = vadd.f32 %v1915_v12, %v1791_v60 }
 0xa63   :  { %v7974_v14 = vpop.f32.mrf.mxu1 }
 0xa65   :  { %v1918_v15 = vpop.f32.mrf.mxu1 }
 0xa66   :  { %v1930_v16 = vadd.f32 %v1918_v15, %v1792_v63  ;;  %v8400_v15 = vld [vmem:[%s11125_s1 + $0xb4] sm:$0xff]  }
 0xa7f   :  { %v7993_v17 = vpop.f32.mrf.mxu1 }
 0xa80   :  { %v1995_v23 = vpack.c.bf16 %v7993_v17, %v7993_v17 }
 0xa81   :  { %v1980_v18 = vpop.f32.mrf.mxu1 }
 0xa83   :  { %v7994_v19 = vpop.f32.mrf.mxu1 }
 0xa85   :  { %v1983_v20 = vpop.f32.mrf.mxu1 }
 0xa86   :  { %v1994_v21 = vpack.c.bf16 %v1983_v20, %v1980_v18 }
 0xa88   :  { %7999 = vmatprep.mubr.msk.bf16.mxu0 %vm569_vm0, %v1994_v21 }
 0xa89   :  { %8000 = vmatmul.mubr.msk.bf16.vlgmr.msra.gmra.mxu0 %vm569_vm0, %v1995_v23 }
 0xa8a   :  { %8004 = vmatpush3.bf16.msra.mxu0 %v9200_v35  ;;  %8019 = vmatprep.mubr.bf16.mxu0 %v8390_v22 }
 0xa8b   :  { %8005 = vmatprep.subr.bf16.mxu0 %v9203_v40 }
 0xa8e   :  { %8006 = vmatpush3.bf16.msra.mxu0 %v9203_v40 }
 0xa8f   :  { %8007 = vmatprep.subr.bf16.mxu0 %v9213_v47 }
 0xa92   :  { %8008 = vmatpush3.bf16.msra.mxu0 %v9213_v47 }
 0xa93   :  { %8009 = vmatprep.subr.bf16.mxu0 %v9223_v56 }
 0xa96   :  { %8010 = vmatpush3.bf16.msra.mxu0 %v9223_v56 }
 0xa97   :  { %8011 = vmatprep.subr.bf16.mxu0 %v9230_v55 }
 0xa9a   :  { %8012 = vmatpush3.bf16.msra.mxu0 %v9230_v55 }
 0xa9b   :  { %8013 = vmatprep.subr.bf16.mxu0 %v9236_v61 }
 0xa9e   :  { %8014 = vmatpush3.bf16.msra.mxu0 %v9236_v61 }
 0xa9f   :  { %8015 = vmatprep.subr.bf16.mxu0 %v9192_v59 }
 0xaa2   :  { %8016 = vmatpush3.bf16.msra.mxu0 %v9192_v59 }
 0xaa3   :  { %8017 = vmatprep.subr.bf16.mxu0 %v9184_v49 }
 0xaa6   :  { %8018 = vmatpush3.bf16.msra.mxu0 %v9184_v49 }
 0xaa7   :  { %8051 = vmatprep.subr.bf16.mxu0 %v8392_v24 }
 0xaa9   :  { %8020 = vmatmul.mubr.bf16.vlgmr.msra.gmra.mxu0 %v8391_v25  ;;  %v8960_v25 = vmov 0.0  }
 0xaaa   :  { %8052 = vmatpush3.bf16.msra.mxu0 %v8392_v24 }
 0xaab   :  { %8053 = vmatprep.subr.bf16.mxu0 %v8393_v26 }
 0xaae   :  { %8054 = vmatpush3.bf16.msra.mxu0 %v8393_v26  ;;  %v8404_v26 = vld [vmem:[%s11098_s7 + $0x38] sm:$0xff]  }
 0xaaf   :  { %8059 = vmatprep.subr.bf16.mxu0 %v9200_v35 }
 0xb49   :  { %v8001_v27 = vpop.f32.mrf.mxu0 }
 0xb4a   :  { %v2069_v28 = vadd.f32 %v8001_v27, %v1931_v11  ;;  %v8405_v27 = vld [vmem:[%s11098_s7 + $0x30] sm:$0xff]  }
 0xb4b   :  { %v2053_v29 = vpop.f32.mrf.mxu0 }
 0xb4c   :  { %v2067_v30 = vadd.f32 %v2053_v29, %v1929_v13  ;;  %v6817_v29 = vld [vmem:[%s11128_s26] ss:$0 sm:$0xff] }
 0xb4d   :  { %v8002_v31 = vpop.f32.mrf.mxu0 }
 0xb4f   :  { %v2056_v32 = vpop.f32.mrf.mxu0 }
 0xb50   :  { %v2068_v33 = vadd.f32 %v2056_v32, %v1930_v16 }
 0xb69   :  { %v8021_v36 = vpop.f32.mrf.mxu0 }
 0xb6a   :  { %v2133_v45 = vpack.c.bf16 %v8021_v36, %v8021_v36 }
 0xb6b   :  { %v2118_v38 = vpop.f32.mrf.mxu0 }
 0xb6d   :  { %v8022_v39 = vpop.f32.mrf.mxu0 }
 0xb6f   :  { %v2121_v41 = vpop.f32.mrf.mxu0 }
 0xb70   :  { %v2132_v42 = vpack.c.bf16 %v2121_v41, %v2118_v38 }
 0xb72   :  { %8027 = vmatprep.mubr.msk.bf16.mxu1 %vm569_vm0, %v2132_v42 }
 0xb73   :  { %8028 = vmatmul.mubr.msk.bf16.vlgmr.msra.gmra.mxu1 %vm569_vm0, %v2133_v45 }
 0xb74   :  { %8032 = vmatpush3.bf16.msra.mxu1 %v9200_v35  ;;  %8047 = vmatprep.mubr.bf16.mxu1 %v8394_v44 }
 0xb75   :  { %8033 = vmatprep.subr.bf16.mxu1 %v9203_v40 }
 0xb78   :  { %8034 = vmatpush3.bf16.msra.mxu1 %v9203_v40 }
 0xb79   :  { %8035 = vmatprep.subr.bf16.mxu1 %v9213_v47 }
 0xb7c   :  { %8036 = vmatpush3.bf16.msra.mxu1 %v9213_v47 }
 0xb7d   :  { %8037 = vmatprep.subr.bf16.mxu1 %v9223_v56 }
 0xb80   :  { %8038 = vmatpush3.bf16.msra.mxu1 %v9223_v56 }
 0xb81   :  { %8039 = vmatprep.subr.bf16.mxu1 %v9230_v55 }
 0xb84   :  { %8040 = vmatpush3.bf16.msra.mxu1 %v9230_v55 }
 0xb85   :  { %8041 = vmatprep.subr.bf16.mxu1 %v9236_v61 }
 0xb88   :  { %8042 = vmatpush3.bf16.msra.mxu1 %v9236_v61 }
 0xb89   :  { %8043 = vmatprep.subr.bf16.mxu1 %v9192_v59 }
 0xb8c   :  { %8044 = vmatpush3.bf16.msra.mxu1 %v9192_v59 }
 0xb8d   :  { %8045 = vmatprep.subr.bf16.mxu1 %v9184_v49 }
 0xb90   :  { %8046 = vmatpush3.bf16.msra.mxu1 %v9184_v49 }
 0xb91   :  { %8079 = vmatprep.subr.bf16.mxu1 %v8396_v46 }
 0xb93   :  { %8048 = vmatmul.mubr.bf16.vlgmr.msra.gmra.mxu1 %v8395_v48 }
 0xb94   :  { %8080 = vmatpush3.bf16.msra.mxu1 %v8396_v46 }
 0xb95   :  { %8081 = vmatprep.subr.bf16.mxu1 %v8397_v50 }
 0xb98   :  { %8082 = vmatpush3.bf16.msra.mxu1 %v8397_v50 }
 0xb99   :  { %8087 = vmatprep.subr.bf16.mxu1 %v9200_v35 }
 0xc33   :  { %v8029_v52 = vpop.f32.mrf.mxu1 }
 0xc34   :  { %v2207_v54 = vadd.f32 %v8029_v52, %v2069_v28 }
 0xc35   :  { %v2191_v57 = vpop.f32.mrf.mxu1 }
 0xc36   :  { %v2205_v58 = vadd.f32 %v2191_v57, %v2067_v30  ;;  %v6819_v57 = vld [vmem:[%s11097_s6 + $0x1] sm:$0x1] }
 0xc37   :  { %v8030_v53 = vpop.f32.mrf.mxu1 }
 0xc38   :  { %v6854_v53 = vld [vmem:[%s11097_s6 + $0x3] sm:$0x1] }
 0xc39   :  { %v2194_v34 = vpop.f32.mrf.mxu1 }
 0xc3a   :  { %v2206_v43 = vadd.f32 %v2194_v34, %v2068_v33  ;;  %v8406_v34 = vld [vmem:[%s11098_s7 + $0x28] sm:$0xff]  }
 0xc53   :  { %v8049_v51 = vpop.f32.mrf.mxu1 }
 0xc54   :  { %v2271_v1 = vpack.c.bf16 %v8049_v51, %v8049_v51  ;;  %v8409_v51 = vld [vmem:[%s11098_s7 + $0x78] sm:$0xff]  }
 0xc55   :  { %v2256_v60 = vpop.f32.mrf.mxu1 }
 0xc57   :  { %v8050_v37 = vpop.f32.mrf.mxu1 }
 0xc58   :  { %v8413_v37 = vld [vmem:[%s11098_s7 + $0x68] sm:$0xff]  }
 0xc59   :  { %v2259_v62 = vpop.f32.mrf.mxu1 }
 0xc5a   :  { %v2270_v63 = vpack.c.bf16 %v2259_v62, %v2256_v60  ;;  %v8411_v60 = vld [vmem:[%s11098_s7 + $0x70] sm:$0xff]   ;;  %v8415_v62 = vld [vmem:[%s11098_s7 + $0x60] sm:$0xff]  }
 0xc5c   :  { %8055 = vmatprep.mubr.msk.bf16.mxu0 %vm569_vm0, %v2270_v63 }
 0xc5d   :  { %8056 = vmatmul.mubr.msk.bf16.vlgmr.msra.gmra.mxu0 %vm569_vm0, %v2271_v1 }
 0xc5e   :  { %8060 = vmatpush3.bf16.msra.mxu0 %v9200_v35  ;;  %8075 = vmatprep.mubr.bf16.mxu0 %v8398_v0 }
 0xc5f   :  { %8061 = vmatprep.subr.bf16.mxu0 %v9203_v40 }
 0xc62   :  { %8062 = vmatpush3.bf16.msra.mxu0 %v9203_v40 }
 0xc63   :  { %8063 = vmatprep.subr.bf16.mxu0 %v9213_v47 }
 0xc66   :  { %8064 = vmatpush3.bf16.msra.mxu0 %v9213_v47 }
 0xc67   :  { %8065 = vmatprep.subr.bf16.mxu0 %v9223_v56 }
 0xc6a   :  { %8066 = vmatpush3.bf16.msra.mxu0 %v9223_v56 }
 0xc6b   :  { %8067 = vmatprep.subr.bf16.mxu0 %v9230_v55 }
 0xc6e   :  { %8068 = vmatpush3.bf16.msra.mxu0 %v9230_v55 }
 0xc6f   :  { %8069 = vmatprep.subr.bf16.mxu0 %v9236_v61 }
 0xc72   :  { %8070 = vmatpush3.bf16.msra.mxu0 %v9236_v61 }
 0xc73   :  { %8071 = vmatprep.subr.bf16.mxu0 %v9192_v59 }
 0xc76   :  { %8072 = vmatpush3.bf16.msra.mxu0 %v9192_v59 }
 0xc77   :  { %8073 = vmatprep.subr.bf16.mxu0 %v9184_v49 }
 0xc7a   :  { %8074 = vmatpush3.bf16.msra.mxu0 %v9184_v49 }
 0xc7d   :  { %8076 = vmatmul.mubr.bf16.vlgmr.msra.gmra.mxu0 %v8399_v2 }
 0xd1d   :  { %v8057_v3 = vpop.f32.mrf.mxu0 }
 0xd1e   :  { %v2345_v4 = vadd.f32 %v8057_v3, %v2207_v54  ;;  %v2637_v54 = vld [vmem:[%s11097_s6] sm:$0x1] }
 0xd1f   :  { %v2329_v5 = vpop.f32.mrf.mxu0 }
 0xd20   :  { %v2343_v6 = vadd.f32 %v2329_v5, %v2205_v58  ;;  %v6839_v58 = vld [vmem:[%s11097_s6 + $0x2] sm:$0x1] }
 0xd21   :  { %v8058_v7 = vpop.f32.mrf.mxu0 }
 0xd23   :  { %v2332_v8 = vpop.f32.mrf.mxu0 }
 0xd24   :  { %v2344_v9 = vadd.f32 %v2332_v8, %v2206_v43  ;;  %v8407_v43 = vld [vmem:[%s11098_s7 + $0x20] sm:$0xff]   ;;  %v8410_v8 = vld [vmem:[%s11098_s7 + $0x10] sm:$0xff]  }
 0xd3d   :  { %v8077_v10 = vpop.f32.mrf.mxu0 }
 0xd3e   :  { %v2409_v16 = vpack.c.bf16 %v8077_v10, %v8077_v10 }
 0xd3f   :  { %v2394_v11 = vpop.f32.mrf.mxu0 }
 0xd41   :  { %v8078_v12 = vpop.f32.mrf.mxu0 }
 0xd43   :  { %v2397_v13 = vpop.f32.mrf.mxu0 }
 0xd44   :  { %v2408_v14 = vpack.c.bf16 %v2397_v13, %v2394_v11  ;;  %v8412_v11 = vld [vmem:[%s11098_s7 + $0x8] sm:$0xff]  }
 0xd46   :  { %8083 = vmatprep.mubr.msk.bf16.mxu1 %vm569_vm0, %v2408_v14  ;;  %v8414_v14 = vld [vmem:[%s11098_s7] sm:$0xff]  }
 0xd47   :  { %8084 = vmatmul.mubr.msk.bf16.vlgmr.msra.gmra.mxu1 %vm569_vm0, %v2409_v16 }
 0xd48   :  { %8088 = vmatpush3.bf16.msra.mxu1 %v9200_v35  ;;  %8103 = vmatprep.mubr.bf16.mxu1 %v8400_v15  ;;  %v8401_v35 = vld [vmem:[%s11125_s1 + $0xbc] ss:$0 sps:$4 sm:$0x11]  }
 0xd49   :  { %8089 = vmatprep.subr.bf16.mxu1 %v9203_v40 }
 0xd4c   :  { %8090 = vmatpush3.bf16.msra.mxu1 %v9203_v40  ;;  %v8402_v40 = vld [vmem:[%s11127_s28 + $0xf8] sm:$0xff]  }
 0xd4d   :  { %8091 = vmatprep.subr.bf16.mxu1 %v9213_v47  ;;  %8107 = vmatprep.subr.bf16.mxu0 %v8402_v40 }
 0xd4e   :  { %8108 = vmatpush3.bf16.msra.mxu0 %v8402_v40 }
 0xd50   :  { %8092 = vmatpush3.bf16.msra.mxu1 %v9213_v47  ;;  %v8403_v47 = vld [vmem:[%s11127_s28 + $0xf0] sm:$0xff]  }
 0xd51   :  { %8093 = vmatprep.subr.bf16.mxu1 %v9223_v56  ;;  %8109 = vmatprep.subr.bf16.mxu0 %v8403_v47 }
 0xd52   :  { %8110 = vmatpush3.bf16.msra.mxu0 %v8403_v47 }
 0xd53   :  { %8115 = vmatprep.subr.bf16.mxu0 %v8960_v25 }
 0xd54   :  { %8094 = vmatpush3.bf16.msra.mxu1 %v9223_v56 }
 0xd55   :  { %8095 = vmatprep.subr.bf16.mxu1 %v9230_v55 }
 0xd58   :  { %8096 = vmatpush3.bf16.msra.mxu1 %v9230_v55 }
 0xd59   :  { %8097 = vmatprep.subr.bf16.mxu1 %v9236_v61 }
 0xd5c   :  { %8098 = vmatpush3.bf16.msra.mxu1 %v9236_v61 }
 0xd5d   :  { %8099 = vmatprep.subr.bf16.mxu1 %v9192_v59 }
 0xd60   :  { %8100 = vmatpush3.bf16.msra.mxu1 %v9192_v59 }
 0xd61   :  { %8101 = vmatprep.subr.bf16.mxu1 %v9184_v49 }
 0xd64   :  { %8102 = vmatpush3.bf16.msra.mxu1 %v9184_v49 }
 0xd65   :  { %8131 = vmatprep.subr.bf16.mxu1 %v8960_v25 }
 0xd67   :  { %8104 = vmatmul.mubr.bf16.vlgmr.msra.gmra.mxu1 %v8401_v35  ;;  %v8416_v35 = vld [vmem:[%s11098_s7 + $0x58] sm:$0xff]  }
 0xd68   :  { %8139 = vmatprep.mubr.msk.bf16.mxu1 %vm8961_vm1, %v8960_v25  ;;  %8132 = vmatpush3.bf16.msra.mxu1 %v8404_v26  ;;  %v8424_v26 = vld [vmem:[%s11098_s7 + $0x98] sm:$0xff]  }
 0xd69   :  { %8133 = vmatprep.subr.bf16.mxu1 %v8960_v25 }
 0xd6c   :  { %8134 = vmatpush3.bf16.msra.mxu1 %v8405_v27  ;;  %v8425_v27 = vld [vmem:[%s11098_s7 + $0x90] sm:$0xff]  }
 0xd6d   :  { %8135 = vmatprep.subr.bf16.mxu1 %v8960_v25 }
 0xd70   :  { %8136 = vmatpush3.bf16.msra.mxu1 %v8406_v34 }
 0xd71   :  { %8137 = vmatprep.subr.bf16.mxu1 %v8960_v25 }
 0xd74   :  { %8138 = vmatpush3.bf16.msra.mxu1 %v8407_v43 }
 0xd75   :  { %8143 = vmatprep.subr.bf16.mxu1 %v8960_v25 }
 0xe07   :  { %v8085_v59 = vpop.f32.mrf.mxu1 }
 0xe08   :  { %v2483_v56 = vadd.f32 %v8085_v59, %v2345_v4  ;;  %v8408_v4 = vld [vmem:[%s11098_s7 + $0x18] sm:$0xff]  }
 0xe09   :  { %v2467_v55 = vpop.f32.mrf.mxu1 }
 0xe0a   :  { %v2481_v61 = vadd.f32 %v2467_v55, %v2343_v6 }
 0xe0b   :  { %v8086_v17 = vpop.f32.mrf.mxu1 }
 0xe0c   :  { %v8418_v17 = vld [vmem:[%s11098_s7 + $0x48] sm:$0xff]  }
 0xe0d   :  { %v2470_v18 = vpop.f32.mrf.mxu1 }
 0xe0e   :  { %v2482_v49 = vadd.f32 %v2470_v18, %v2344_v9  ;;  %v6884_v18 = vld [vmem:[%s11097_s6 + $0x5] sm:$0x1] }
 0xe27   :  { %v8105_v19 = vpop.f32.mrf.mxu1 }
 0xe28   :  { %v2547_v24 = vpack.c.bf16 %v8105_v19, %v8105_v19 }
 0xe29   :  { %v2532_v20 = vpop.f32.mrf.mxu1 }
 0xe2b   :  { %v8106_v21 = vpop.f32.mrf.mxu1 }
 0xe2c   :  { %v8420_v21 = vld [vmem:[%s11098_s7 + $0xb8] sm:$0xff]  }
 0xe2d   :  { %v2535_v22 = vpop.f32.mrf.mxu1 }
 0xe2e   :  { %v2546_v23 = vpack.c.bf16 %v2535_v22, %v2532_v20  ;;  %v6869_v20 = vld [vmem:[%s11097_s6 + $0x4] sm:$0x1]  ;;  %v8421_v22 = vld [vmem:[%s11098_s7 + $0xb0] sm:$0xff]  }
 0xe30   :  { %8111 = vmatprep.mubr.msk.bf16.mxu0 %vm569_vm0, %v2546_v23  ;;  %v8422_v23 = vld [vmem:[%s11098_s7 + $0xa8] sm:$0xff]  }
 0xe31   :  { %8112 = vmatmul.mubr.msk.bf16.vlgmr.msra.gmra.mxu0 %vm569_vm0, %v2547_v24  ;;  %v8423_v24 = vld [vmem:[%s11098_s7 + $0xa0] sm:$0xff]  }
 0xe32   :  { %8119 = vmatprep.mubr.msk.bf16.mxu0 %vm8961_vm1, %v8960_v25 }
 0xef1   :  { %v8113_v28 = vpop.f32.mrf.mxu0 }
 0xef2   :  { %v2621_v30 = vadd.f32 %v8113_v28, %v2483_v56  ;;  %v8417_v56 = vld [vmem:[%s11098_s7 + $0x50] sm:$0xff]   ;;  %v8426_v28 = vld [vmem:[%s11098_s7 + $0x88] sm:$0xff]  }
 0xef3   :  { %v2605_v31 = vpop.f32.mrf.mxu0 }
 0xef4   :  { %v2631_v32 = vadd.f32 %v6817_v29, %v2621_v30  ;;  %v2619_v33 = vadd.f32 %v2605_v31, %v2481_v61 }
 0xef5   :  { %v8114_v36 = vpop.f32.mrf.mxu0 }
 0xef6   :  { %v2634_v38 = vmax.f32 %v2631_v32, 0.0  ;;  %v2629_v42 = vadd.f32 %v6817_v29, %v2619_v33 }
 0xef7   :  { %v2608_v39 = vpop.f32.mrf.mxu0 }
 0xef8   :  { %v2636_v41 = vpack.c.bf16 %v2634_v38, %v2634_v38  ;;  %v2620_v44 = vadd.f32 %v2608_v39, %v2482_v49  ;;  %v2632_v48 = vmax.f32 %v2629_v42, 0.0  ;;  %v8419_v49 = vld [vmem:[%s11098_s7 + $0x40] sm:$0xff]  }
 0xefa   :  { %v9723_v45 = vsel %vm2642_vm2, %v2636_v41, 0  ;;  %v2630_v46 = vadd.f32 %v6817_v29, %v2620_v44  ;;  %v8427_v29 = vld [vmem:[%s11098_s7 + $0x80] sm:$0xff]  }
 0xefb   :  { %8116 = vmatpush3.bf16.msra.mxu0 %v9723_v45 }
 0xefc   :  { %v2633_v50 = vmax.f32 %v2630_v46, 0.0  ;;  %8117 = vmatprep.subr.bf16.mxu0 %v8960_v25 }
 0xefe   :  { %v9727_v52 = vpack.c.bf16 %v2633_v50, %v2632_v48 }
 0xf00   :  { %8118 = vmatpush3.bf16.msra.mxu0 %v9727_v52 }
 0xf01   :  { %8123 = vmatprep.subr.bf16.mxu0 %v8960_v25 }
 0xf03   :  { %8120 = vmatmul.mubr.msk.bf16.vlgmr.msra.gmra.mxu0 %vm2638_vm3, %v2637_v54 }
 0xf04   :  { %8124 = vmatpush3.bf16.msra.mxu0 %v9723_v45  ;;  %8127 = vmatprep.mubr.msk.bf16.mxu0 %vm8961_vm1, %v8960_v25 }
 0xf05   :  { %8125 = vmatprep.subr.bf16.mxu0 %v8960_v25 }
 0xf08   :  { %8126 = vmatpush3.bf16.msra.mxu0 %v9727_v52 }
 0xf09   :  { %8155 = vmatprep.subr.bf16.mxu0 %v8960_v25 }
 0xf0b   :  { %8128 = vmatmul.mubr.msk.bf16.vlgmr.msra.gmra.mxu0 %vm2638_vm3, %v6819_v57 }
 0xf0c   :  { %8156 = vmatpush3.bf16.msra.mxu0 %v9723_v45  ;;  %8159 = vmatprep.mubr.msk.bf16.mxu0 %vm8961_vm1, %v8960_v25 }
 0xf0d   :  { %8157 = vmatprep.subr.bf16.mxu0 %v8960_v25 }
 0xf10   :  { %8158 = vmatpush3.bf16.msra.mxu0 %v9727_v52 }
 0xf11   :  { %8175 = vmatprep.subr.bf16.mxu0 %v8960_v25 }
 0xf13   :  { %8160 = vmatmul.mubr.msk.bf16.vlgmr.msra.gmra.mxu0 %vm2638_vm3, %v6839_v58 }
 0xf14   :  { %8176 = vmatpush3.bf16.msra.mxu0 %v9723_v45  ;;  %8179 = vmatprep.mubr.msk.bf16.mxu0 %vm8961_vm1, %v8960_v25 }
 0xf15   :  { %8177 = vmatprep.subr.bf16.mxu0 %v8960_v25 }
 0xf18   :  { %8178 = vmatpush3.bf16.msra.mxu0 %v9727_v52 }
 0xf19   :  { %8183 = vmatprep.subr.bf16.mxu0 %v8960_v25 }
 0xf1b   :  { %8180 = vmatmul.mubr.msk.bf16.vlgmr.msra.gmra.mxu0 %vm2638_vm3, %v6854_v53 }
 0xf1c   :  { %8191 = vmatprep.mubr.msk.bf16.mxu0 %vm8961_vm1, %v8960_v25  ;;  %8184 = vmatpush3.bf16.msra.mxu0 %v8409_v51  ;;  %v6914_v51 = vld [vmem:[%s11097_s6 + $0x7] sm:$0x1] }
 0xf1d   :  { %8185 = vmatprep.subr.bf16.mxu0 %v8960_v25 }
 0xf20   :  { %8186 = vmatpush3.bf16.msra.mxu0 %v8411_v60  ;;  %v8429_v60 = vld [vmem:[%s11098_s7 + $0xf8] sm:$0xff]  }
 0xf21   :  { %8187 = vmatprep.subr.bf16.mxu0 %v8960_v25 }
 0xf24   :  { %8188 = vmatpush3.bf16.msra.mxu0 %v8413_v37 }
 0xf25   :  { %8189 = vmatprep.subr.bf16.mxu0 %v8960_v25 }
 0xf28   :  { %8190 = vmatpush3.bf16.msra.mxu0 %v8415_v62 }
 0xf29   :  { %8215 = vmatprep.subr.bf16.mxu0 %v8960_v25 }
 0xfc3   :  { %v2680_v63 = vpop.f32.mrf.mxu0 }
 0xfc4   :  { %v2686_v40 = vpack.c.bf16 %v2680_v63, %v2680_v63 }
 0xfc5   :  { %v8121_v0 = vpop.f32.mrf.mxu0 }
 0xfc7   :  { %v2683_v1 = vpop.f32.mrf.mxu0 }
 0xfc9   :  { %v8122_v2 = vpop.f32.mrf.mxu0 }
 0xfcb   :  { %v2734_v3 = vpop.f32.mrf.mxu0 }
 0xfcc   :  { %v2740_v5 = vpack.c.bf16 %v2734_v3, %v2734_v3 }
 0xfcd   :  { %v8129_v6 = vpop.f32.mrf.mxu0 }
 0xfce   :  { %8140 = vmatmul.mubr.msk.bf16.vlgmr.msra.gmra.mxu1 %vm2774_vm4, %v2740_v5 }
 0xfcf   :  { %8144 = vmatpush3.bf16.msra.mxu1 %v8408_v4  ;;  %v2737_v7 = vpop.f32.mrf.mxu0  ;;  %8151 = vmatprep.mubr.msk.bf16.mxu1 %vm8961_vm1, %v8960_v25 }
 0xfd0   :  { %8145 = vmatprep.subr.bf16.mxu1 %v8960_v25  ;;  %v6899_v7 = vld [vmem:[%s11097_s6 + $0x6] sm:$0x1] }
 0xfd1   :  { %v8130_v9 = vpop.f32.mrf.mxu0 }
 0xfd2   :  { %v8430_v9 = vld [vmem:[%s11098_s7 + $0xd0] sm:$0xff]  }
 0xfd3   :  { %8146 = vmatpush3.bf16.msra.mxu1 %v8410_v8  ;;  %v2924_v10 = vpop.f32.mrf.mxu0  ;;  %v8428_v8 = vld [vmem:[%s11098_s7 + $0xd8] sm:$0xff]  }
 0xfd4   :  { %8147 = vmatprep.subr.bf16.mxu1 %v8960_v25  ;;  %v2930_v19 = vpack.c.bf16 %v2924_v10, %v2924_v10  ;;  %v8431_v10 = vld [vmem:[%s11098_s7 + $0xf0] sm:$0xff]  }
 0xfd5   :  { %v8161_v12 = vpop.f32.mrf.mxu0 }
 0xfd6   :  { %v8433_v12 = vld [vmem:[%s11098_s7 + $0xe8] sm:$0xff]  }
 0xfd7   :  { %8148 = vmatpush3.bf16.msra.mxu1 %v8412_v11  ;;  %v2927_v13 = vpop.f32.mrf.mxu0  ;;  %v8432_v11 = vld [vmem:[%s11098_s7 + $0xc8] sm:$0xff]  }
 0xfd8   :  { %8149 = vmatprep.subr.bf16.mxu1 %v8960_v25  ;;  %v8434_v13 = vld [vmem:[%s11098_s7 + $0xc0] sm:$0xff]  }
 0xfd9   :  { %v8162_v15 = vpop.f32.mrf.mxu0 }
 0xfdb   :  { %8150 = vmatpush3.bf16.msra.mxu1 %v8414_v14  ;;  %v3047_v16 = vpop.f32.mrf.mxu0  ;;  %v8435_v14 = vld [vmem:[%s11098_s7 + $0xe0] sm:$0xff]  }
 0xfdc   :  { %v3053_v47 = vpack.c.bf16 %v3047_v16, %v3047_v16  ;;  %8163 = vmatprep.subr.bf16.mxu1 %v8960_v25 }
 0xfdd   :  { %v8181_v59 = vpop.f32.mrf.mxu0 }
 0xfde   :  { %8152 = vmatmul.mubr.msk.bf16.vlgmr.msra.gmra.mxu1 %vm2774_vm4, %v2686_v40  ;;  %8192 = vmatmul.mubr.msk.bf16.vlgmr.msra.gmra.mxu0 %vm2774_vm4, %v3053_v47 }
 0xfdf   :  { %8164 = vmatpush3.bf16.msra.mxu1 %v8416_v35  ;;  %8216 = vmatpush3.bf16.msra.mxu0 %v9723_v45  ;;  %v3050_v55 = vpop.f32.mrf.mxu0 }
 0xfe0   :  { %8165 = vmatprep.subr.bf16.mxu1 %v8960_v25  ;;  %8217 = vmatprep.subr.bf16.mxu0 %v8960_v25 }
 0xfe1   :  { %8219 = vmatprep.mubr.msk.bf16.mxu0 %vm8961_vm1, %v8960_v25  ;;  %8171 = vmatprep.mubr.msk.bf16.mxu1 %vm8961_vm1, %v8960_v25  ;;  %v8182_v61 = vpop.f32.mrf.mxu0 }
 0xfe3   :  { %8166 = vmatpush3.bf16.msra.mxu1 %v8417_v56  ;;  %8218 = vmatpush3.bf16.msra.mxu0 %v9727_v52 }
 0xfe4   :  { %8167 = vmatprep.subr.bf16.mxu1 %v8960_v25  ;;  %8223 = vmatprep.subr.bf16.mxu0 %v8960_v25 }
 0xfe6   :  { %8220 = vmatmul.mubr.msk.bf16.vlgmr.msra.gmra.mxu0 %vm2638_vm3, %v6884_v18 }
 0xfe7   :  { %8168 = vmatpush3.bf16.msra.mxu1 %v8418_v17  ;;  %8231 = vmatprep.mubr.msk.bf16.mxu0 %vm8961_vm1, %v8960_v25 }
 0xfe8   :  { %8169 = vmatprep.subr.bf16.mxu1 %v8960_v25  ;;  %8224 = vmatpush3.bf16.msra.mxu0 %v8420_v21 }
 0xfe9   :  { %8225 = vmatprep.subr.bf16.mxu0 %v8960_v25 }
 0xfeb   :  { %8170 = vmatpush3.bf16.msra.mxu1 %v8419_v49 }
 0xfec   :  { %8195 = vmatprep.subr.bf16.mxu1 %v8960_v25  ;;  %8226 = vmatpush3.bf16.msra.mxu0 %v8421_v22 }
 0xfed   :  { %8227 = vmatprep.subr.bf16.mxu0 %v8960_v25 }
 0xfee   :  { %8172 = vmatmul.mubr.msk.bf16.vlgmr.msra.gmra.mxu1 %vm2774_vm4, %v2930_v19 }
 0xfef   :  { %8196 = vmatpush3.bf16.msra.mxu1 %v9723_v45  ;;  %8199 = vmatprep.mubr.msk.bf16.mxu1 %vm8961_vm1, %v8960_v25 }
 0xff0   :  { %8197 = vmatprep.subr.bf16.mxu1 %v8960_v25  ;;  %8228 = vmatpush3.bf16.msra.mxu0 %v8422_v23 }
 0xff1   :  { %8229 = vmatprep.subr.bf16.mxu0 %v8960_v25 }
 0xff3   :  { %8198 = vmatpush3.bf16.msra.mxu1 %v9727_v52 }
 0xff4   :  { %8203 = vmatprep.subr.bf16.mxu1 %v8960_v25  ;;  %8230 = vmatpush3.bf16.msra.mxu0 %v8423_v24 }
 0xff5   :  { %8255 = vmatprep.subr.bf16.mxu0 %v8960_v25 }
 0xff6   :  { %8200 = vmatmul.mubr.msk.bf16.vlgmr.msra.gmra.mxu1 %vm2638_vm3, %v6869_v20 }
 0xff7   :  { %8211 = vmatprep.mubr.msk.bf16.mxu1 %vm8961_vm1, %v8960_v25  ;;  %8204 = vmatpush3.bf16.msra.mxu1 %v8424_v26 }
 0xff8   :  { %8205 = vmatprep.subr.bf16.mxu1 %v8960_v25 }
 0xffb   :  { %8206 = vmatpush3.bf16.msra.mxu1 %v8425_v27 }
 0xffc   :  { %8207 = vmatprep.subr.bf16.mxu1 %v8960_v25 }
 0xfff   :  { %8208 = vmatpush3.bf16.msra.mxu1 %v8426_v28  ;;  %v6929_v28 = vld [vmem:[%s11097_s6 + $0x8] sm:$0x1] }
0x1000   :  { %8209 = vmatprep.subr.bf16.mxu1 %v8960_v25 }
0x1003   :  { %8210 = vmatpush3.bf16.msra.mxu1 %v8427_v29  ;;  %v8436_v29 = vld [vmem:[%s11098_s7 + $0x118] sm:$0xff]  }
0x1004   :  { %8235 = vmatprep.subr.bf16.mxu1 %v8960_v25 }
0x108e   :  { %v2812_v30 = vpop.f32.mrf.mxu1 }
0x1090   :  { %v8141_v31 = vpop.f32.mrf.mxu1 }
0x1091   :  { %v8440_v31 = vld [vmem:[%s11100_s9 + $0x60] ss:$16 sps:$4 sm:$0xff]  }
0x1092   :  { %v2815_v32 = vpop.f32.mrf.mxu1 }
0x1093   :  { %v8442_v32 = vld [vmem:[%s11100_s9 + $0x64] ss:$16 sps:$4 sm:$0xff]  }
0x1094   :  { %v8142_v33 = vpop.f32.mrf.mxu1 }
0x1095   :  { %v8445_v33 = vld [vmem:[%s11100_s9 + $0x6c] ss:$16 sps:$4 sm:$0xff]  }
0x109e   :  { %v2879_v36 = vpop.f32.mrf.mxu1  ;;  %v3124_v38 = vpop.f32.mrf.mxu0 }
0x109f   :  { %v2880_v39 = vadd.f32 %v2879_v36, %v2812_v30  ;;  %v8439_v30 = vld [vmem:[%s11098_s7 + $0x100] sm:$0xff]  }
0x10a0   :  { %v8153_v41 = vpop.f32.mrf.mxu1  ;;  %v8193_v42 = vpop.f32.mrf.mxu0  ;;  %v8446_v36 = vld [vmem:[%s11100_s9 + $0x40] ss:$16 sps:$4 sm:$0xff]  }
0x10a2   :  { %v2882_v44 = vpop.f32.mrf.mxu1  ;;  %v3127_v46 = vpop.f32.mrf.mxu0 }
0x10a4   :  { %v8154_v48 = vpop.f32.mrf.mxu1  ;;  %v8194_v50 = vpop.f32.mrf.mxu0 }
0x10a6   :  { %v3293_v54 = vpop.f32.mrf.mxu0 }
0x10a7   :  { %v3299_v57 = vpack.c.bf16 %v3293_v54, %v3293_v54 }
0x10a8   :  { %v8221_v58 = vpop.f32.mrf.mxu0 }
0x10a9   :  { %8232 = vmatmul.mubr.msk.bf16.vlgmr.msra.gmra.mxu0 %vm2774_vm4, %v3299_v57 }
0x10aa   :  { %8256 = vmatpush3.bf16.msra.mxu0 %v9723_v45  ;;  %8259 = vmatprep.mubr.msk.bf16.mxu0 %vm8961_vm1, %v8960_v25  ;;  %v3296_v53 = vpop.f32.mrf.mxu0 }
0x10ab   :  { %8257 = vmatprep.subr.bf16.mxu0 %v8960_v25  ;;  %v8443_v53 = vld [vmem:[%s11100_s9 + $0x68] ss:$16 sps:$4 sm:$0xff]  }
0x10ac   :  { %v8222_v34 = vpop.f32.mrf.mxu0 }
0x10ae   :  { %v3001_v43 = vpop.f32.mrf.mxu1  ;;  %8258 = vmatpush3.bf16.msra.mxu0 %v9727_v52 }
0x10af   :  { %v3007_v37 = vadd.f32 %v3001_v43, %v2880_v39  ;;  %8263 = vmatprep.subr.bf16.mxu0 %v8960_v25  ;;  %v8451_v43 = vld [vmem:[%s11100_s9 + $0x4c] ss:$16 sps:$4 sm:$0xff]  }
0x10b0   :  { %v8173_v62 = vpop.f32.mrf.mxu1 }
0x10b1   :  { %8260 = vmatmul.mubr.msk.bf16.vlgmr.msra.gmra.mxu0 %vm2638_vm3, %v6914_v51  ;;  %v3130_v63 = vadd.f32 %v3124_v38, %v3007_v37  ;;  %v8449_v37 = vld [vmem:[%s11100_s9 + $0x48] ss:$16 sps:$4 sm:$0xff]  }
0x10b2   :  { %v3004_v0 = vpop.f32.mrf.mxu1  ;;  %8264 = vmatpush3.bf16.msra.mxu0 %v8429_v60  ;;  %8271 = vmatprep.mubr.msk.bf16.mxu0 %vm8961_vm1, %v8960_v25 }
0x10b3   :  { %8265 = vmatprep.subr.bf16.mxu0 %v8960_v25  ;;  %v8457_v0 = vld [vmem:[%s11100_s9 + $0x2c] ss:$16 sps:$4 sm:$0xff]  }
0x10b4   :  { %v8174_v1 = vpop.f32.mrf.mxu1 }
0x10b5   :  { %v8452_v1 = vld [vmem:[%s11100_s9 + $0x20] ss:$16 sps:$4 sm:$0xff]  }
0x10b6   :  { %v3170_v2 = vpop.f32.mrf.mxu1  ;;  %8266 = vmatpush3.bf16.msra.mxu0 %v8431_v10  ;;  %v4164_v10 = vld [vmem:[%s11103_s12 + $0x10] sm:$0xff] }
0x10b7   :  { %v3176_v3 = vpack.c.bf16 %v3170_v2, %v3170_v2  ;;  %8267 = vmatprep.subr.bf16.mxu0 %v8960_v25  ;;  %v8455_v2 = vld [vmem:[%s11100_s9 + $0x28] ss:$16 sps:$4 sm:$0xff]  }
0x10b8   :  { %v8201_v4 = vpop.f32.mrf.mxu1 }
0x10b9   :  { %8212 = vmatmul.mubr.msk.bf16.vlgmr.msra.gmra.mxu1 %vm2774_vm4, %v3176_v3  ;;  %v8460_v3 = vld [vmem:[%s11100_s9 + $0x4] ss:$16 sps:$4 sm:$0xff]   ;;  %v8463_v4 = vld [vmem:[%s11100_s9 + $0xc] ss:$16 sps:$4 sm:$0xff]  }
0x10ba   :  { %8236 = vmatpush3.bf16.msra.mxu1 %v9723_v45  ;;  %v3173_v5 = vpop.f32.mrf.mxu1  ;;  %8239 = vmatprep.mubr.msk.bf16.mxu1 %vm8961_vm1, %v8960_v25 }
0x10bb   :  { %8237 = vmatprep.subr.bf16.mxu1 %v8960_v25  ;;  %8268 = vmatpush3.bf16.msra.mxu0 %v8433_v12  ;;  %v8458_v5 = vld [vmem:[%s11100_s9] ss:$16 sps:$4 sm:$0xff]  }
0x10bc   :  { %v8202_v6 = vpop.f32.mrf.mxu1  ;;  %8269 = vmatprep.subr.bf16.mxu0 %v8960_v25 }
0x10bd   :  { %v8461_v6 = vld [vmem:[%s11100_s9 + $0x8] ss:$16 sps:$4 sm:$0xff]  }
0x10be   :  { %8238 = vmatpush3.bf16.msra.mxu1 %v9727_v52 }
0x10bf   :  { %8243 = vmatprep.subr.bf16.mxu1 %v8960_v25  ;;  %8270 = vmatpush3.bf16.msra.mxu0 %v8435_v14 }
0x10c0   :  { %3885 = vmatprep.subr.bf16.mxu0 %v8442_v32  ;;  %v8476_v32 = vld [vmem:[%s11102_s11 + $0x120] ss:$24 sps:$4 sm:$0xff]  }
0x10c1   :  { %8240 = vmatmul.mubr.msk.bf16.vlgmr.msra.gmra.mxu1 %vm2638_vm3, %v6899_v7  ;;  %v8962_v7 = vmov 0  }
0x10c2   :  { %8244 = vmatpush3.bf16.msra.mxu1 %v8428_v8  ;;  %8251 = vmatprep.mubr.msk.bf16.mxu1 %vm8961_vm1, %v8960_v25  ;;  %v4162_v8 = vld [vmem:[%s11103_s12] sm:$0xff] }
0x10c3   :  { %8245 = vmatprep.subr.bf16.mxu1 %v8960_v25 }
0x10c6   :  { %8246 = vmatpush3.bf16.msra.mxu1 %v8430_v9  ;;  %v6964_v9 = vcombine.high %v4162_v8, %v4162_v8 }
0x10c7   :  { %8247 = vmatprep.subr.bf16.mxu1 %v8960_v25 }
0x10ca   :  { %8248 = vmatpush3.bf16.msra.mxu1 %v8432_v11  ;;  %v6968_v11 = vcombine.high %v4164_v10, %v4164_v10 }
0x10cb   :  { %8249 = vmatprep.subr.bf16.mxu1 %v8960_v25 }
0x10ce   :  { %8250 = vmatpush3.bf16.msra.mxu1 %v8434_v13  ;;  %v6944_v13 = vld [vmem:[%s11099_s8] ss:$0 sm:$0xff] }
0x10cf   :  { %8275 = vmatprep.subr.bf16.mxu1 %v8960_v25 }
0x1169   :  { %v3370_v15 = vpop.f32.mrf.mxu0 }
0x116b   :  { %v8233_v16 = vpop.f32.mrf.mxu0 }
0x116d   :  { %v3373_v35 = vpop.f32.mrf.mxu0 }
0x116e   :  { %v6963_v35 = vcombine.low %v4162_v8, %v4162_v8  ;;  %v8541_v8 = vld [vmem:[%s11102_s11 + $0x544] ss:$24 sps:$4 sm:$0xff]  }
0x116f   :  { %v8234_v40 = vpop.f32.mrf.mxu0 }
0x1171   :  { %v3539_v47 = vpop.f32.mrf.mxu0 }
0x1172   :  { %v3545_v59 = vpack.c.bf16 %v3539_v47, %v3539_v47  ;;  %v4163_v47 = vld [vmem:[%s11103_s12 + $0x8] sm:$0xff] }
0x1173   :  { %v8261_v56 = vpop.f32.mrf.mxu0 }
0x1174   :  { %8272 = vmatmul.mubr.msk.bf16.vlgmr.msra.gmra.mxu0 %vm2774_vm4, %v3545_v59  ;;  %v6967_v59 = vcombine.low %v4164_v10, %v4164_v10  ;;  %v8532_v10 = vld [vmem:[%s11102_s11 + $0x274] ss:$24 sps:$4 sm:$0xff]  }
0x1175   :  { %v3542_v55 = vpop.f32.mrf.mxu0  ;;  %3886 = vmatpush1.bf16.msra.mxu0 %v8440_v31  ;;  %3909 = vmatprep.mubr.bf16.mxu0 %v8962_v7  ;;  %v8493_v31 = vld [vmem:[%s11102_s11 + $0x3c4] ss:$24 sps:$4 sm:$0xff]  }
0x1177   :  { %v8262_v61 = vpop.f32.mrf.mxu0 }
0x1179   :  { %v3247_v17 = vpop.f32.mrf.mxu1 }
0x117a   :  { %v3253_v18 = vadd.f32 %v3247_v17, %v3130_v63  ;;  %v8454_v63 = vld [vmem:[%s11100_s9 + $0x24] ss:$16 sps:$4 sm:$0xff]   ;;  %v4186_v17 = vsel %vm4184_vm5, %v6963_v35, 0  ;;  %v8536_v35 = vld [vmem:[%s11102_s11 + $0x240] ss:$24 sps:$4 sm:$0xff]  }
0x117b   :  { %v8213_v49 = vpop.f32.mrf.mxu1 }
0x117c   :  { %v3376_v19 = vadd.f32 %v3370_v15, %v3253_v18  ;;  %v6966_v18 = vcombine.high %v4163_v47, %v4163_v47  ;;  %v4198_v49 = vsel %vm4184_vm5, %v6967_v59, 0  ;;  %v8542_v59 = vld [vmem:[%s11102_s11 + $0x210] ss:$24 sps:$4 sm:$0xff]  }
0x117d   :  { %v3250_v20 = vpop.f32.mrf.mxu1 }
0x117e   :  { %v4160_v20 = vld [vmem:[%s11110_s19] sm:$0x3] }
0x117f   :  { %v8214_v21 = vpop.f32.mrf.mxu1 }
0x1180   :  { %v6965_v21 = vcombine.low %v4163_v47, %v4163_v47  ;;  %v8551_v47 = vld [vmem:[%s11102_s11 + $0x4e0] ss:$24 sps:$4 sm:$0xff]  }
0x1181   :  { %v3416_v22 = vpop.f32.mrf.mxu1 }
0x1182   :  { %v3422_v23 = vpack.c.bf16 %v3416_v22, %v3416_v22  ;;  %v4161_v22 = vpack.c.bf16 %v4160_v20, %v4160_v20  ;;  %v8563_v20 = vld [vmem:[%s11102_s11 + $0x480] ss:$24 sps:$4 sm:$0xff]  }
0x1183   :  { %v8241_v24 = vpop.f32.mrf.mxu1 }
0x1184   :  { %8252 = vmatmul.mubr.msk.bf16.vlgmr.msra.gmra.mxu1 %vm2774_vm4, %v3422_v23  ;;  %v4192_v23 = vsel %vm4184_vm5, %v6965_v21, 0  ;;  %v8472_v24 = vld [vmem:[%s11102_s11 + $0x154] ss:$24 sps:$4 sm:$0xff]   ;;  %v8562_v21 = vld [vmem:[%s11102_s11 + $0x184] ss:$24 sps:$4 sm:$0xff]  }
0x1185   :  { %8276 = vmatpush3.bf16.msra.mxu1 %v9723_v45  ;;  %v3419_v26 = vpop.f32.mrf.mxu1  ;;  %8279 = vmatprep.mubr.msk.bf16.mxu1 %vm8961_vm1, %v8960_v25  ;;  %v8437_v45 = vld [vmem:[%s11098_s7 + $0x110] sm:$0xff]  }
0x1186   :  { %8277 = vmatprep.subr.bf16.mxu1 %v8960_v25  ;;  %v8473_v26 = vld [vmem:[%s11102_s11 + $0x450] ss:$24 sps:$4 sm:$0xff]  }
0x1187   :  { %v8242_v27 = vpop.f32.mrf.mxu1 }
0x1188   :  { %v8481_v27 = vld [vmem:[%s11102_s11 + $0x424] ss:$24 sps:$4 sm:$0xff]  }
0x1189   :  { %8278 = vmatpush3.bf16.msra.mxu1 %v9727_v52  ;;  %v8438_v52 = vld [vmem:[%s11098_s7 + $0x108] sm:$0xff]  }
0x118a   :  { %8283 = vmatprep.subr.bf16.mxu1 %v8960_v25 }
0x118c   :  { %8280 = vmatmul.mubr.msk.bf16.vlgmr.msra.gmra.mxu1 %vm2638_vm3, %v6929_v28  ;;  %v8479_v28 = vld [vmem:[%s11102_s11 + $0x420] ss:$24 sps:$4 sm:$0xff]  }
0x118d   :  { %8284 = vmatpush3.bf16.msra.mxu1 %v8436_v29  ;;  %8291 = vmatprep.mubr.msk.bf16.mxu1 %vm8961_vm1, %v8960_v25  ;;  %v8487_v29 = vld [vmem:[%s11102_s11 + $0x3f4] ss:$24 sps:$4 sm:$0xff]  }
0x118e   :  { %8285 = vmatprep.subr.bf16.mxu1 %v8960_v25 }
0x1191   :  { %8286 = vmatpush3.bf16.msra.mxu1 %v8437_v45  ;;  %v8470_v45 = vld [vmem:[%s11102_s11 + $0x150] ss:$24 sps:$4 sm:$0xff]  }
0x1192   :  { %8287 = vmatprep.subr.bf16.mxu1 %v8960_v25 }
0x1195   :  { %8288 = vmatpush3.bf16.msra.mxu1 %v8438_v52  ;;  %v8478_v52 = vld [vmem:[%s11102_s11 + $0x124] ss:$24 sps:$4 sm:$0xff]  }
0x1196   :  { %8289 = vmatprep.subr.bf16.mxu1 %v8960_v25  ;;  %v8448_v25 = vld [vmem:[%s11100_s9 + $0x44] ss:$16 sps:$4 sm:$0xff]  }
0x1197   :  { %3887 = vmatprep.subr.bf16.mxu0 %v8448_v25  ;;  %v8491_v25 = vld [vmem:[%s11102_s11 + $0x3c0] ss:$24 sps:$4 sm:$0xff]  }
0x1198   :  { %3888 = vmatpush1.bf16.msra.mxu0 %v8446_v36  ;;  %v8499_v36 = vld [vmem:[%s11102_s11 + $0x394] ss:$24 sps:$4 sm:$0xff]  }
0x1199   :  { %8290 = vmatpush3.bf16.msra.mxu1 %v8439_v30  ;;  %3889 = vmatprep.subr.bf16.mxu0 %v8454_v63  ;;  %v8485_v30 = vld [vmem:[%s11102_s11 + $0x3f0] ss:$24 sps:$4 sm:$0xff]  }
0x119a   :  { %3926 = vmatprep.subr.bf16.mxu1 %v8445_v33  ;;  %v8484_v33 = vld [vmem:[%s11102_s11 + $0xf4] ss:$24 sps:$4 sm:$0xff]   ;;  %v8521_v63 = vld [vmem:[%s11102_s11 + $0x5d0] ss:$24 sps:$4 sm:$0xff]  }
0x119c   :  { %3890 = vmatpush1.bf16.msra.mxu0 %v8452_v1  ;;  %v8512_v1 = vld [vmem:[%s11102_s11] ss:$24 sps:$4 sm:$0xff]  }
0x119d   :  { %3891 = vmatprep.subr.bf16.mxu0 %v8460_v3  ;;  %v8527_v3 = vld [vmem:[%s11102_s11 + $0x5a0] ss:$24 sps:$4 sm:$0xff]  }
0x11a0   :  { %3892 = vmatpush1.bf16.msra.mxu0 %v8458_v5  ;;  %v8518_v5 = vld [vmem:[%s11102_s11 + $0x2d0] ss:$24 sps:$4 sm:$0xff]  }
0x11a1   :  { %6969 = vmatprep.subr.msk.bf16.mxu0 %vm4184_vm5, %v6964_v9  ;;  %v8524_v9 = vld [vmem:[%s11102_s11 + $0x2a0] ss:$24 sps:$4 sm:$0xff]  }
0x1234   :  { %v3616_v38 = vpop.f32.mrf.mxu0 }
0x1236   :  { %v8273_v39 = vpop.f32.mrf.mxu0 }
0x1237   :  { %v8490_v39 = vld [vmem:[%s11102_s11 + $0xc4] ss:$24 sps:$4 sm:$0xff]  }
0x1238   :  { %v3619_v41 = vpop.f32.mrf.mxu0 }
0x1239   :  { %v8497_v41 = vld [vmem:[%s11102_s11 + $0x390] ss:$24 sps:$4 sm:$0xff]  }
0x123a   :  { %v8274_v42 = vpop.f32.mrf.mxu0 }
0x123b   :  { %v8505_v42 = vld [vmem:[%s11102_s11 + $0x364] ss:$24 sps:$4 sm:$0xff]  }
0x1244   :  { %v3493_v44 = vpop.f32.mrf.mxu1 }
0x1245   :  { %v3499_v46 = vadd.f32 %v3493_v44, %v3376_v19  ;;  %v8475_v19 = vld [vmem:[%s11102_s11 + $0x454] ss:$24 sps:$4 sm:$0xff]   ;;  %v8488_v44 = vld [vmem:[%s11102_s11 + $0xc0] ss:$24 sps:$4 sm:$0xff]  }
0x1246   :  { %v8253_v48 = vpop.f32.mrf.mxu1 }
0x1247   :  { %v3622_v50 = vadd.f32 %v3616_v38, %v3499_v46  ;;  %v8482_v38 = vld [vmem:[%s11102_s11 + $0xf0] ss:$24 sps:$4 sm:$0xff]   ;;  %v8496_v46 = vld [vmem:[%s11102_s11 + $0x94] ss:$24 sps:$4 sm:$0xff]   ;;  %v8503_v48 = vld [vmem:[%s11102_s11 + $0x360] ss:$24 sps:$4 sm:$0xff]  }
0x1248   :  { %v3496_v54 = vpop.f32.mrf.mxu1 }
0x1249   :  { %v8494_v54 = vld [vmem:[%s11102_s11 + $0x90] ss:$24 sps:$4 sm:$0xff]  }
0x124a   :  { %v8254_v57 = vpop.f32.mrf.mxu1 }
0x124b   :  { %v8502_v57 = vld [vmem:[%s11102_s11 + $0x64] ss:$24 sps:$4 sm:$0xff]  }
0x124c   :  { %v3662_v58 = vpop.f32.mrf.mxu1 }
0x124d   :  { %v3668_v34 = vpack.c.bf16 %v3662_v58, %v3662_v58  ;;  %v8509_v58 = vld [vmem:[%s11102_s11 + $0x330] ss:$24 sps:$4 sm:$0xff]  }
0x124e   :  { %v8281_v51 = vpop.f32.mrf.mxu1 }
0x124f   :  { %8292 = vmatmul.mubr.msk.bf16.vlgmr.msra.gmra.mxu1 %vm2774_vm4, %v3668_v34  ;;  %v8500_v34 = vld [vmem:[%s11102_s11 + $0x60] ss:$24 sps:$4 sm:$0xff]  }
0x1250   :  { %v3665_v60 = vpop.f32.mrf.mxu1  ;;  %3927 = vmatpush1.bf16.msra.mxu1 %v8443_v53  ;;  %3950 = vmatprep.mubr.bf16.mxu1 %v8962_v7  ;;  %v8517_v53 = vld [vmem:[%s11102_s11 + $0x304] ss:$24 sps:$4 sm:$0xff]   ;;  %v8515_v51 = vld [vmem:[%s11102_s11 + $0x300] ss:$24 sps:$4 sm:$0xff]  }
0x1251   :  { %3928 = vmatprep.subr.bf16.mxu1 %v8451_v43  ;;  %v8508_v43 = vld [vmem:[%s11102_s11 + $0x34] ss:$24 sps:$4 sm:$0xff]  }
0x1252   :  { %v8282_v62 = vpop.f32.mrf.mxu1  ;;  %v8523_v60 = vld [vmem:[%s11102_s11 + $0x5d4] ss:$24 sps:$4 sm:$0xff]  }
0x1253   :  { %v8514_v62 = vld [vmem:[%s11102_s11 + $0x4] ss:$24 sps:$4 sm:$0xff]  }
0x1254   :  { %3929 = vmatpush1.bf16.msra.mxu1 %v8449_v37  ;;  %v8506_v37 = vld [vmem:[%s11102_s11 + $0x30] ss:$24 sps:$4 sm:$0xff]  }
0x1255   :  { %3930 = vmatprep.subr.bf16.mxu1 %v8457_v0  ;;  %v8529_v0 = vld [vmem:[%s11102_s11 + $0x5a4] ss:$24 sps:$4 sm:$0xff]  }
0x1258   :  { %3931 = vmatpush1.bf16.msra.mxu1 %v8455_v2  ;;  %v8520_v2 = vld [vmem:[%s11102_s11 + $0x2d4] ss:$24 sps:$4 sm:$0xff]  }
0x1259   :  { %3932 = vmatprep.subr.bf16.mxu1 %v8463_v4  ;;  %v8535_v4 = vld [vmem:[%s11102_s11 + $0x574] ss:$24 sps:$4 sm:$0xff]  }
0x125c   :  { %3933 = vmatpush1.bf16.msra.mxu1 %v8461_v6  ;;  %v8526_v6 = vld [vmem:[%s11102_s11 + $0x2a4] ss:$24 sps:$4 sm:$0xff]  }
0x125d   :  { %6973 = vmatprep.subr.msk.bf16.mxu1 %vm4184_vm5, %v6968_v11  ;;  %v8539_v11 = vld [vmem:[%s11102_s11 + $0x540] ss:$24 sps:$4 sm:$0xff]  }
0x130f   :  { %v3739_v12 = vpop.f32.mrf.mxu1 }
0x1310   :  { %v3745_v14 = vadd.f32 %v3739_v12, %v3622_v50  ;;  %v8511_v50 = vld [vmem:[%s11102_s11 + $0x334] ss:$24 sps:$4 sm:$0xff]  }
0x1311   :  { %v8293_v15 = vpop.f32.mrf.mxu1  ;;  %v8547_v12 = vld [vmem:[%s11102_s11 + $0x514] ss:$24 sps:$4 sm:$0xff]  }
0x1312   :  { %v3753_v16 = vadd.f32 %v6944_v13, %v3745_v14  ;;  %v8530_v13 = vld [vmem:[%s11102_s11 + $0x270] ss:$24 sps:$4 sm:$0xff]   ;;  %v8538_v14 = vld [vmem:[%s11102_s11 + $0x244] ss:$24 sps:$4 sm:$0xff]  }
0x1313   :  { %v3742_v40 = vpop.f32.mrf.mxu1  ;;  %v8545_v15 = vld [vmem:[%s11102_s11 + $0x510] ss:$24 sps:$4 sm:$0xff]  }
0x1314   :  { %v3754_v56 = vmax.f32 %v3753_v16, 0.0  ;;  %v8553_v16 = vld [vmem:[%s11102_s11 + $0x4e4] ss:$24 sps:$4 sm:$0xff]   ;;  %v8544_v40 = vld [vmem:[%s11102_s11 + $0x214] ss:$24 sps:$4 sm:$0xff]  }
0x1315   :  { %v8294_v55 = vpop.f32.mrf.mxu1 }
0x1316   :  { %v3755_v61 = vpack.c.bf16 %v3754_v56, %v3754_v56  ;;  %v8550_v56 = vld [vmem:[%s11102_s11 + $0x1e4] ss:$24 sps:$4 sm:$0xff]   ;;  %v8559_v55 = vld [vmem:[%s11102_s11 + $0x4b4] ss:$24 sps:$4 sm:$0xff]  }
0x1318   :  { %6961 = vmatmul.mubr.msk.bf16.vlgmr.msra.gmra.mxu0 %vm2774_vm4, %v3755_v61  ;;  %6962 = vmatmul.mubr.msk.bf16.vlgmr.msra.gmra.mxu1 %vm2774_vm4, %v3755_v61  ;;  %v8548_v61 = vld [vmem:[%s11102_s11 + $0x1e0] ss:$24 sps:$4 sm:$0xff]  }
0x1319   :  { %4218 = vmatpush1.bf16.msra.mxu0 %v4186_v17  ;;  %4235 = vmatprep.mubr.bf16.mxu0 %v8962_v7  ;;  %v8557_v17 = vld [vmem:[%s11102_s11 + $0x4b0] ss:$24 sps:$4 sm:$0xff]  }
0x131a   :  { %6971 = vmatprep.subr.msk.bf16.mxu0 %vm4184_vm5, %v6966_v18  ;;  %4300 = vmatpush1.bf16.msra.mxu1 %v4198_v49  ;;  %v8556_v18 = vld [vmem:[%s11102_s11 + $0x1b4] ss:$24 sps:$4 sm:$0xff]   ;;  %v8565_v49 = vld [vmem:[%s11102_s11 + $0x484] ss:$24 sps:$4 sm:$0xff]  }
0x131b   :  { %4317 = vmatprep.mubr.bf16.mxu1 %v8962_v7  ;;  %5327 = vmatprep.subr.bf16.mxu1 %v8475_v19  ;;  %v8554_v19 = vld [vmem:[%s11102_s11 + $0x1b0] ss:$24 sps:$4 sm:$0xff]  }
0x1320   :  { %6970 = vmatmul.mubr.msk.bf16.vlgmr.msra.gmra.mxu0 %vm4180_vm6, %v4161_v22  ;;  %6974 = vmatmul.mubr.msk.bf16.vlgmr.msra.gmra.mxu1 %vm4180_vm6, %v4161_v22 }
0x1321   :  { %4259 = vmatpush1.bf16.msra.mxu0 %v4192_v23  ;;  %4276 = vmatprep.mubr.bf16.mxu0 %v8962_v7  ;;  %v8533_v7 = vld [vmem:[%s11102_s11 + $0x570] ss:$24 sps:$4 sm:$0xff]   ;;  %v8560_v23 = vld [vmem:[%s11102_s11 + $0x180] ss:$24 sps:$4 sm:$0xff]  }
0x1322   :  { %5286 = vmatprep.subr.bf16.mxu0 %v8472_v24  ;;  %5328 = vmatpush1.bf16.msra.mxu1 %v8473_v26  ;;  %v8568_v24 = vld [vmem:[%s11102_s11 + $0x15c] ss:$24 sps:$4 sm:$0xff]   ;;  %v3774_v26 = vlaneseq }
0x1323   :  { %5329 = vmatprep.subr.bf16.mxu1 %v8481_v27 }
0x1324   :  { %v10246_v27 = vshrl.u32 %v3774_v26, 7  ;;  %v8605_v26 = vld [vmem:[%s11102_s11 + $0x338] ss:$24 sps:$4 sm:$0xff]  }
0x1326   :  { %5330 = vmatpush1.bf16.msra.mxu1 %v8479_v28  ;;  %v10249_v28 = vsub.s32 0, %v10246_v27 }
0x1327   :  { %5331 = vmatprep.subr.bf16.mxu1 %v8487_v29  ;;  %v10252_v29 = vsub.s32 2, %v10246_v27 }
0x1328   :  { %6972 = vmatmul.mubr.msk.bf16.vlgmr.msra.gmra.mxu0 %vm4180_vm6, %v4161_v22  ;;  %v8571_v22 = vld [vmem:[%s11102_s11 + $0x45c] ss:$24 sps:$4 sm:$0xff]  }
0x1329   :  { %5287 = vmatpush1.bf16.msra.mxu0 %v8470_v45  ;;  %v3772_v45 = vld [vmem:[%s11101_s10] sm:$0xf] }
0x132a   :  { %5288 = vmatprep.subr.bf16.mxu0 %v8478_v52  ;;  %5332 = vmatpush1.bf16.msra.mxu1 %v8485_v30  ;;  %v10258_v52 = vsub.s32 1, %v10246_v27  ;;  %v10261_v30 = vsub.s32 3, %v10246_v27 }
0x132b   :  { %5333 = vmatprep.subr.bf16.mxu1 %v8493_v31  ;;  %v3777_v31 = vrot.slane %v3772_v45, %v10249_v28 }
0x132d   :  { %5289 = vmatpush1.bf16.msra.mxu0 %v8476_v32  ;;  %v3785_v32 = vrot.slane %v3772_v45, %v10252_v29 }
0x132e   :  { %5290 = vmatprep.subr.bf16.mxu0 %v8484_v33  ;;  %5334 = vmatpush1.bf16.msra.mxu1 %v8491_v25  ;;  %v3781_v33 = vrot.slane %v3772_v45, %v10258_v52  ;;  %v3789_v25 = vrot.slane %v3772_v45, %v10261_v30  ;;  %v8610_v45 = vld [vmem:[%s11102_s11 + $0xc] ss:$24 sps:$4 sm:$0xff]  }
0x132f   :  { %5335 = vmatprep.subr.bf16.mxu1 %v8499_v36 }
0x1331   :  { %5291 = vmatpush1.bf16.msra.mxu0 %v8482_v38 }
0x1332   :  { %5292 = vmatprep.subr.bf16.mxu0 %v8490_v39  ;;  %5336 = vmatpush1.bf16.msra.mxu1 %v8497_v41 }
0x1333   :  { %5337 = vmatprep.subr.bf16.mxu1 %v8505_v42 }
0x1335   :  { %5293 = vmatpush1.bf16.msra.mxu0 %v8488_v44 }
0x1336   :  { %5294 = vmatprep.subr.bf16.mxu0 %v8496_v46  ;;  %5338 = vmatpush1.bf16.msra.mxu1 %v8503_v48 }
0x1337   :  { %5339 = vmatprep.subr.bf16.mxu1 %v8511_v50 }
0x1339   :  { %5295 = vmatpush1.bf16.msra.mxu0 %v8494_v54 }
0x133a   :  { %5296 = vmatprep.subr.bf16.mxu0 %v8502_v57  ;;  %5340 = vmatpush1.bf16.msra.mxu1 %v8509_v58 }
0x133b   :  { %5341 = vmatprep.subr.bf16.mxu1 %v8517_v53 }
0x133d   :  { %5297 = vmatpush1.bf16.msra.mxu0 %v8500_v34 }
0x133e   :  { %5298 = vmatprep.subr.bf16.mxu0 %v8508_v43  ;;  %5342 = vmatpush1.bf16.msra.mxu1 %v8515_v51 }
0x133f   :  { %5343 = vmatprep.subr.bf16.mxu1 %v8523_v60 }
0x1341   :  { %5299 = vmatpush1.bf16.msra.mxu0 %v8506_v37 }
0x1342   :  { %5300 = vmatprep.subr.bf16.mxu0 %v8514_v62  ;;  %5344 = vmatpush2.bf16.msra.mxu1 %v8521_v63  ;;  %v8566_v62 = vld [vmem:[%s11102_s11 + $0x158] ss:$24 sps:$4 sm:$0xff]  }
0x1343   :  { %5345 = vmatprep.subr.bf16.mxu1 %v8529_v0  ;;  %v8569_v63 = vld [vmem:[%s11102_s11 + $0x458] ss:$24 sps:$4 sm:$0xff]  }
0x1345   :  { %5301 = vmatpush1.bf16.msra.mxu0 %v8512_v1 }
0x1346   :  { %5302 = vmatprep.subr.bf16.mxu0 %v8520_v2  ;;  %5346 = vmatpush2.bf16.msra.mxu1 %v8527_v3  ;;  %v8574_v3 = vld [vmem:[%s11102_s11 + $0x12c] ss:$24 sps:$4 sm:$0xff]  }
0x1347   :  { %5347 = vmatprep.subr.bf16.mxu1 %v8535_v4  ;;  %v8577_v4 = vld [vmem:[%s11102_s11 + $0x42c] ss:$24 sps:$4 sm:$0xff]  }
0x1349   :  { %5303 = vmatpush2.bf16.msra.mxu0 %v8518_v5 }
0x134a   :  { %5304 = vmatprep.subr.bf16.mxu0 %v8526_v6  ;;  %5348 = vmatpush2.bf16.msra.mxu1 %v8533_v7  ;;  %v8572_v6 = vld [vmem:[%s11102_s11 + $0x128] ss:$24 sps:$4 sm:$0xff]  }
0x134b   :  { %5349 = vmatprep.subr.bf16.mxu1 %v8541_v8  ;;  %v8575_v7 = vld [vmem:[%s11102_s11 + $0x428] ss:$24 sps:$4 sm:$0xff]   ;;  %v8580_v8 = vld [vmem:[%s11102_s11 + $0xfc] ss:$24 sps:$4 sm:$0xff]  }
0x134d   :  { %5305 = vmatpush2.bf16.msra.mxu0 %v8524_v9  ;;  %v8583_v9 = vld [vmem:[%s11102_s11 + $0x3fc] ss:$24 sps:$4 sm:$0xff]  }
0x134e   :  { %5306 = vmatprep.subr.bf16.mxu0 %v8532_v10  ;;  %5350 = vmatpush2.bf16.msra.mxu1 %v8539_v11 }
0x134f   :  { %5351 = vmatprep.subr.bf16.mxu1 %v8547_v12  ;;  %v8578_v12 = vld [vmem:[%s11102_s11 + $0xf8] ss:$24 sps:$4 sm:$0xff]  }
0x1351   :  { %5307 = vmatpush2.bf16.msra.mxu0 %v8530_v13  ;;  %v8581_v13 = vld [vmem:[%s11102_s11 + $0x3f8] ss:$24 sps:$4 sm:$0xff]  }
0x1352   :  { %5308 = vmatprep.subr.bf16.mxu0 %v8538_v14  ;;  %5352 = vmatpush2.bf16.msra.mxu1 %v8545_v15  ;;  %v8586_v14 = vld [vmem:[%s11102_s11 + $0xcc] ss:$24 sps:$4 sm:$0xff]  }
0x1353   :  { %5353 = vmatprep.subr.bf16.mxu1 %v8553_v16  ;;  %v8589_v15 = vld [vmem:[%s11102_s11 + $0x3cc] ss:$24 sps:$4 sm:$0xff]  }
0x1355   :  { %5309 = vmatpush2.bf16.msra.mxu0 %v8536_v35 }
0x1356   :  { %5310 = vmatprep.subr.bf16.mxu0 %v8544_v40  ;;  %5354 = vmatpush2.bf16.msra.mxu1 %v8551_v47  ;;  %v8584_v40 = vld [vmem:[%s11102_s11 + $0xc8] ss:$24 sps:$4 sm:$0xff]  }
0x1357   :  { %5355 = vmatprep.subr.bf16.mxu1 %v8559_v55  ;;  %v8587_v47 = vld [vmem:[%s11102_s11 + $0x3c8] ss:$24 sps:$4 sm:$0xff]  }
0x1359   :  { %5311 = vmatpush2.bf16.msra.mxu0 %v8542_v59  ;;  %v8592_v59 = vld [vmem:[%s11102_s11 + $0x9c] ss:$24 sps:$4 sm:$0xff]  }
0x135a   :  { %5312 = vmatprep.subr.bf16.mxu0 %v8550_v56  ;;  %5356 = vmatpush2.bf16.msra.mxu1 %v8557_v17  ;;  %v8595_v56 = vld [vmem:[%s11102_s11 + $0x39c] ss:$24 sps:$4 sm:$0xff]   ;;  %v8590_v17 = vld [vmem:[%s11102_s11 + $0x98] ss:$24 sps:$4 sm:$0xff]  }
0x135b   :  { %5357 = vmatprep.subr.bf16.mxu1 %v8565_v49  ;;  %v8598_v49 = vld [vmem:[%s11102_s11 + $0x6c] ss:$24 sps:$4 sm:$0xff]  }
0x135d   :  { %5313 = vmatpush2.bf16.msra.mxu0 %v8548_v61 }
0x135e   :  { %5314 = vmatprep.subr.bf16.mxu0 %v8556_v18  ;;  %5358 = vmatpush2.bf16.msra.mxu1 %v8563_v20  ;;  %v8593_v18 = vld [vmem:[%s11102_s11 + $0x398] ss:$24 sps:$4 sm:$0xff]   ;;  %v8596_v20 = vld [vmem:[%s11102_s11 + $0x68] ss:$24 sps:$4 sm:$0xff]  }
0x135f   :  { %5409 = vmatprep.subr.bf16.mxu1 %v8571_v22  ;;  %v8604_v22 = vld [vmem:[%s11102_s11 + $0x3c] ss:$24 sps:$4 sm:$0xff]  }
0x1361   :  { %5315 = vmatpush2.bf16.msra.mxu0 %v8554_v19  ;;  %v8601_v19 = vld [vmem:[%s11102_s11 + $0x36c] ss:$24 sps:$4 sm:$0xff]  }
0x1362   :  { %5316 = vmatprep.subr.bf16.mxu0 %v8562_v21  ;;  %v8599_v21 = vld [vmem:[%s11102_s11 + $0x368] ss:$24 sps:$4 sm:$0xff]  }
0x1365   :  { %5317 = vmatpush2.bf16.msra.mxu0 %v8560_v23  ;;  %v8607_v23 = vld [vmem:[%s11102_s11 + $0x33c] ss:$24 sps:$4 sm:$0xff]  }
0x1366   :  { %5368 = vmatprep.subr.bf16.mxu0 %v8568_v24  ;;  %v8602_v24 = vld [vmem:[%s11102_s11 + $0x38] ss:$24 sps:$4 sm:$0xff]  }
0x13d8   :  { %v3911_v36 = vpop.f32.mrf.mxu0  ;;  %v3952_v38 = vpop.f32.mrf.mxu1 }
0x13d9   :  { %v3912_v39 = vadd.f32 %v3911_v36, %v3777_v31  ;;  %v3953_v41 = vadd.f32 %v3952_v38, %v3785_v32  ;;  %v8613_v31 = vld [vmem:[%s11102_s11 + $0x30c] ss:$24 sps:$4 sm:$0xff]   ;;  %v8608_v32 = vld [vmem:[%s11102_s11 + $0x8] ss:$24 sps:$4 sm:$0xff]   ;;  %v8619_v36 = vld [vmem:[%s11102_s11 + $0x5dc] ss:$24 sps:$4 sm:$0xff]  }
0x13da   :  { %v3913_v42 = vpop.f32.mrf.mxu0  ;;  %v3954_v44 = vpop.f32.mrf.mxu1  ;;  %v8614_v38 = vld [vmem:[%s11102_s11 + $0x2d8] ss:$24 sps:$4 sm:$0xff]  }
0x13db   :  { %v3914_v46 = vadd.f32 %v3913_v42, %v3781_v33  ;;  %v3955_v48 = vadd.f32 %v3954_v44, %v3789_v25  ;;  %v3959_v50 = vmax.f32 %v3912_v39, 0.0  ;;  %v3961_v54 = vmax.f32 %v3953_v41, 0.0  ;;  %v8611_v33 = vld [vmem:[%s11102_s11 + $0x308] ss:$24 sps:$4 sm:$0xff]   ;;  %v8616_v25 = vld [vmem:[%s11102_s11 + $0x2dc] ss:$24 sps:$4 sm:$0xff]  }
0x13dc   :  { %v3915_v57 = vpop.f32.mrf.mxu0  ;;  %v3956_v58 = vpop.f32.mrf.mxu1  ;;  %v8617_v39 = vld [vmem:[%s11102_s11 + $0x5d8] ss:$24 sps:$4 sm:$0xff]   ;;  %v8622_v41 = vld [vmem:[%s11102_s11 + $0x2ac] ss:$24 sps:$4 sm:$0xff]   ;;  %v8620_v44 = vld [vmem:[%s11102_s11 + $0x2a8] ss:$24 sps:$4 sm:$0xff]  }
0x13dd   :  { %v3960_v53 = vmax.f32 %v3914_v46, 0.0  ;;  %v3962_v34 = vmax.f32 %v3955_v48, 0.0  ;;  %v10277_v0 = vpack.c.bf16 %v3959_v50, %v3959_v50  ;;  %v10279_v1 = vpack.c.bf16 %v3961_v54, %v3961_v54  ;;  %v8625_v42 = vld [vmem:[%s11102_s11 + $0x5ac] ss:$24 sps:$4 sm:$0xff]   ;;  %v8623_v46 = vld [vmem:[%s11102_s11 + $0x5a8] ss:$24 sps:$4 sm:$0xff]  }
0x13de   :  { %v3916_v43 = vpop.f32.mrf.mxu0  ;;  %v3957_v51 = vpop.f32.mrf.mxu1  ;;  %v8628_v48 = vld [vmem:[%s11102_s11 + $0x27c] ss:$24 sps:$4 sm:$0xff]   ;;  %v8626_v54 = vld [vmem:[%s11102_s11 + $0x278] ss:$24 sps:$4 sm:$0xff]   ;;  %v8634_v58 = vld [vmem:[%s11102_s11 + $0x24c] ss:$24 sps:$4 sm:$0xff]  }
0x13df   :  { %v10267_v60 = vpack.c.bf16 %v3960_v53, %v3960_v53  ;;  %v10269_v37 = vpack.c.bf16 %v3962_v34, %v3962_v34  ;;  %v8631_v50 = vld [vmem:[%s11102_s11 + $0x57c] ss:$24 sps:$4 sm:$0xff]   ;;  %v8629_v57 = vld [vmem:[%s11102_s11 + $0x578] ss:$24 sps:$4 sm:$0xff]   ;;  %v8637_v53 = vld [vmem:[%s11102_s11 + $0x54c] ss:$24 sps:$4 sm:$0xff]  }
0x13e0   :  { %v10281_v2 = vpop.f32.mrf.mxu0  ;;  %v8632_v34 = vld [vmem:[%s11102_s11 + $0x248] ss:$24 sps:$4 sm:$0xff]   ;;  %v8640_v51 = vld [vmem:[%s11102_s11 + $0x21c] ss:$24 sps:$4 sm:$0xff]  }
0x13e1   :  { %5318 = vmatprep.mubr.bf16.mxu0 %v10267_v60  ;;  %5359 = vmatprep.mubr.bf16.mxu1 %v10269_v37  ;;  %v8635_v43 = vld [vmem:[%s11102_s11 + $0x548] ss:$24 sps:$4 sm:$0xff]  }
0x13e2   :  { %5319 = vmatmul.mubr.bf16.vlgmr.msra.gmra.mxu0 %v10277_v0  ;;  %5360 = vmatmul.mubr.bf16.vlgmr.msra.gmra.mxu1 %v10279_v1  ;;  %v10293_v5 = vpop.f32.mrf.mxu0 }
0x13e3   :  { %5369 = vmatpush1.bf16.msra.mxu0 %v8566_v62  ;;  %5410 = vmatpush1.bf16.msra.mxu1 %v8569_v63  ;;  %v8643_v62 = vld [vmem:[%s11102_s11 + $0x51c] ss:$24 sps:$4 sm:$0xff]   ;;  %v8638_v63 = vld [vmem:[%s11102_s11 + $0x218] ss:$24 sps:$4 sm:$0xff]  }
0x13e4   :  { %5400 = vmatprep.mubr.bf16.mxu0 %v10267_v60  ;;  %5441 = vmatprep.mubr.bf16.mxu1 %v10269_v37  ;;  %v4241_v10 = vpop.f32.mrf.mxu0 }
0x13e5   :  { %5370 = vmatprep.subr.bf16.mxu0 %v8574_v3  ;;  %5411 = vmatprep.subr.bf16.mxu1 %v8577_v4  ;;  %v8641_v3 = vld [vmem:[%s11102_s11 + $0x518] ss:$24 sps:$4 sm:$0xff]   ;;  %v8646_v4 = vld [vmem:[%s11102_s11 + $0x1ec] ss:$24 sps:$4 sm:$0xff]   ;;  %v8655_v10 = vld [vmem:[%s11102_s11 + $0x4bc] ss:$24 sps:$4 sm:$0xff]  }
0x13e6   :  { %v4242_v11 = vpop.f32.mrf.mxu0 }
0x13e7   :  { %5371 = vmatpush1.bf16.msra.mxu0 %v8572_v6  ;;  %5412 = vmatpush1.bf16.msra.mxu1 %v8575_v7  ;;  %v8649_v6 = vld [vmem:[%s11102_s11 + $0x4ec] ss:$24 sps:$4 sm:$0xff]   ;;  %v8644_v7 = vld [vmem:[%s11102_s11 + $0x1e8] ss:$24 sps:$4 sm:$0xff]   ;;  %v8650_v11 = vld [vmem:[%s11102_s11 + $0x1b8] ss:$24 sps:$4 sm:$0xff]  }
0x13e8   :  { %5372 = vmatprep.subr.bf16.mxu0 %v8580_v8  ;;  %5413 = vmatprep.subr.bf16.mxu1 %v8583_v9  ;;  %v10321_v16 = vpop.f32.mrf.mxu0  ;;  %v8647_v8 = vld [vmem:[%s11102_s11 + $0x4e8] ss:$24 sps:$4 sm:$0xff]   ;;  %v8652_v9 = vld [vmem:[%s11102_s11 + $0x1bc] ss:$24 sps:$4 sm:$0xff]  }
0x13ea   :  { %v10323_v35 = vpop.f32.mrf.mxu0 }
0x13eb   :  { %5373 = vmatpush1.bf16.msra.mxu0 %v8578_v12  ;;  %5414 = vmatpush1.bf16.msra.mxu1 %v8581_v13  ;;  %v8653_v12 = vld [vmem:[%s11102_s11 + $0x4b8] ss:$24 sps:$4 sm:$0xff]   ;;  %v8658_v13 = vld [vmem:[%s11102_s11 + $0x18c] ss:$24 sps:$4 sm:$0xff]  }
0x13ec   :  { %5374 = vmatprep.subr.bf16.mxu0 %v8586_v14  ;;  %5415 = vmatprep.subr.bf16.mxu1 %v8589_v15  ;;  %v4282_v55 = vpop.f32.mrf.mxu0  ;;  %v8661_v14 = vld [vmem:[%s11102_s11 + $0x48c] ss:$24 sps:$4 sm:$0xff]   ;;  %v10469_v15 = vpop.f32.mrf.mxu1 }
0x13ed   :  { %v8667_v55 = vld [vmem:[%s11102_s11 + $0x464] ss:$24 sps:$4 sm:$0xff]  }
0x13ee   :  { %v4283_v61 = vpop.f32.mrf.mxu0 }
0x13ef   :  { %5375 = vmatpush1.bf16.msra.mxu0 %v8584_v40  ;;  %5416 = vmatpush1.bf16.msra.mxu1 %v8587_v47  ;;  %v10471_v40 = vpop.f32.mrf.mxu1  ;;  %v8656_v47 = vld [vmem:[%s11102_s11 + $0x188] ss:$24 sps:$4 sm:$0xff]  }
0x13f0   :  { %5376 = vmatprep.subr.bf16.mxu0 %v8592_v59  ;;  %5417 = vmatprep.subr.bf16.mxu1 %v8595_v56  ;;  %v8659_v59 = vld [vmem:[%s11102_s11 + $0x488] ss:$24 sps:$4 sm:$0xff]   ;;  %v8664_v56 = vld [vmem:[%s11102_s11 + $0x164] ss:$24 sps:$4 sm:$0xff]  }
0x13f1   :  { %v4323_v61 = vpop.f32.mrf.mxu1 }
0x13f3   :  { %5377 = vmatpush1.bf16.msra.mxu0 %v8590_v17  ;;  %5418 = vmatpush1.bf16.msra.mxu1 %v8593_v18  ;;  %v4324_v17 = vpop.f32.mrf.mxu1  ;;  %v8662_v18 = vld [vmem:[%s11102_s11 + $0x160] ss:$24 sps:$4 sm:$0xff]  }
0x13f4   :  { %5378 = vmatprep.subr.bf16.mxu0 %v8598_v49  ;;  %5419 = vmatprep.subr.bf16.mxu1 %v8601_v19  ;;  %v8665_v49 = vld [vmem:[%s11102_s11 + $0x460] ss:$24 sps:$4 sm:$0xff]   ;;  %v8670_v19 = vld [vmem:[%s11102_s11 + $0x134] ss:$24 sps:$4 sm:$0xff]  }
0x13f5   :  { %v8734_v17 = vld [vmem:[%s11102_s11 + $0x220] ss:$24 sps:$4 sm:$0xff]  }
0x13f7   :  { %5379 = vmatpush1.bf16.msra.mxu0 %v8596_v20  ;;  %5420 = vmatpush1.bf16.msra.mxu1 %v8599_v21  ;;  %v8673_v20 = vld [vmem:[%s11102_s11 + $0x434] ss:$24 sps:$4 sm:$0xff]   ;;  %v8668_v21 = vld [vmem:[%s11102_s11 + $0x130] ss:$24 sps:$4 sm:$0xff]  }
0x13f8   :  { %5380 = vmatprep.subr.bf16.mxu0 %v8604_v22  ;;  %5421 = vmatprep.subr.bf16.mxu1 %v8607_v23  ;;  %v8671_v22 = vld [vmem:[%s11102_s11 + $0x430] ss:$24 sps:$4 sm:$0xff]   ;;  %v8676_v23 = vld [vmem:[%s11102_s11 + $0x104] ss:$24 sps:$4 sm:$0xff]  }
0x13fb   :  { %5381 = vmatpush1.bf16.msra.mxu0 %v8602_v24  ;;  %5422 = vmatpush1.bf16.msra.mxu1 %v8605_v26  ;;  %v8674_v24 = vld [vmem:[%s11102_s11 + $0x100] ss:$24 sps:$4 sm:$0xff]   ;;  %v8682_v26 = vld [vmem:[%s11102_s11 + $0xd4] ss:$24 sps:$4 sm:$0xff]  }
0x13fc   :  { %5382 = vmatprep.subr.bf16.mxu0 %v8610_v45  ;;  %5423 = vmatprep.subr.bf16.mxu1 %v8613_v31  ;;  %v8685_v45 = vld [vmem:[%s11102_s11 + $0x3d4] ss:$24 sps:$4 sm:$0xff]   ;;  %v8680_v31 = vld [vmem:[%s11102_s11 + $0xd0] ss:$24 sps:$4 sm:$0xff]  }
0x13ff   :  { %5383 = vmatpush1.bf16.msra.mxu0 %v8608_v32  ;;  %5424 = vmatpush1.bf16.msra.mxu1 %v8611_v33  ;;  %v8683_v32 = vld [vmem:[%s11102_s11 + $0x3d0] ss:$24 sps:$4 sm:$0xff]   ;;  %v8688_v33 = vld [vmem:[%s11102_s11 + $0xa4] ss:$24 sps:$4 sm:$0xff]  }
0x1400   :  { %5384 = vmatprep.subr.bf16.mxu0 %v8616_v25  ;;  %5425 = vmatprep.subr.bf16.mxu1 %v8619_v36  ;;  %v8691_v25 = vld [vmem:[%s11102_s11 + $0x3a4] ss:$24 sps:$4 sm:$0xff]   ;;  %v8686_v36 = vld [vmem:[%s11102_s11 + $0xa0] ss:$24 sps:$4 sm:$0xff]  }
0x1403   :  { %5385 = vmatpush2.bf16.msra.mxu0 %v8614_v38  ;;  %5426 = vmatpush2.bf16.msra.mxu1 %v8617_v39  ;;  %v8689_v38 = vld [vmem:[%s11102_s11 + $0x3a0] ss:$24 sps:$4 sm:$0xff]   ;;  %v8694_v39 = vld [vmem:[%s11102_s11 + $0x74] ss:$24 sps:$4 sm:$0xff]  }
0x1404   :  { %5386 = vmatprep.subr.bf16.mxu0 %v8622_v41  ;;  %5427 = vmatprep.subr.bf16.mxu1 %v8625_v42  ;;  %v8697_v41 = vld [vmem:[%s11102_s11 + $0x374] ss:$24 sps:$4 sm:$0xff]   ;;  %v8692_v42 = vld [vmem:[%s11102_s11 + $0x70] ss:$24 sps:$4 sm:$0xff]  }
0x1407   :  { %5387 = vmatpush2.bf16.msra.mxu0 %v8620_v44  ;;  %5428 = vmatpush2.bf16.msra.mxu1 %v8623_v46  ;;  %v8695_v44 = vld [vmem:[%s11102_s11 + $0x370] ss:$24 sps:$4 sm:$0xff]   ;;  %v8700_v46 = vld [vmem:[%s11102_s11 + $0x44] ss:$24 sps:$4 sm:$0xff]  }
0x1408   :  { %5388 = vmatprep.subr.bf16.mxu0 %v8628_v48  ;;  %5429 = vmatprep.subr.bf16.mxu1 %v8631_v50  ;;  %v8703_v48 = vld [vmem:[%s11102_s11 + $0x344] ss:$24 sps:$4 sm:$0xff]   ;;  %v8698_v50 = vld [vmem:[%s11102_s11 + $0x40] ss:$24 sps:$4 sm:$0xff]  }
0x140b   :  { %5389 = vmatpush2.bf16.msra.mxu0 %v8626_v54  ;;  %5430 = vmatpush2.bf16.msra.mxu1 %v8629_v57  ;;  %v8701_v54 = vld [vmem:[%s11102_s11 + $0x340] ss:$24 sps:$4 sm:$0xff]   ;;  %v8706_v57 = vld [vmem:[%s11102_s11 + $0x14] ss:$24 sps:$4 sm:$0xff]  }
0x140c   :  { %5390 = vmatprep.subr.bf16.mxu0 %v8634_v58  ;;  %5431 = vmatprep.subr.bf16.mxu1 %v8637_v53  ;;  %v8709_v58 = vld [vmem:[%s11102_s11 + $0x314] ss:$24 sps:$4 sm:$0xff]   ;;  %v8704_v53 = vld [vmem:[%s11102_s11 + $0x10] ss:$24 sps:$4 sm:$0xff]  }
0x140f   :  { %5391 = vmatpush2.bf16.msra.mxu0 %v8632_v34  ;;  %5432 = vmatpush2.bf16.msra.mxu1 %v8635_v43  ;;  %v8707_v34 = vld [vmem:[%s11102_s11 + $0x310] ss:$24 sps:$4 sm:$0xff]   ;;  %v8712_v43 = vld [vmem:[%s11102_s11 + $0x2e4] ss:$24 sps:$4 sm:$0xff]  }
0x1410   :  { %5392 = vmatprep.subr.bf16.mxu0 %v8640_v51  ;;  %5433 = vmatprep.subr.bf16.mxu1 %v8643_v62  ;;  %v8715_v51 = vld [vmem:[%s11102_s11 + $0x5e4] ss:$24 sps:$4 sm:$0xff]   ;;  %v8710_v62 = vld [vmem:[%s11102_s11 + $0x2e0] ss:$24 sps:$4 sm:$0xff]  }
0x1413   :  { %5393 = vmatpush2.bf16.msra.mxu0 %v8638_v63  ;;  %5434 = vmatpush2.bf16.msra.mxu1 %v8641_v3  ;;  %v8713_v63 = vld [vmem:[%s11102_s11 + $0x5e0] ss:$24 sps:$4 sm:$0xff]   ;;  %v8718_v3 = vld [vmem:[%s11102_s11 + $0x2b4] ss:$24 sps:$4 sm:$0xff]  }
0x1414   :  { %5394 = vmatprep.subr.bf16.mxu0 %v8646_v4  ;;  %5435 = vmatprep.subr.bf16.mxu1 %v8649_v6  ;;  %v8721_v4 = vld [vmem:[%s11102_s11 + $0x5b4] ss:$24 sps:$4 sm:$0xff]   ;;  %v8716_v6 = vld [vmem:[%s11102_s11 + $0x2b0] ss:$24 sps:$4 sm:$0xff]  }
0x1417   :  { %5395 = vmatpush2.bf16.msra.mxu0 %v8644_v7  ;;  %5436 = vmatpush2.bf16.msra.mxu1 %v8647_v8  ;;  %v8719_v7 = vld [vmem:[%s11102_s11 + $0x5b0] ss:$24 sps:$4 sm:$0xff]   ;;  %v8724_v8 = vld [vmem:[%s11102_s11 + $0x284] ss:$24 sps:$4 sm:$0xff]  }
0x1418   :  { %5396 = vmatprep.subr.bf16.mxu0 %v8652_v9  ;;  %5437 = vmatprep.subr.bf16.mxu1 %v8655_v10  ;;  %v8727_v9 = vld [vmem:[%s11102_s11 + $0x584] ss:$24 sps:$4 sm:$0xff]   ;;  %v8722_v10 = vld [vmem:[%s11102_s11 + $0x280] ss:$24 sps:$4 sm:$0xff]  }
0x141b   :  { %5397 = vmatpush2.bf16.msra.mxu0 %v8650_v11  ;;  %5438 = vmatpush2.bf16.msra.mxu1 %v8653_v12  ;;  %v8725_v11 = vld [vmem:[%s11102_s11 + $0x580] ss:$24 sps:$4 sm:$0xff]   ;;  %v8730_v12 = vld [vmem:[%s11102_s11 + $0x254] ss:$24 sps:$4 sm:$0xff]  }
0x141c   :  { %5398 = vmatprep.subr.bf16.mxu0 %v8658_v13  ;;  %5439 = vmatprep.subr.bf16.mxu1 %v8661_v14  ;;  %v8733_v13 = vld [vmem:[%s11102_s11 + $0x554] ss:$24 sps:$4 sm:$0xff]   ;;  %v8728_v14 = vld [vmem:[%s11102_s11 + $0x250] ss:$24 sps:$4 sm:$0xff]  }
0x141f   :  { %5399 = vmatpush2.bf16.msra.mxu0 %v8656_v47  ;;  %5440 = vmatpush2.bf16.msra.mxu1 %v8659_v59  ;;  %v8731_v47 = vld [vmem:[%s11102_s11 + $0x550] ss:$24 sps:$4 sm:$0xff]   ;;  %v8736_v59 = vld [vmem:[%s11102_s11 + $0x224] ss:$24 sps:$4 sm:$0xff]  }
0x1420   :  { %5450 = vmatprep.subr.bf16.mxu0 %v8664_v56  ;;  %5491 = vmatprep.subr.bf16.mxu1 %v8667_v55  ;;  %v8739_v56 = vld [vmem:[%s11102_s11 + $0x524] ss:$24 sps:$4 sm:$0xff]   ;;  %v8963_v55 = vmov 1983009808  }
0x1421   :  { %v5572_v61 = vunpack.c.l.s4 %v8963_v55  ;;  %v8803_v55 = vld [vmem:[%s11105_s14 + $0x8] ss:$24 sps:$4 sm:$0xff]  }
0x1422   :  { %5401 = vmatmul.mubr.bf16.vlgmr.msra.gmra.mxu0 %v10277_v0  ;;  %5442 = vmatmul.mubr.bf16.vlgmr.msra.gmra.mxu1 %v10279_v1 }
0x1423   :  { %5451 = vmatpush1.bf16.msra.mxu0 %v8662_v18  ;;  %5482 = vmatprep.mubr.bf16.mxu0 %v10267_v60  ;;  %v8679_v60 = vld [vmem:[%s11102_s11 + $0x404] ss:$24 sps:$4 sm:$0xff]   ;;  %v8737_v18 = vld [vmem:[%s11102_s11 + $0x520] ss:$24 sps:$4 sm:$0xff]  }
0x1424   :  { %5492 = vmatpush1.bf16.msra.mxu1 %v8665_v49  ;;  %5523 = vmatprep.mubr.bf16.mxu1 %v10269_v37  ;;  %v8677_v37 = vld [vmem:[%s11102_s11 + $0x400] ss:$24 sps:$4 sm:$0xff]   ;;  %v8742_v49 = vld [vmem:[%s11102_s11 + $0x1f4] ss:$24 sps:$4 sm:$0xff]  }
0x1425   :  { %5452 = vmatprep.subr.bf16.mxu0 %v8670_v19  ;;  %5493 = vmatprep.subr.bf16.mxu1 %v8673_v20  ;;  %v8745_v19 = vld [vmem:[%s11102_s11 + $0x4f4] ss:$24 sps:$4 sm:$0xff]   ;;  %v5573_v20 = vunpack.c.0.s8 %v5572_v61 }
0x1426   :  { %v8808_v61 = vld [vmem:[%s11105_s14 + $0x2d4] ss:$24 sps:$4 sm:$0xff]  }
0x1427   :  { %5453 = vmatpush1.bf16.msra.mxu0 %v8668_v21  ;;  %v8740_v21 = vld [vmem:[%s11102_s11 + $0x1f0] ss:$24 sps:$4 sm:$0xff]  }
0x1428   :  { %5494 = vmatpush1.bf16.msra.mxu1 %v8671_v22  ;;  %5454 = vmatprep.subr.bf16.mxu0 %v8676_v23  ;;  %v8743_v22 = vld [vmem:[%s11102_s11 + $0x4f0] ss:$24 sps:$4 sm:$0xff]   ;;  %v8748_v23 = vld [vmem:[%s11102_s11 + $0x1c4] ss:$24 sps:$4 sm:$0xff]  }
0x1429   :  { %5495 = vmatprep.subr.bf16.mxu1 %v8679_v60  ;;  %v8751_v60 = vld [vmem:[%s11102_s11 + $0x4c4] ss:$24 sps:$4 sm:$0xff]  }
0x142b   :  { %5455 = vmatpush1.bf16.msra.mxu0 %v8674_v24  ;;  %v10658_v24 = vsub.s32 %v5573_v20, %v10246_v27  ;;  %v8817_v20 = vld [vmem:[%s11105_s14 + $0x2ac] ss:$24 sps:$4 sm:$0xff]  }
0x142c   :  { %5496 = vmatpush1.bf16.msra.mxu1 %v8677_v37  ;;  %5456 = vmatprep.subr.bf16.mxu0 %v8682_v26  ;;  %v10663_v37 = vld [vmem:[%s11109_s18] sm:$0xf] }
0x142d   :  { %5497 = vmatprep.subr.bf16.mxu1 %v8685_v45  ;;  %v8746_v26 = vld [vmem:[%s11102_s11 + $0x1c0] ss:$24 sps:$4 sm:$0xff]  }
0x142e   :  { %v8749_v45 = vld [vmem:[%s11102_s11 + $0x4c0] ss:$24 sps:$4 sm:$0xff]  }
0x142f   :  { %5457 = vmatpush1.bf16.msra.mxu0 %v8680_v31  ;;  %v8754_v31 = vld [vmem:[%s11102_s11 + $0x194] ss:$24 sps:$4 sm:$0xff]  }
0x1430   :  { %5498 = vmatpush1.bf16.msra.mxu1 %v8683_v32  ;;  %5458 = vmatprep.subr.bf16.mxu0 %v8688_v33  ;;  %v8757_v32 = vld [vmem:[%s11102_s11 + $0x494] ss:$24 sps:$4 sm:$0xff]   ;;  %v10679_v33 = vrot.slane %v10663_v37, %v10658_v24 }
0x1431   :  { %5499 = vmatprep.subr.bf16.mxu1 %v8691_v25  ;;  %v8752_v25 = vld [vmem:[%s11102_s11 + $0x190] ss:$24 sps:$4 sm:$0xff]  }
0x1433   :  { %5459 = vmatpush1.bf16.msra.mxu0 %v8686_v36  ;;  %v8755_v36 = vld [vmem:[%s11102_s11 + $0x490] ss:$24 sps:$4 sm:$0xff]  }
0x1434   :  { %5500 = vmatpush1.bf16.msra.mxu1 %v8689_v38  ;;  %5460 = vmatprep.subr.bf16.mxu0 %v8694_v39  ;;  %v8760_v38 = vld [vmem:[%s11105_s14 + $0x154] ss:$24 sps:$4 sm:$0xff]  }
0x1435   :  { %5501 = vmatprep.subr.bf16.mxu1 %v8697_v41  ;;  %v8763_v39 = vld [vmem:[%s11105_s14 + $0x15c] ss:$24 sps:$4 sm:$0xff]   ;;  %v5578_v41 = vcombine.high %v10679_v33, %v10679_v33 }
0x1437   :  { %5461 = vmatpush1.bf16.msra.mxu0 %v8692_v42  ;;  %v8758_v42 = vld [vmem:[%s11105_s14 + $0x150] ss:$24 sps:$4 sm:$0xff]  }
0x1438   :  { %5502 = vmatpush1.bf16.msra.mxu1 %v8695_v44  ;;  %5462 = vmatprep.subr.bf16.mxu0 %v8700_v46  ;;  %v8761_v44 = vld [vmem:[%s11105_s14 + $0x158] ss:$24 sps:$4 sm:$0xff]   ;;  %v8766_v46 = vld [vmem:[%s11105_s14 + $0x124] ss:$24 sps:$4 sm:$0xff]  }
0x1439   :  { %5503 = vmatprep.subr.bf16.mxu1 %v8703_v48  ;;  %v8769_v48 = vld [vmem:[%s11105_s14 + $0x12c] ss:$24 sps:$4 sm:$0xff]  }
0x143b   :  { %5463 = vmatpush1.bf16.msra.mxu0 %v8698_v50  ;;  %v10707_v50 = vpack.c.bf16 %v5578_v41, %v5578_v41  ;;  %v8830_v41 = vld [vmem:[%s11105_s14 + $0x210] ss:$24 sps:$4 sm:$0xff]  }
0x143c   :  { %5504 = vmatpush1.bf16.msra.mxu1 %v8701_v54  ;;  %5464 = vmatprep.subr.bf16.mxu0 %v8706_v57  ;;  %v8764_v54 = vld [vmem:[%s11105_s14 + $0x120] ss:$24 sps:$4 sm:$0xff]  }
0x143d   :  { %5505 = vmatprep.subr.bf16.mxu1 %v8709_v58  ;;  %v8767_v57 = vld [vmem:[%s11105_s14 + $0x128] ss:$24 sps:$4 sm:$0xff]   ;;  %v8772_v58 = vld [vmem:[%s11105_s14 + $0xf4] ss:$24 sps:$4 sm:$0xff]  }
0x143f   :  { %5465 = vmatpush1.bf16.msra.mxu0 %v8704_v53  ;;  %v8773_v53 = vld [vmem:[%s11105_s14 + $0xf8] ss:$24 sps:$4 sm:$0xff]  }
0x1440   :  { %5506 = vmatpush1.bf16.msra.mxu1 %v8707_v34  ;;  %5466 = vmatprep.subr.bf16.mxu0 %v8712_v43  ;;  %v8778_v34 = vld [vmem:[%s11105_s14 + $0xc4] ss:$24 sps:$4 sm:$0xff]  }
0x1441   :  { %5507 = vmatprep.subr.bf16.mxu1 %v8715_v51  ;;  %v8781_v43 = vld [vmem:[%s11105_s14 + $0xcc] ss:$24 sps:$4 sm:$0xff]   ;;  %v8776_v51 = vld [vmem:[%s11105_s14 + $0xc0] ss:$24 sps:$4 sm:$0xff]  }
0x1443   :  { %5467 = vmatpush2.bf16.msra.mxu0 %v8710_v62  ;;  %v8779_v62 = vld [vmem:[%s11105_s14 + $0xc8] ss:$24 sps:$4 sm:$0xff]  }
0x1444   :  { %5508 = vmatpush2.bf16.msra.mxu1 %v8713_v63  ;;  %5468 = vmatprep.subr.bf16.mxu0 %v8718_v3  ;;  %v8784_v63 = vld [vmem:[%s11105_s14 + $0x94] ss:$24 sps:$4 sm:$0xff]  }
0x1445   :  { %5509 = vmatprep.subr.bf16.mxu1 %v8721_v4  ;;  %v8787_v3 = vld [vmem:[%s11105_s14 + $0x9c] ss:$24 sps:$4 sm:$0xff]   ;;  %v8782_v4 = vld [vmem:[%s11105_s14 + $0x90] ss:$24 sps:$4 sm:$0xff]  }
0x1447   :  { %5469 = vmatpush2.bf16.msra.mxu0 %v8716_v6  ;;  %v8785_v6 = vld [vmem:[%s11105_s14 + $0x98] ss:$24 sps:$4 sm:$0xff]  }
0x1448   :  { %5510 = vmatpush2.bf16.msra.mxu1 %v8719_v7  ;;  %5470 = vmatprep.subr.bf16.mxu0 %v8724_v8  ;;  %v8790_v7 = vld [vmem:[%s11105_s14 + $0x64] ss:$24 sps:$4 sm:$0xff]  }
0x1449   :  { %5511 = vmatprep.subr.bf16.mxu1 %v8727_v9  ;;  %v8793_v8 = vld [vmem:[%s11105_s14 + $0x6c] ss:$24 sps:$4 sm:$0xff]   ;;  %v8788_v9 = vld [vmem:[%s11105_s14 + $0x60] ss:$24 sps:$4 sm:$0xff]  }
0x144b   :  { %5471 = vmatpush2.bf16.msra.mxu0 %v8722_v10  ;;  %v8791_v10 = vld [vmem:[%s11105_s14 + $0x68] ss:$24 sps:$4 sm:$0xff]  }
0x144c   :  { %5512 = vmatpush2.bf16.msra.mxu1 %v8725_v11  ;;  %5472 = vmatprep.subr.bf16.mxu0 %v8730_v12  ;;  %v8796_v11 = vld [vmem:[%s11105_s14 + $0x34] ss:$24 sps:$4 sm:$0xff]  }
0x144d   :  { %5513 = vmatprep.subr.bf16.mxu1 %v8733_v13  ;;  %v8799_v12 = vld [vmem:[%s11105_s14 + $0x3c] ss:$24 sps:$4 sm:$0xff]   ;;  %v8794_v13 = vld [vmem:[%s11105_s14 + $0x30] ss:$24 sps:$4 sm:$0xff]  }
0x144f   :  { %5473 = vmatpush2.bf16.msra.mxu0 %v8728_v14  ;;  %v8797_v14 = vld [vmem:[%s11105_s14 + $0x38] ss:$24 sps:$4 sm:$0xff]  }
0x1450   :  { %5514 = vmatpush2.bf16.msra.mxu1 %v8731_v47  ;;  %5474 = vmatprep.subr.bf16.mxu0 %v8736_v59  ;;  %v8802_v47 = vld [vmem:[%s11105_s14 + $0x4] ss:$24 sps:$4 sm:$0xff]  }
0x1451   :  { %5515 = vmatprep.subr.bf16.mxu1 %v8739_v56  ;;  %v8805_v59 = vld [vmem:[%s11105_s14 + $0xc] ss:$24 sps:$4 sm:$0xff]   ;;  %v8800_v56 = vld [vmem:[%s11105_s14] ss:$24 sps:$4 sm:$0xff]  }
0x1453   :  { %5475 = vmatpush2.bf16.msra.mxu0 %v8734_v17  ;;  %v8811_v17 = vld [vmem:[%s11105_s14 + $0x2dc] ss:$24 sps:$4 sm:$0xff]  }
0x1454   :  { %5516 = vmatpush2.bf16.msra.mxu1 %v8737_v18  ;;  %5476 = vmatprep.subr.bf16.mxu0 %v8742_v49  ;;  %v8806_v18 = vld [vmem:[%s11105_s14 + $0x2d0] ss:$24 sps:$4 sm:$0xff]  }
0x1455   :  { %5517 = vmatprep.subr.bf16.mxu1 %v8745_v19  ;;  %v8809_v49 = vld [vmem:[%s11105_s14 + $0x2d8] ss:$24 sps:$4 sm:$0xff]   ;;  %v8814_v19 = vld [vmem:[%s11105_s14 + $0x2a4] ss:$24 sps:$4 sm:$0xff]  }
0x1457   :  { %5477 = vmatpush2.bf16.msra.mxu0 %v8740_v21  ;;  %v8812_v21 = vld [vmem:[%s11105_s14 + $0x2a0] ss:$24 sps:$4 sm:$0xff]  }
0x1458   :  { %5518 = vmatpush2.bf16.msra.mxu1 %v8743_v22  ;;  %5478 = vmatprep.subr.bf16.mxu0 %v8748_v23  ;;  %v8815_v22 = vld [vmem:[%s11105_s14 + $0x2a8] ss:$24 sps:$4 sm:$0xff]   ;;  %v8820_v23 = vld [vmem:[%s11105_s14 + $0x274] ss:$24 sps:$4 sm:$0xff]  }
0x1459   :  { %5519 = vmatprep.subr.bf16.mxu1 %v8751_v60  ;;  %v8823_v60 = vld [vmem:[%s11105_s14 + $0x27c] ss:$24 sps:$4 sm:$0xff]  }
0x145b   :  { %5479 = vmatpush2.bf16.msra.mxu0 %v8746_v26  ;;  %v8818_v26 = vld [vmem:[%s11105_s14 + $0x270] ss:$24 sps:$4 sm:$0xff]  }
0x145c   :  { %5520 = vmatpush2.bf16.msra.mxu1 %v8749_v45  ;;  %5480 = vmatprep.subr.bf16.mxu0 %v8754_v31  ;;  %v8821_v45 = vld [vmem:[%s11105_s14 + $0x278] ss:$24 sps:$4 sm:$0xff]   ;;  %v8826_v31 = vld [vmem:[%s11105_s14 + $0x244] ss:$24 sps:$4 sm:$0xff]  }
0x145d   :  { %5521 = vmatprep.subr.bf16.mxu1 %v8757_v32  ;;  %v8829_v32 = vld [vmem:[%s11105_s14 + $0x24c] ss:$24 sps:$4 sm:$0xff]  }
0x145f   :  { %5481 = vmatpush2.bf16.msra.mxu0 %v8752_v25  ;;  %v8824_v25 = vld [vmem:[%s11105_s14 + $0x240] ss:$24 sps:$4 sm:$0xff]  }
0x1460   :  { %5522 = vmatpush2.bf16.msra.mxu1 %v8755_v36  ;;  %6191 = vmatprep.subr.bf16.mxu0 %v8760_v38  ;;  %v8827_v36 = vld [vmem:[%s11105_s14 + $0x248] ss:$24 sps:$4 sm:$0xff]   ;;  %v8832_v38 = vld [vmem:[%s11105_s14 + $0x214] ss:$24 sps:$4 sm:$0xff]  }
0x1461   :  { %6232 = vmatprep.subr.bf16.mxu1 %v8763_v39  ;;  %v8835_v39 = vld [vmem:[%s11105_s14 + $0x21c] ss:$24 sps:$4 sm:$0xff]  }
0x1462   :  { %5483 = vmatmul.mubr.bf16.vlgmr.msra.gmra.mxu0 %v10277_v0  ;;  %v8775_v0 = vld [vmem:[%s11105_s14 + $0xfc] ss:$24 sps:$4 sm:$0xff]  }
0x1463   :  { %5524 = vmatmul.mubr.bf16.vlgmr.msra.gmra.mxu1 %v10279_v1  ;;  %6192 = vmatpush1.bf16.msra.mxu0 %v8758_v42  ;;  %v8770_v1 = vld [vmem:[%s11105_s14 + $0xf0] ss:$24 sps:$4 sm:$0xff]  }
0x1464   :  { %6233 = vmatpush1.bf16.msra.mxu1 %v8761_v44  ;;  %6193 = vmatprep.subr.bf16.mxu0 %v8766_v46  ;;  %v8833_v42 = vld [vmem:[%s11105_s14 + $0x218] ss:$24 sps:$4 sm:$0xff]   ;;  %v8838_v44 = vld [vmem:[%s11105_s14 + $0x1e4] ss:$24 sps:$4 sm:$0xff]  }
0x1465   :  { %6234 = vmatprep.subr.bf16.mxu1 %v8769_v48  ;;  %6223 = vmatprep.mubr.bf16.mxu0 %v10707_v50  ;;  %v8841_v46 = vld [vmem:[%s11105_s14 + $0x1ec] ss:$24 sps:$4 sm:$0xff]   ;;  %v8836_v48 = vld [vmem:[%s11105_s14 + $0x1e0] ss:$24 sps:$4 sm:$0xff]  }
0x1466   :  { %6264 = vmatprep.mubr.bf16.mxu1 %v10707_v50 }
0x1467   :  { %6194 = vmatpush1.bf16.msra.mxu0 %v8764_v54  ;;  %v8839_v54 = vld [vmem:[%s11105_s14 + $0x1e8] ss:$24 sps:$4 sm:$0xff]  }
0x1468   :  { %6235 = vmatpush1.bf16.msra.mxu1 %v8767_v57  ;;  %6195 = vmatprep.subr.bf16.mxu0 %v8772_v58  ;;  %v8844_v57 = vld [vmem:[%s11105_s14 + $0x1b4] ss:$24 sps:$4 sm:$0xff]  }
0x1469   :  { %6236 = vmatprep.subr.bf16.mxu1 %v8775_v0  ;;  %v8847_v58 = vld [vmem:[%s11105_s14 + $0x1bc] ss:$24 sps:$4 sm:$0xff]   ;;  %v8842_v0 = vld [vmem:[%s11105_s14 + $0x1b0] ss:$24 sps:$4 sm:$0xff]  }
0x146b   :  { %6196 = vmatpush1.bf16.msra.mxu0 %v8770_v1  ;;  %v8845_v1 = vld [vmem:[%s11105_s14 + $0x1b8] ss:$24 sps:$4 sm:$0xff]  }
0x146c   :  { %6237 = vmatpush1.bf16.msra.mxu1 %v8773_v53  ;;  %6197 = vmatprep.subr.bf16.mxu0 %v8778_v34  ;;  %v8850_v53 = vld [vmem:[%s11105_s14 + $0x184] ss:$24 sps:$4 sm:$0xff]  }
0x146d   :  { %6238 = vmatprep.subr.bf16.mxu1 %v8781_v43  ;;  %v8853_v34 = vld [vmem:[%s11105_s14 + $0x18c] ss:$24 sps:$4 sm:$0xff]   ;;  %v8848_v43 = vld [vmem:[%s11105_s14 + $0x180] ss:$24 sps:$4 sm:$0xff]  }
0x146f   :  { %6198 = vmatpush1.bf16.msra.mxu0 %v8776_v51  ;;  %v8851_v51 = vld [vmem:[%s11105_s14 + $0x188] ss:$24 sps:$4 sm:$0xff]  }
0x1470   :  { %6239 = vmatpush1.bf16.msra.mxu1 %v8779_v62  ;;  %6199 = vmatprep.subr.bf16.mxu0 %v8784_v63  ;;  %v8856_v62 = vld [vmem:[%s11105_s14 + $0x164] ss:$24 sps:$4 sm:$0xff]   ;;  %v10892_v63 = vpack.c.bf16 %v10679_v33, %v10679_v33 }
0x1471   :  { %6240 = vmatprep.subr.bf16.mxu1 %v8787_v3  ;;  %v8854_v3 = vld [vmem:[%s11105_s14 + $0x160] ss:$24 sps:$4 sm:$0xff]  }
0x1473   :  { %6200 = vmatpush1.bf16.msra.mxu0 %v8782_v4  ;;  %v8859_v4 = vld [vmem:[%s11105_s14 + $0x134] ss:$24 sps:$4 sm:$0xff]  }
0x1474   :  { %6241 = vmatpush1.bf16.msra.mxu1 %v8785_v6  ;;  %6201 = vmatprep.subr.bf16.mxu0 %v8790_v7 }
0x1475   :  { %6242 = vmatprep.subr.bf16.mxu1 %v8793_v8  ;;  %v8857_v8 = vld [vmem:[%s11105_s14 + $0x130] ss:$24 sps:$4 sm:$0xff]  }
0x1477   :  { %6202 = vmatpush1.bf16.msra.mxu0 %v8788_v9 }
0x1478   :  { %6243 = vmatpush1.bf16.msra.mxu1 %v8791_v10  ;;  %6203 = vmatprep.subr.bf16.mxu0 %v8796_v11  ;;  %v8862_v11 = vld [vmem:[%s11105_s14 + $0x104] ss:$24 sps:$4 sm:$0xff]  }
0x1479   :  { %6244 = vmatprep.subr.bf16.mxu1 %v8799_v12 }
0x147b   :  { %6204 = vmatpush1.bf16.msra.mxu0 %v8794_v13 }
0x147c   :  { %6245 = vmatpush1.bf16.msra.mxu1 %v8797_v14  ;;  %6205 = vmatprep.subr.bf16.mxu0 %v8802_v47 }
0x147d   :  { %6246 = vmatprep.subr.bf16.mxu1 %v8805_v59  ;;  %v8860_v59 = vld [vmem:[%s11105_s14 + $0x100] ss:$24 sps:$4 sm:$0xff]  }
0x147f   :  { %6206 = vmatpush1.bf16.msra.mxu0 %v8800_v56 }
0x1480   :  { %6247 = vmatpush1.bf16.msra.mxu1 %v8803_v55  ;;  %6207 = vmatprep.subr.bf16.mxu0 %v8808_v61  ;;  %v8868_v61 = vld [vmem:[%s11105_s14 + $0xa4] ss:$24 sps:$4 sm:$0xff]  }
0x1481   :  { %6248 = vmatprep.subr.bf16.mxu1 %v8811_v17  ;;  %v8866_v17 = vld [vmem:[%s11105_s14 + $0xa0] ss:$24 sps:$4 sm:$0xff]  }
0x1483   :  { %6208 = vmatpush2.bf16.msra.mxu0 %v8806_v18  ;;  %v8871_v18 = vld [vmem:[%s11105_s14 + $0x74] ss:$24 sps:$4 sm:$0xff]  }
0x1484   :  { %6249 = vmatpush2.bf16.msra.mxu1 %v8809_v49  ;;  %6209 = vmatprep.subr.bf16.mxu0 %v8814_v19  ;;  %v8869_v49 = vld [vmem:[%s11105_s14 + $0x70] ss:$24 sps:$4 sm:$0xff]   ;;  %v8874_v19 = vld [vmem:[%s11105_s14 + $0x44] ss:$24 sps:$4 sm:$0xff]  }
0x1485   :  { %6250 = vmatprep.subr.bf16.mxu1 %v8817_v20  ;;  %v8872_v20 = vld [vmem:[%s11105_s14 + $0x40] ss:$24 sps:$4 sm:$0xff]  }
0x1487   :  { %6210 = vmatpush2.bf16.msra.mxu0 %v8812_v21  ;;  %v8877_v21 = vld [vmem:[%s11105_s14 + $0x14] ss:$24 sps:$4 sm:$0xff]  }
0x1488   :  { %6251 = vmatpush2.bf16.msra.mxu1 %v8815_v22  ;;  %6211 = vmatprep.subr.bf16.mxu0 %v8820_v23  ;;  %v8875_v22 = vld [vmem:[%s11105_s14 + $0x10] ss:$24 sps:$4 sm:$0xff]   ;;  %v8880_v23 = vld [vmem:[%s11105_s14 + $0x2e4] ss:$24 sps:$4 sm:$0xff]  }
0x1489   :  { %6252 = vmatprep.subr.bf16.mxu1 %v8823_v60  ;;  %v8878_v60 = vld [vmem:[%s11105_s14 + $0x2e0] ss:$24 sps:$4 sm:$0xff]  }
0x148b   :  { %6212 = vmatpush2.bf16.msra.mxu0 %v8818_v26  ;;  %v8883_v26 = vld [vmem:[%s11105_s14 + $0x2b4] ss:$24 sps:$4 sm:$0xff]  }
0x148c   :  { %6253 = vmatpush2.bf16.msra.mxu1 %v8821_v45  ;;  %6213 = vmatprep.subr.bf16.mxu0 %v8826_v31  ;;  %v8881_v45 = vld [vmem:[%s11105_s14 + $0x2b0] ss:$24 sps:$4 sm:$0xff]   ;;  %v8886_v31 = vld [vmem:[%s11105_s14 + $0x284] ss:$24 sps:$4 sm:$0xff]  }
0x148d   :  { %6254 = vmatprep.subr.bf16.mxu1 %v8829_v32  ;;  %v8884_v32 = vld [vmem:[%s11105_s14 + $0x280] ss:$24 sps:$4 sm:$0xff]  }
0x148f   :  { %6214 = vmatpush2.bf16.msra.mxu0 %v8824_v25  ;;  %v8889_v25 = vld [vmem:[%s11105_s14 + $0x254] ss:$24 sps:$4 sm:$0xff]  }
0x1490   :  { %6255 = vmatpush2.bf16.msra.mxu1 %v8827_v36  ;;  %6215 = vmatprep.subr.bf16.mxu0 %v8832_v38  ;;  %v8887_v36 = vld [vmem:[%s11105_s14 + $0x250] ss:$24 sps:$4 sm:$0xff]   ;;  %v8892_v38 = vld [vmem:[%s11105_s14 + $0x224] ss:$24 sps:$4 sm:$0xff]  }
0x1491   :  { %6256 = vmatprep.subr.bf16.mxu1 %v8835_v39  ;;  %v8890_v39 = vld [vmem:[%s11105_s14 + $0x220] ss:$24 sps:$4 sm:$0xff]  }
0x1493   :  { %6216 = vmatpush2.bf16.msra.mxu0 %v8830_v41  ;;  %v8895_v41 = vld [vmem:[%s11105_s14 + $0x1f4] ss:$24 sps:$4 sm:$0xff]  }
0x1494   :  { %6257 = vmatpush2.bf16.msra.mxu1 %v8833_v42  ;;  %6217 = vmatprep.subr.bf16.mxu0 %v8838_v44  ;;  %v8893_v42 = vld [vmem:[%s11105_s14 + $0x1f0] ss:$24 sps:$4 sm:$0xff]   ;;  %v8898_v44 = vld [vmem:[%s11105_s14 + $0x1c4] ss:$24 sps:$4 sm:$0xff]  }
0x1495   :  { %6258 = vmatprep.subr.bf16.mxu1 %v8841_v46  ;;  %v8896_v46 = vld [vmem:[%s11105_s14 + $0x1c0] ss:$24 sps:$4 sm:$0xff]  }
0x1497   :  { %6218 = vmatpush2.bf16.msra.mxu0 %v8836_v48  ;;  %v8901_v48 = vld [vmem:[%s11105_s14 + $0x194] ss:$24 sps:$4 sm:$0xff]  }
0x1498   :  { %6259 = vmatpush2.bf16.msra.mxu1 %v8839_v54  ;;  %6219 = vmatprep.subr.bf16.mxu0 %v8844_v57  ;;  %v8899_v54 = vld [vmem:[%s11105_s14 + $0x190] ss:$24 sps:$4 sm:$0xff]  }
0x1499   :  { %6260 = vmatprep.subr.bf16.mxu1 %v8847_v58 }
0x149b   :  { %6220 = vmatpush2.bf16.msra.mxu0 %v8842_v0 }
0x149c   :  { %6261 = vmatpush2.bf16.msra.mxu1 %v8845_v1  ;;  %6221 = vmatprep.subr.bf16.mxu0 %v8850_v53 }
0x149d   :  { %6262 = vmatprep.subr.bf16.mxu1 %v8853_v34 }
0x149f   :  { %6222 = vmatpush2.bf16.msra.mxu0 %v8848_v43 }
0x14a0   :  { %6263 = vmatpush2.bf16.msra.mxu1 %v8851_v51  ;;  %6273 = vmatprep.subr.bf16.mxu0 %v8856_v62 }
0x14a2   :  { %6224 = vmatmul.mubr.bf16.vlgmr.msra.gmra.mxu0 %v10892_v63  ;;  %v5320_v6 = vpop.f32.mrf.mxu0  ;;  %v5361_v7 = vpop.f32.mrf.mxu1 }
0x14a3   :  { %6265 = vmatmul.mubr.bf16.vlgmr.msra.gmra.mxu1 %v10892_v63  ;;  %v5321_v33 = vadd.f32 %v5320_v6, %v10281_v2  ;;  %6274 = vmatpush1.bf16.msra.mxu0 %v8854_v3 }
0x14a4   :  { %v5322_v9 = vpop.f32.mrf.mxu0  ;;  %v5363_v10 = vpop.f32.mrf.mxu1  ;;  %6275 = vmatprep.subr.bf16.mxu0 %v8859_v4  ;;  %6305 = vmatprep.mubr.bf16.mxu0 %v10707_v50  ;;  %v8865_v50 = vld [vmem:[%s11105_s14 + $0xd4] ss:$24 sps:$4 sm:$0xff]  }
0x14a5   :  { %v10910_v12 = vadd.f32 %v5361_v7, %v5321_v33  ;;  %v5323_v13 = vadd.f32 %v5322_v9, %v10293_v5  ;;  %v8863_v5 = vld [vmem:[%s11105_s14 + $0xd0] ss:$24 sps:$4 sm:$0xff]  }
0x14a6   :  { %v5324_v14 = vpop.f32.mrf.mxu0  ;;  %v5365_v2 = vpop.f32.mrf.mxu1 }
0x14a7   :  { %v10913_v47 = vadd.f32 %v5363_v10, %v5323_v13  ;;  %6276 = vmatpush1.bf16.msra.mxu0 %v8857_v8 }
0x14a8   :  { %v5325_v56 = vpop.f32.mrf.mxu0  ;;  %v5366_v55 = vpop.f32.mrf.mxu1  ;;  %6277 = vmatprep.subr.bf16.mxu0 %v8862_v11 }
0x14a9   :  { %v8905_v56 = vld [vmem:[%s11107_s16 + $0x30] sm:$0xff]   ;;  %v8906_v55 = vld [vmem:[%s11107_s16 + $0x68] sm:$0xff]  }
0x14ab   :  { %6278 = vmatpush1.bf16.msra.mxu0 %v8860_v59  ;;  %v8902_v59 = vld [vmem:[%s11107_s16 + $0x78] sm:$0xff]  }
0x14ac   :  { %6279 = vmatprep.subr.bf16.mxu0 %v8865_v50  ;;  %7645 = vmatprep.subr.bf16.mxu1 %v8902_v59  ;;  %v8907_v50 = vld [vmem:[%s11107_s16 + $0x28] sm:$0xff]  }
0x14af   :  { %6280 = vmatpush1.bf16.msra.mxu0 %v8863_v5  ;;  %v8908_v5 = vld [vmem:[%s11107_s16 + $0x60] sm:$0xff]  }
0x14b0   :  { %6281 = vmatprep.subr.bf16.mxu0 %v8868_v61  ;;  %v8909_v61 = vld [vmem:[%s11107_s16 + $0x20] sm:$0xff]  }
0x14b3   :  { %6282 = vmatpush1.bf16.msra.mxu0 %v8866_v17  ;;  %v8910_v17 = vld [vmem:[%s11107_s16 + $0x58] sm:$0xff]  }
0x14b4   :  { %6283 = vmatprep.subr.bf16.mxu0 %v8871_v18  ;;  %v8911_v18 = vld [vmem:[%s11107_s16 + $0x18] sm:$0xff]  }
0x14b7   :  { %6284 = vmatpush1.bf16.msra.mxu0 %v8869_v49  ;;  %v8912_v49 = vld [vmem:[%s11107_s16 + $0x50] sm:$0xff]  }
0x14b8   :  { %6285 = vmatprep.subr.bf16.mxu0 %v8874_v19  ;;  %v8913_v19 = vld [vmem:[%s11107_s16 + $0x10] sm:$0xff]  }
0x14bb   :  { %6286 = vmatpush1.bf16.msra.mxu0 %v8872_v20  ;;  %v8914_v20 = vld [vmem:[%s11107_s16 + $0x48] sm:$0xff]  }
0x14bc   :  { %6287 = vmatprep.subr.bf16.mxu0 %v8877_v21  ;;  %v8915_v21 = vld [vmem:[%s11107_s16 + $0x8] sm:$0xff]  }
0x14bf   :  { %6288 = vmatpush1.bf16.msra.mxu0 %v8875_v22  ;;  %v8916_v22 = vld [vmem:[%s11107_s16 + $0x40] sm:$0xff]  }
0x14c0   :  { %6289 = vmatprep.subr.bf16.mxu0 %v8880_v23  ;;  %v8917_v23 = vld [vmem:[%s11107_s16] sm:$0xff]  }
0x14c3   :  { %6290 = vmatpush2.bf16.msra.mxu0 %v8878_v60 }
0x14c4   :  { %6291 = vmatprep.subr.bf16.mxu0 %v8883_v26 }
0x14c7   :  { %6292 = vmatpush2.bf16.msra.mxu0 %v8881_v45 }
0x14c8   :  { %6293 = vmatprep.subr.bf16.mxu0 %v8886_v31 }
0x14cb   :  { %6294 = vmatpush2.bf16.msra.mxu0 %v8884_v32 }
0x14cc   :  { %6295 = vmatprep.subr.bf16.mxu0 %v8889_v25 }
0x14cf   :  { %6296 = vmatpush2.bf16.msra.mxu0 %v8887_v36 }
0x14d0   :  { %6297 = vmatprep.subr.bf16.mxu0 %v8892_v38 }
0x14d3   :  { %6298 = vmatpush2.bf16.msra.mxu0 %v8890_v39  ;;  %v5679_v39 = vld [vmem:[%s11106_s15] sm:$0x3f] }
0x14d4   :  { %6299 = vmatprep.subr.bf16.mxu0 %v8895_v41  ;;  %v5532_v41 = vld [vmem:[%s11104_s13] sm:$0x3f]  ;;  %s8964_s13 = smov [#allocation2]  }
0x14d5   :  { %s6571_s15 = sshll.u32 %s8964_s13, 4  ;;  %s6572_s15 = int_to_ptr.vmem [resolvable:$true] %s6571_s15 }
0x14d6   :  { %p8943_p1 = scmp.lt.s32.totalorder %s6572_s15, %s6572_s15 }
0x14d7   :  { %6300 = vmatpush2.bf16.msra.mxu0 %v8893_v42  ;;  %v5684_v42 = vrot.slane %v5679_v39, %v10249_v28 }
0x14d8   :  { %6301 = vmatprep.subr.bf16.mxu0 %v8898_v44  ;;  %v5537_v44 = vrot.slane %v5532_v41, %v10249_v28  ;;  %v5545_v28 = vrot.slane %v5532_v41, %v10252_v29 }
0x14db   :  { %6302 = vmatpush2.bf16.msra.mxu0 %v8896_v46  ;;  %v5688_v46 = vrot.slane %v5679_v39, %v10258_v52 }
0x14dc   :  { %6303 = vmatprep.subr.bf16.mxu0 %v8901_v48  ;;  %v5541_v48 = vrot.slane %v5532_v41, %v10258_v52 }
0x14df   :  { %6304 = vmatpush2.bf16.msra.mxu0 %v8899_v54 }
0x14e2   :  { %v5402_v57 = vpop.f32.mrf.mxu0  ;;  %v5443_v58 = vpop.f32.mrf.mxu1  ;;  %6306 = vmatmul.mubr.bf16.vlgmr.msra.gmra.mxu0 %v10892_v63 }
0x14e3   :  { %v5403_v0 = vadd.f32 %v5402_v57, %v10321_v16  ;;  %v5564_v57 = vadd.f32 %v5537_v44, %v10910_v12 }
0x14e4   :  { %v5404_v1 = vpop.f32.mrf.mxu0  ;;  %v5445_v53 = vpop.f32.mrf.mxu1 }
0x14e5   :  { %v10998_v34 = vadd.f32 %v5443_v58, %v5403_v0  ;;  %v5405_v43 = vadd.f32 %v5404_v1, %v10323_v35  ;;  %v5565_v0 = vadd.f32 %v5541_v48, %v10913_v47 }
0x14e6   :  { %v5406_v51 = vpop.f32.mrf.mxu0  ;;  %v5447_v62 = vpop.f32.mrf.mxu1 }
0x14e7   :  { %v11001_v3 = vadd.f32 %v5445_v53, %v5405_v43  ;;  %v5692_v62 = vrot.slane %v5679_v39, %v10252_v29  ;;  %v5566_v47 = vadd.f32 %v5545_v28, %v10998_v34  ;;  %v5552_v29 = vsub.s32 4, %v10246_v27 }
0x14e8   :  { %v5407_v4 = vpop.f32.mrf.mxu0  ;;  %v5448_v6 = vpop.f32.mrf.mxu1 }
0x14e9   :  { %v5696_v6 = vrot.slane %v5679_v39, %v10261_v30  ;;  %v5553_v59 = vrot.slane %v5532_v41, %v5552_v29 }
0x1522   :  { %v5484_v7 = vpop.f32.mrf.mxu0 }
0x1523   :  { %v5485_v33 = vadd.f32 %v5484_v7, %v10469_v15  ;;  %v5525_v8 = vpop.f32.mrf.mxu1  ;;  %v8903_v15 = vld [vmem:[%s11107_s16 + $0x38] sm:$0xff]   ;;  %v5549_v7 = vrot.slane %v5532_v41, %v10261_v30  ;;  %v5700_v30 = vrot.slane %v5679_v39, %v5552_v29 }
0x1524   :  { %v5486_v9 = vpop.f32.mrf.mxu0  ;;  %7646 = vmatpush3.bf16.msra.mxu1 %v8903_v15 }
0x1525   :  { %v11004_v63 = vadd.f32 %v5525_v8, %v5485_v33  ;;  %v5487_v16 = vadd.f32 %v5486_v9, %v10471_v40  ;;  %v5527_v10 = vpop.f32.mrf.mxu1  ;;  %v8904_v40 = vld [vmem:[%s11107_s16 + $0x70] sm:$0xff]   ;;  %s8938_s16 = scalar_lea.vmem %s6572_s15, 64 }
0x1526   :  { %v5488_v11 = vpop.f32.mrf.mxu0  ;;  %7647 = vmatprep.subr.bf16.mxu1 %v8904_v40  ;;  %p8939_p0 = scmp.ne.s32.totalorder %s6572_s15, %s8938_s16  ;;  %p8944_p2 = scmp.lt.s32.totalorder %s8938_s16, %s8938_s16 }
0x1527   :  { %v11007_v13 = vadd.f32 %v5527_v10, %v5487_v16  ;;  %v5529_v35 = vpop.f32.mrf.mxu1  ;;  %v5567_v16 = vadd.f32 %v5549_v7, %v11001_v3 }
0x1528   :  { %v5489_v14 = vpop.f32.mrf.mxu0  ;;  %7648 = vmatpush3.bf16.msra.mxu1 %v8905_v56  ;;  %p8945_p3 = por %p8944_p2, %p8943_p1 }
0x1529   :  { %v5530_v2 = vpop.f32.mrf.mxu1  ;;  %7649 = vmatprep.subr.bf16.mxu1 %v8906_v55 }
0x152a   :  { %v5556_v2 = vsub.s32 5, %v10246_v27  ;;  %p8946_p4 = pnand %p8945_p3, %p8939_p0 }
0x152c   :  { %7650 = vmatpush3.bf16.msra.mxu1 %v8907_v50  ;;  %v5704_v15 = vrot.slane %v5679_v39, %v5556_v2  ;;  %v5557_v40 = vrot.slane %v5532_v41, %v5556_v2  ;;  %v5568_v50 = vadd.f32 %v5553_v59, %v11004_v63 }
0x152d   :  { %7651 = vmatprep.subr.bf16.mxu1 %v8908_v5 }
0x1530   :  { %7652 = vmatpush3.bf16.msra.mxu1 %v8909_v61 }
0x1531   :  { %7653 = vmatprep.subr.bf16.mxu1 %v8910_v17 }
0x1534   :  { %7654 = vmatpush3.bf16.msra.mxu1 %v8911_v18 }
0x1535   :  { %7655 = vmatprep.subr.bf16.mxu1 %v8912_v49  ;;  %v5569_v49 = vadd.f32 %v5557_v40, %v11007_v13 }
0x1538   :  { %7656 = vmatpush3.bf16.msra.mxu1 %v8913_v19 }
0x1539   :  { %7657 = vmatprep.subr.bf16.mxu1 %v8914_v20 }
0x153c   :  { %7658 = vmatpush3.bf16.msra.mxu1 %v8915_v21 }
0x153d   :  { %7659 = vmatprep.subr.bf16.mxu1 %v8916_v22 }
0x1540   :  { %7660 = vmatpush3.bf16.msra.mxu1 %v8917_v23 }
0x1562   :  { %v6225_v60 = vpop.f32.mrf.mxu0 }
0x1563   :  { %v6266_v26 = vpop.f32.mrf.mxu1  ;;  %v6226_v54 = vadd.f32 %v6225_v60, %v5684_v42 }
0x1564   :  { %v6227_v45 = vpop.f32.mrf.mxu0  ;;  %v6267_v33 = vadd.f32 %v6266_v26, %v5692_v62 }
0x1565   :  { %v6268_v31 = vpop.f32.mrf.mxu1  ;;  %v6228_v58 = vadd.f32 %v6227_v45, %v5688_v46  ;;  %v6314_v1 = vadd.f32 %v6226_v54, %v5564_v57 }
0x1566   :  { %v6229_v32 = vpop.f32.mrf.mxu0  ;;  %v6269_v9 = vadd.f32 %v6268_v31, %v5696_v6  ;;  %v6328_v10 = vadd.f32 %v6267_v33, %v5566_v47 }
0x1567   :  { %v6270_v25 = vpop.f32.mrf.mxu1  ;;  %v6315_v53 = vadd.f32 %v6228_v58, %v5565_v0  ;;  %v7263_v43 = vmul.f32 -1.442695, %v6314_v1 }
0x1568   :  { %v6230_v36 = vpop.f32.mrf.mxu0  ;;  %v6329_v11 = vadd.f32 %v6269_v9, %v5567_v16  ;;  %v7265_v35 = vmul.f32 -1.442695, %v6328_v10 }
0x1569   :  { %v6271_v38 = vpop.f32.mrf.mxu1  ;;  %v7264_v51 = vmul.f32 -1.442695, %v6315_v53  ;;  %8918 = vpow2.f32 %v7263_v43 }
0x156a   :  { %v7266_v14 = vmul.f32 -1.442695, %v6329_v11 }
0x156b   :  { %8920 = vpow2.f32 %v7264_v51 }
0x1576   :  { %v8919_v4 = vpop.eup %8918 }
0x1577   :  { %v6322_v12 = vadd.f32 1.0, %v8919_v4 }
0x1578   :  { %v8921_v52 = vpop.eup %8920 }
0x1579   :  { %v6323_v8 = vadd.f32 1.0, %v8921_v52  ;;  %8922 = vrcp.f32 %v6322_v12 }
0x157b   :  { %8924 = vrcp.f32 %v6323_v8 }
0x157c   :  { %8926 = vpow2.f32 %v7265_v35 }
0x157d   :  { %8928 = vpow2.f32 %v7266_v14 }
0x1586   :  { %v8923_v55 = vpop.eup %8922 }
0x1588   :  { %v8925_v17 = vpop.eup %8924 }
0x1589   :  { %v8927_v22 = vpop.eup %8926 }
0x158a   :  { %v8929_v23 = vpop.eup %8928  ;;  %v6336_v60 = vadd.f32 1.0, %v8927_v22 }
0x158b   :  { %v6337_v26 = vadd.f32 1.0, %v8929_v23 }
0x15a2   :  { %v6307_v34 = vpop.f32.mrf.mxu0 }
0x15a3   :  { %v6308_v56 = vadd.f32 %v6307_v34, %v5700_v30 }
0x15a4   :  { %v6309_v3 = vpop.f32.mrf.mxu0 }
0x15a5   :  { %v6342_v5 = vmul.f32 %v8923_v55, %v6308_v56  ;;  %v6310_v61 = vadd.f32 %v6309_v3, %v5704_v15 }
0x15a6   :  { %v6311_v18 = vpop.f32.mrf.mxu0 }
0x15a7   :  { %v6344_v19 = vadd.f32 %v6342_v5, %v5568_v50  ;;  %v6343_v27 = vmul.f32 %v8925_v17, %v6310_v61 }
0x15a8   :  { %v6312_v20 = vpop.f32.mrf.mxu0 }
0x15a9   :  { %v6345_v21 = vadd.f32 %v6343_v27, %v5569_v49  ;;  %8930 = vtanh.f32 %v6344_v19 }
0x15ab   :  { %8932 = vtanh.f32 %v6345_v21 }
0x15ac   :  { %8934 = vrcp.f32 %v6336_v60 }
0x15ad   :  { %8936 = vrcp.f32 %v6337_v26 }
0x15b6   :  { %v8931_v45 = vpop.eup %8930 }
0x15b8   :  { %v8933_v63 = vpop.eup %8932 }
0x15b9   :  { %v6350_v31 = vcombine.low %v8931_v45, %v8933_v63  ;;  %v8935_v36 = vpop.eup %8934 }
0x15ba   :  { %v8937_v41 = vpop.eup %8936 }
0x15bb   :  { %v6357_v32 = vrot.slane %v6350_v31, %v10658_v24 }
0x15bd   :  { %v6359_v25 = vsub.f32 %v10663_v37, %v6357_v32 }
0x15bf   :  { %v6367_v13 = vrot.slane %v6359_v25, %v10658_v24 }
0x15c1   :  { %v6368_v38 = vcombine.high %v6367_v13, %v6367_v13  ;;  %v6371_v39 = vmul.f32 %v8935_v36, %v6367_v13 }
0x15c3   :  { %v6372_v42 = vmul.f32 %v8937_v41, %v6368_v38  ;;  %v6373_v44 = vadd.f32 %v8931_v45, %v6371_v39 }
0x15c5   :  { %v6374_v46 = vadd.f32 %v8933_v63, %v6372_v42  ;;  %v6387_v57 = vpack.c.bf16 %v6373_v44, %v6373_v44 }
0x15c7   :  { %v6388_v48 = vpack.c.bf16 %v6374_v46, %v6374_v46  ;;  %v6377_v54 = vcombine.low %v6373_v44, %v6374_v46 }
0x15c9   :  { %6556 = vmatprep.mubr.bf16.mxu1 %v6388_v48  ;;  %7267 = vst.sshfl [vmem:[#allocation2] sm:$0x33 pattern:$0x76325410] %v6377_v54 }
0x15ca   :  { %6557 = vmatmul.mubr.bf16.vlgmr.msra.gmra.mxu1 %v6387_v57 }
0x15cb   :  { %8949 = shalt.err (!%p8946_p4)
}
0x15cc   :  { %6574 = dma.vmem_to_hbm [thread:$0]  %s6572_s15, 64, %s11111_s20, [#allocation3]   ;;  %v7268_v37 = vld [vmem:[%s11108_s17] ss:$0 sm:$0xff] }
0x168a   :  { %v7661_v24 = vpop.f32.mrf.mxu1 }
0x168c   :  { %v7662_v58 = vpop.f32.mrf.mxu1 }
0x168d   :  { %v7663_v0 = vadd.f32 %v7662_v58, %v7661_v24 }
0x168e   :  { %v7664_v1 = vpop.f32.mrf.mxu1 }
0x168f   :  { %v6559_v53 = vadd.f32 %v7663_v0, %v7268_v37 }
0x1690   :  { %v7665_v43 = vpop.f32.mrf.mxu1 }
0x1691   :  { %6564 = vst [vmem:[%s11112_s21] sm:$0x3] %v6559_v53 }
0x1692   :  { %8958 = dma.done.wait [#allocation3], 64  }
0x1693   :  { %8959 = vsyncadd [#allocation3], 4294967232 }
0x1694   :  { %6582 = vsyncpa [#allocation3], 1 }

</bundles_post_ra>
